<compile_context>
chip_gen: v7x
topology: tpu7x:2x2x1
jax: 0.10.0
libtpu: 0.0.40
codegen_flags: <defaults>
</compile_context>

<pallas_src>
import numpy as np
import jax
import jax.numpy as jnp
from jax.experimental import pallas as pl
from jax.experimental.pallas import tpu as pltpu


# ---------------- fused Pallas kernel (one grid step = B samples) ----------------

def _lenet_fused_kernel(
    x_ref,                                    # (24*B, 140)   im2col'd input block
    w1r_ref, b1r_ref,                         # (140, 256), (1, 256)  conv1 + pool1-horizontal
    lf1_ref,                                  # (80*B, 24*B)  pool1-vertical + conv2 im2col rows
    w2r_ref, b2r_ref,                         # (5, 72, 256), (1, 256) conv2 + pool2-horizontal
    lf2_ref,                                  # (8*B, 8*B)    pool2-vertical + flatten row order
    wf1_ref, bf1_ref,                         # (256, 128), (1, 128)
    wf2_ref, bf2_ref,                         # (128, 128), (1, 128)
    wf3_ref, bf3_ref,                         # (128, 128), (1, 128)  pad lanes biased to -1e30
    o_ref,                                    # (B, 128)
):
    B = o_ref.shape[0]

    def dot(a, b):
        # DEFAULT precision: single-pass bf16 MXU with f32 accumulation.
        return jnp.dot(a, b, preferred_element_type=jnp.float32)

    # ---- conv1 (1->6, 5x5) + horizontal 2:1 max (selector folded into weights) ----
    c1b = dot(x_ref[...], w1r_ref[...]) + b1r_ref[...]           # (24B, 256)
    c1 = jnp.maximum(c1b[:, 0:72], c1b[:, 128:200])              # (24B, 72)  lanes ci*12+pw

    # ---- pool1 vertical max + row compaction + conv2 vertical im2col (one matmul) ----
    d1 = dot(lf1_ref[...], c1)                                   # (80B, 72)
    half1 = 40 * B
    p1 = jnp.maximum(jnp.maximum(d1[:half1], d1[half1:]), 0.0)   # (40B, 72) rows i*8B + b*8 + r

    # ---- conv2 (6->16, 5x5) + horizontal 2:1 max: 5 aligned row-block matmuls ----
    c2b = b2r_ref[...]                                           # (1, 256) broadcast
    for i in range(5):
        c2b = c2b + dot(p1[i * 8 * B:(i + 1) * 8 * B, :], w2r_ref[i])
    c2 = jnp.maximum(c2b[:, 0:64], c2b[:, 128:192])              # (8B, 64)  lanes co*4+pw2

    # ---- pool2 vertical max + compaction (row order k*B + b implements Flatten) ----
    d2 = dot(lf2_ref[...], c2)                                   # (8B, 64)
    half2 = 4 * B
    p2 = jnp.maximum(jnp.maximum(d2[:half2], d2[half2:]), 0.0)   # (4B, 64)

    # ---- fc1 (flatten folded in as 4 row-group matmuls, lanes padded to 128) ----
    wf1 = wf1_ref[...]
    h = bf1_ref[...]
    for k in range(4):
        h = h + dot(p2[k * B:(k + 1) * B, :], wf1[k * 64:(k + 1) * 64, :])
    h1 = jnp.maximum(h, 0.0)                                     # (B, 128)
    h2 = jnp.maximum(dot(h1, wf2_ref[...]) + bf2_ref[...], 0.0)  # (B, 128)
    # TODO(synk): nn.Dropout(p=0.2) is identity in eval mode; training-mode RNG mask not implemented.
    z = dot(h2, wf3_ref[...]) + bf3_ref[...]                     # (B, 128), padded lanes ~ -1e30

    zmax = jnp.max(z, axis=-1, keepdims=True)
    lse = jnp.log(jnp.sum(jnp.exp(z - zmax), axis=-1, keepdims=True)) + zmax
    o_ref[...] = z - lse


# ---------------- one-time parameter preparation (all layout work hoisted) ----------------

def prepare_inputs(params, block_b=16):
    """Fold every layout/permutation/pooling-selection into MXU-ready operands.

    block_b is the per-grid-step batch (must be a multiple of 8); the block-diagonal
    pool selectors are built for exactly this block size.
    """
    assert block_b > 0 and block_b % 8 == 0
    B = block_b
    K = 5

    w1 = np.asarray(params["w_conv1"], np.float32)     # (6,1,5,5)
    b1 = np.asarray(params["b_conv1"], np.float32)     # (6,)
    w2 = np.asarray(params["w_conv2"], np.float32)     # (16,6,5,5)
    b2 = np.asarray(params["b_conv2"], np.float32)     # (16,)
    fc1w = np.asarray(params["w_fc1"], np.float32)     # (120,256)
    fc1b = np.asarray(params["b_fc1"], np.float32)
    fc2w = np.asarray(params["w_fc2"], np.float32)     # (84,120)
    fc2b = np.asarray(params["b_fc2"], np.float32)
    fc3w = np.asarray(params["w_last"], np.float32)    # (C,84)
    fc3b = np.asarray(params["b_last"], np.float32)
    C = fc3w.shape[0]
    assert C <= 128

    # conv1 im2col weight: W1[i*28 + w, co*24 + ow] = w1[co,0,i,w-ow]
    W1 = np.zeros((K * 28, 6 * 24), np.float32)
    for i in range(K):
        for w in range(28):
            for co in range(6):
                for ow in range(24):
                    j = w - ow
                    if 0 <= j < K:
                        W1[i * 28 + w, co * 24 + ow] = w1[co, 0, i, j]
    b1row = np.repeat(b1, 24)[None, :].astype(np.float32)        # (1,144)

    # pool1 horizontal selector (even lanes 0..71, odd lanes 128..199), folded into W1.
    R1 = np.zeros((144, 256), np.float32)
    for ci in range(6):
        for pw in range(12):
            R1[ci * 24 + 2 * pw,     ci * 12 + pw] = 1.0
            R1[ci * 24 + 2 * pw + 1, 128 + ci * 12 + pw] = 1.0
    W1R = W1 @ R1                                                 # (140,256)
    b1R = b1row @ R1                                              # (1,256)

    # pool1 vertical even/odd selector + conv2 vertical-shift rows, block-diag over batch.
    # Output row i*8B + b*8 + r  ->  pool1[b, :, r+i, :] candidate rows.
    Lf1 = np.zeros((2 * K * 8 * B, 24 * B), np.float32)
    half1 = K * 8 * B
    for i in range(K):
        for bb in range(B):
            for r in range(8):
                src = bb * 24 + 2 * (r + i)
                Lf1[i * 8 * B + bb * 8 + r, src] = 1.0
                Lf1[half1 + i * 8 * B + bb * 8 + r, src + 1] = 1.0

    # pool2 horizontal selector, folded into conv2 weights (one matrix per vertical shift i).
    R2 = np.zeros((128, 256), np.float32)
    for co in range(16):
        for pw2 in range(4):
            R2[co * 8 + 2 * pw2,     co * 4 + pw2] = 1.0
            R2[co * 8 + 2 * pw2 + 1, 128 + co * 4 + pw2] = 1.0
    W2R = np.zeros((K, 72, 256), np.float32)
    for i in range(K):
        M2i = np.zeros((72, 128), np.float32)
        for ci in range(6):
            for w in range(12):
                for co in range(16):
                    for ow in range(8):
                        j = w - ow
                        if 0 <= j < K:
                            M2i[ci * 12 + w, co * 8 + ow] = w2[co, ci, i, j]
        W2R[i] = M2i @ R2
    b2row = np.repeat(b2, 8)[None, :].astype(np.float32)          # (1,128)
    b2R = b2row @ R2                                               # (1,256)

    # pool2 vertical even/odd selector; output row order k*B + b implements the Flatten.
    Lf2 = np.zeros((2 * 4 * B, 8 * B), np.float32)
    for k in range(4):
        for bb in range(B):
            Lf2[k * B + bb,         bb * 8 + 2 * k] = 1.0
            Lf2[4 * B + k * B + bb, bb * 8 + 2 * k + 1] = 1.0

    # fc1 with the torch Flatten permutation folded in; lanes padded 120 -> 128.
    Wf1 = np.zeros((256, 128), np.float32)
    for k in range(4):
        for f in range(64):
            co, pw2 = divmod(f, 4)
            Wf1[k * 64 + f, :120] = fc1w[:, co * 16 + k * 4 + pw2]
    bf1 = np.zeros((1, 128), np.float32); bf1[0, :120] = fc1b

    Wf2 = np.zeros((128, 128), np.float32); Wf2[:120, :84] = fc2w.T
    bf2 = np.zeros((1, 128), np.float32); bf2[0, :84] = fc2b

    Wf3 = np.zeros((128, 128), np.float32); Wf3[:84, :C] = fc3w.T
    bf3 = np.full((1, 128), -1e30, np.float32); bf3[0, :C] = fc3b   # pad logits ~ -inf

    prep = dict(w1r=W1R, b1r=b1R, lf1=Lf1, w2r=W2R, b2r=b2R, lf2=Lf2,
                wf1=Wf1, bf1=bf1, wf2=Wf2, bf2=bf2, wf3=Wf3, bf3=bf3)
    return {k: jnp.asarray(v) for k, v in prep.items()}


# ---------------- forward (one fused pallas_call over a batch-parallel grid) ----------------

def softmax_model_forward(x, prep, num_classes):
    n = x.shape[0]
    B = prep["lf2"].shape[0] // 8          # block batch size baked into the selectors
    npad = ((n + B - 1) // B) * B
    if npad != n:
        x = jnp.pad(x, ((0, npad - n), (0, 0), (0, 0), (0, 0)))

    # conv1 im2col of the raw input (pure layout prep, done once per forward).
    # Row (sample*24 + oh), lane (i*28 + w)  =  x[sample, 0, oh+i, w].
    x2 = x[:, 0]
    xcol = jnp.concatenate([x2[:, i:i + 24, :] for i in range(5)], axis=2)
    xcol = xcol.reshape(npad * 24, 5 * 28)                        # (npad*24, 140)

    steps = npad // B
    weights = (prep["w1r"], prep["b1r"], prep["lf1"], prep["w2r"], prep["b2r"],
               prep["lf2"], prep["wf1"], prep["bf1"], prep["wf2"], prep["bf2"],
               prep["wf3"], prep["bf3"])
    # Weights stay VMEM-resident across grid steps (constant index_map).
    weight_specs = [pl.BlockSpec(tuple(w.shape), lambda s, nd=w.ndim: (0,) * nd)
                    for w in weights]

    flops_step = 2 * (24 * B * 140 * 256 + 80 * B * 24 * B * 72
                      + 5 * 8 * B * 72 * 256 + 8 * B * 8 * B * 64
                      + 4 * B * 64 * 128 + 2 * B * 128 * 128)
    weight_bytes = sum(int(np.prod(w.shape)) * 4 for w in weights)
    cost = pl.CostEstimate(
        flops=int(flops_step * steps),
        transcendentals=int(npad * 129),
        bytes_accessed=int(xcol.size * 4 + npad * 128 * 4 + weight_bytes),
    )

    out = pl.pallas_call(
        _lenet_fused_kernel,
        grid=(steps,),
        in_specs=[pl.BlockSpec((24 * B, 140), lambda s: (s, 0))] + weight_specs,
        out_specs=pl.BlockSpec((B, 128), lambda s: (s, 0)),
        out_shape=jax.ShapeDtypeStruct((npad, 128), jnp.float32),
        compiler_params=pltpu.CompilerParams(
            dimension_semantics=("parallel",),
            vmem_limit_bytes=32 * 1024 * 1024),
        cost_estimate=cost,
    )(xcol, *weights)
    return out[:n, :num_classes]


# ---------------- reference (pure JAX / XLA, torch-layout params) ----------------

def reference_forward(x, params):
    hp = jax.lax.Precision.HIGHEST

    def conv(h, w, b):
        o = jax.lax.conv_general_dilated(
            h, w, (1, 1), "VALID",
            dimension_numbers=("NCHW", "OIHW", "NCHW"), precision=hp)
        return o + b.reshape(1, -1, 1, 1)

    def pool_relu(h):
        m = jnp.maximum(jnp.maximum(h[:, :, 0::2, 0::2], h[:, :, 0::2, 1::2]),
                        jnp.maximum(h[:, :, 1::2, 0::2], h[:, :, 1::2, 1::2]))
        return jnp.maximum(m, 0.0)

    h = pool_relu(conv(x, params["w_conv1"], params["b_conv1"]))
    h = pool_relu(conv(h, params["w_conv2"], params["b_conv2"]))
    h = h.reshape(h.shape[0], -1)
    h = jnp.maximum(jnp.dot(h, params["w_fc1"].T, precision=hp) + params["b_fc1"], 0.0)
    h = jnp.maximum(jnp.dot(h, params["w_fc2"].T, precision=hp) + params["b_fc2"], 0.0)
    z = jnp.dot(h, params["w_last"].T, precision=hp) + params["b_last"]
    return jax.nn.log_softmax(z, axis=1)


# ---------------- deterministic parameter init (torch layouts) ----------------

def init_params(key, num_classes=10):
    ks = jax.random.split(key, 10)

    def init(k, shape, fan_in):
        return jax.random.normal(k, shape, jnp.float32) / jnp.sqrt(fan_in)

    return dict(
        w_conv1=init(ks[0], (6, 1, 5, 5), 25),       b_conv1=init(ks[1], (6,), 25),
        w_conv2=init(ks[2], (16, 6, 5, 5), 150),     b_conv2=init(ks[3], (16,), 150),
        w_fc1=init(ks[4], (120, 256), 256),          b_fc1=init(ks[5], (120,), 256),
        w_fc2=init(ks[6], (84, 120), 120),           b_fc2=init(ks[7], (84,), 120),
        w_last=init(ks[8], (num_classes, 84), 84),   b_last=init(ks[9], (num_classes,), 84),
    )


if __name__ == "__main__":
    key = jax.random.PRNGKey(0)
    kx, kp = jax.random.split(key)

    N, num_classes, block_b = 32, 10, 16
    # MNIST-style input (28x28 so that flatten gives 16*4*4 = 256 features)
    x = jax.random.normal(kx, (N, 1, 28, 28), jnp.float32)
    params = init_params(kp, num_classes)
    prep = prepare_inputs(params, block_b=block_b)   # one-time layout work, off the hot path

    fwd = jax.jit(softmax_model_forward, static_argnums=(2,))
    y = fwd(x, prep, num_classes)
    jax.block_until_ready(y)

    y_ref = reference_forward(x, params)
    # DEFAULT (bf16-pass) MXU precision vs HIGHEST-precision reference -> relaxed tolerance.
    np.testing.assert_allclose(np.asarray(y), np.asarray(y_ref), atol=5e-2, rtol=5e-2)
    assert y.shape == (N, num_classes)
    assert np.allclose(np.exp(np.asarray(y)).sum(axis=1), 1.0, atol=1e-3)

    print("KERNEL_OK")
</pallas_src>

<mosaic_0001>
module attributes {stable_mosaic.version = 11 : i64} {
  func.func @_lenet_fused_kernel(%arg0: i32, %arg1: memref<384x140xf32, #tpu.memory_space<vmem>>, %arg2: memref<140x256xf32, #tpu.memory_space<vmem>>, %arg3: memref<1x256xf32, #tpu.memory_space<vmem>>, %arg4: memref<1280x384xf32, #tpu.memory_space<vmem>>, %arg5: memref<5x72x256xf32, #tpu.memory_space<vmem>>, %arg6: memref<1x256xf32, #tpu.memory_space<vmem>>, %arg7: memref<128x128xf32, #tpu.memory_space<vmem>>, %arg8: memref<256x128xf32, #tpu.memory_space<vmem>>, %arg9: memref<1x128xf32, #tpu.memory_space<vmem>>, %arg10: memref<128x128xf32, #tpu.memory_space<vmem>>, %arg11: memref<1x128xf32, #tpu.memory_space<vmem>>, %arg12: memref<128x128xf32, #tpu.memory_space<vmem>>, %arg13: memref<1x128xf32, #tpu.memory_space<vmem>>, %arg14: memref<16x128xf32, #tpu.memory_space<vmem>>) attributes {dimension_semantics = [#tpu.dimension_semantics<parallel>], iteration_bounds = array<i64: 2>, scalar_prefetch = 0 : i64, scratch_operands = 0 : i64, tpu.core_type = #tpu.core_type<tc>, window_params = [{transform_indices = @transform_0, window_bounds = array<i64: 384, 140>}, {pipeline_mode = #tpu.pipeline_mode<synchronous>, transform_indices = @transform_1, window_bounds = array<i64: 140, 256>}, {pipeline_mode = #tpu.pipeline_mode<synchronous>, transform_indices = @transform_2, window_bounds = array<i64: 1, 256>}, {pipeline_mode = #tpu.pipeline_mode<synchronous>, transform_indices = @transform_3, window_bounds = array<i64: 1280, 384>}, {pipeline_mode = #tpu.pipeline_mode<synchronous>, transform_indices = @transform_4, window_bounds = array<i64: 5, 72, 256>}, {pipeline_mode = #tpu.pipeline_mode<synchronous>, transform_indices = @transform_5, window_bounds = array<i64: 1, 256>}, {pipeline_mode = #tpu.pipeline_mode<synchronous>, transform_indices = @transform_6, window_bounds = array<i64: 128, 128>}, {pipeline_mode = #tpu.pipeline_mode<synchronous>, transform_indices = @transform_7, window_bounds = array<i64: 256, 128>}, {pipeline_mode = #tpu.pipeline_mode<synchronous>, transform_indices = @transform_8, window_bounds = array<i64: 1, 128>}, {pipeline_mode = #tpu.pipeline_mode<synchronous>, transform_indices = @transform_9, window_bounds = array<i64: 128, 128>}, {pipeline_mode = #tpu.pipeline_mode<synchronous>, transform_indices = @transform_10, window_bounds = array<i64: 1, 128>}, {pipeline_mode = #tpu.pipeline_mode<synchronous>, transform_indices = @transform_11, window_bounds = array<i64: 128, 128>}, {pipeline_mode = #tpu.pipeline_mode<synchronous>, transform_indices = @transform_12, window_bounds = array<i64: 1, 128>}, {transform_indices = @transform_13, window_bounds = array<i64: 16, 128>}]} {
    %c0 = arith.constant 0 : index
    %c0_0 = arith.constant 0 : index
    %0 = vector.load %arg1[%c0, %c0_0] : memref<384x140xf32, #tpu.memory_space<vmem>>, vector<384x140xf32>
    %c0_1 = arith.constant 0 : index
    %c0_2 = arith.constant 0 : index
    %1 = vector.load %arg2[%c0_1, %c0_2] : memref<140x256xf32, #tpu.memory_space<vmem>>, vector<140x256xf32>
    %cst = arith.constant dense<0.000000e+00> : vector<384x256xf32>
    %2 = tpu.matmul %0, %1, %cst {dimension_numbers = #tpu.dot_dimension_numbers<[1], [0], [0], [1], [0, 0, 1, 1], [], []>} : vector<384x140xf32>, vector<140x256xf32>, vector<384x256xf32> -> vector<384x256xf32>
    %c0_3 = arith.constant 0 : index
    %c0_4 = arith.constant 0 : index
    %3 = vector.load %arg3[%c0_3, %c0_4] : memref<1x256xf32, #tpu.memory_space<vmem>>, vector<1x256xf32>
    %4 = vector.broadcast %3 : vector<1x256xf32> to vector<384x256xf32>
    %5 = arith.addf %2, %4 : vector<384x256xf32>
    %6 = vector.extract_strided_slice %5 {offsets = [0, 0], sizes = [384, 72], strides = [1, 1]} : vector<384x256xf32> to vector<384x72xf32>
    %7 = vector.extract_strided_slice %5 {offsets = [0, 128], sizes = [384, 72], strides = [1, 1]} : vector<384x256xf32> to vector<384x72xf32>
    %8 = arith.maximumf %6, %7 : vector<384x72xf32>
    %c0_5 = arith.constant 0 : index
    %c0_6 = arith.constant 0 : index
    %9 = vector.load %arg4[%c0_5, %c0_6] : memref<1280x384xf32, #tpu.memory_space<vmem>>, vector<1280x384xf32>
    %cst_7 = arith.constant dense<0.000000e+00> : vector<1280x72xf32>
    %10 = tpu.matmul %9, %8, %cst_7 {dimension_numbers = #tpu.dot_dimension_numbers<[1], [0], [0], [1], [0, 0, 1, 1], [], []>} : vector<1280x384xf32>, vector<384x72xf32>, vector<1280x72xf32> -> vector<1280x72xf32>
    %11 = vector.extract_strided_slice %10 {offsets = [0, 0], sizes = [640, 72], strides = [1, 1]} : vector<1280x72xf32> to vector<640x72xf32>
    %12 = vector.extract_strided_slice %10 {offsets = [640, 0], sizes = [640, 72], strides = [1, 1]} : vector<1280x72xf32> to vector<640x72xf32>
    %13 = arith.maximumf %11, %12 : vector<640x72xf32>
    %cst_8 = arith.constant 0.000000e+00 : f32
    %14 = vector.broadcast %cst_8 : f32 to vector<640x72xf32>
    %15 = arith.maximumf %13, %14 : vector<640x72xf32>
    %c0_9 = arith.constant 0 : index
    %c0_10 = arith.constant 0 : index
    %16 = vector.load %arg6[%c0_9, %c0_10] : memref<1x256xf32, #tpu.memory_space<vmem>>, vector<1x256xf32>
    %17 = vector.extract_strided_slice %15 {offsets = [0, 0], sizes = [128, 72], strides = [1, 1]} : vector<640x72xf32> to vector<128x72xf32>
    %c0_11 = arith.constant 0 : index
    %c0_12 = arith.constant 0 : index
    %c0_13 = arith.constant 0 : index
    %18 = vector.load %arg5[%c0_11, %c0_12, %c0_13] : memref<5x72x256xf32, #tpu.memory_space<vmem>>, vector<1x72x256xf32>
    %19 = vector.shape_cast %18 : vector<1x72x256xf32> to vector<72x256xf32>
    %cst_14 = arith.constant dense<0.000000e+00> : vector<128x256xf32>
    %20 = tpu.matmul %17, %19, %cst_14 {dimension_numbers = #tpu.dot_dimension_numbers<[1], [0], [0], [1], [0, 0, 1, 1], [], []>} : vector<128x72xf32>, vector<72x256xf32>, vector<128x256xf32> -> vector<128x256xf32>
    %21 = vector.broadcast %16 : vector<1x256xf32> to vector<128x256xf32>
    %22 = arith.addf %21, %20 : vector<128x256xf32>
    %23 = vector.extract_strided_slice %15 {offsets = [128, 0], sizes = [128, 72], strides = [1, 1]} : vector<640x72xf32> to vector<128x72xf32>
    %c1 = arith.constant 1 : index
    %c0_15 = arith.constant 0 : index
    %c0_16 = arith.constant 0 : index
    %24 = vector.load %arg5[%c1, %c0_15, %c0_16] : memref<5x72x256xf32, #tpu.memory_space<vmem>>, vector<1x72x256xf32>
    %25 = vector.shape_cast %24 : vector<1x72x256xf32> to vector<72x256xf32>
    %cst_17 = arith.constant dense<0.000000e+00> : vector<128x256xf32>
    %26 = tpu.matmul %23, %25, %cst_17 {dimension_numbers = #tpu.dot_dimension_numbers<[1], [0], [0], [1], [0, 0, 1, 1], [], []>} : vector<128x72xf32>, vector<72x256xf32>, vector<128x256xf32> -> vector<128x256xf32>
    %27 = arith.addf %22, %26 : vector<128x256xf32>
    %28 = vector.extract_strided_slice %15 {offsets = [256, 0], sizes = [128, 72], strides = [1, 1]} : vector<640x72xf32> to vector<128x72xf32>
    %c2 = arith.constant 2 : index
    %c0_18 = arith.constant 0 : index
    %c0_19 = arith.constant 0 : index
    %29 = vector.load %arg5[%c2, %c0_18, %c0_19] : memref<5x72x256xf32, #tpu.memory_space<vmem>>, vector<1x72x256xf32>
    %30 = vector.shape_cast %29 : vector<1x72x256xf32> to vector<72x256xf32>
    %cst_20 = arith.constant dense<0.000000e+00> : vector<128x256xf32>
    %31 = tpu.matmul %28, %30, %cst_20 {dimension_numbers = #tpu.dot_dimension_numbers<[1], [0], [0], [1], [0, 0, 1, 1], [], []>} : vector<128x72xf32>, vector<72x256xf32>, vector<128x256xf32> -> vector<128x256xf32>
    %32 = arith.addf %27, %31 : vector<128x256xf32>
    %33 = vector.extract_strided_slice %15 {offsets = [384, 0], sizes = [128, 72], strides = [1, 1]} : vector<640x72xf32> to vector<128x72xf32>
    %c3 = arith.constant 3 : index
    %c0_21 = arith.constant 0 : index
    %c0_22 = arith.constant 0 : index
    %34 = vector.load %arg5[%c3, %c0_21, %c0_22] : memref<5x72x256xf32, #tpu.memory_space<vmem>>, vector<1x72x256xf32>
    %35 = vector.shape_cast %34 : vector<1x72x256xf32> to vector<72x256xf32>
    %cst_23 = arith.constant dense<0.000000e+00> : vector<128x256xf32>
    %36 = tpu.matmul %33, %35, %cst_23 {dimension_numbers = #tpu.dot_dimension_numbers<[1], [0], [0], [1], [0, 0, 1, 1], [], []>} : vector<128x72xf32>, vector<72x256xf32>, vector<128x256xf32> -> vector<128x256xf32>
    %37 = arith.addf %32, %36 : vector<128x256xf32>
    %38 = vector.extract_strided_slice %15 {offsets = [512, 0], sizes = [128, 72], strides = [1, 1]} : vector<640x72xf32> to vector<128x72xf32>
    %c4 = arith.constant 4 : index
    %c0_24 = arith.constant 0 : index
    %c0_25 = arith.constant 0 : index
    %39 = vector.load %arg5[%c4, %c0_24, %c0_25] : memref<5x72x256xf32, #tpu.memory_space<vmem>>, vector<1x72x256xf32>
    %40 = vector.shape_cast %39 : vector<1x72x256xf32> to vector<72x256xf32>
    %cst_26 = arith.constant dense<0.000000e+00> : vector<128x256xf32>
    %41 = tpu.matmul %38, %40, %cst_26 {dimension_numbers = #tpu.dot_dimension_numbers<[1], [0], [0], [1], [0, 0, 1, 1], [], []>} : vector<128x72xf32>, vector<72x256xf32>, vector<128x256xf32> -> vector<128x256xf32>
    %42 = arith.addf %37, %41 : vector<128x256xf32>
    %43 = vector.extract_strided_slice %42 {offsets = [0, 0], sizes = [128, 64], strides = [1, 1]} : vector<128x256xf32> to vector<128x64xf32>
    %44 = vector.extract_strided_slice %42 {offsets = [0, 128], sizes = [128, 64], strides = [1, 1]} : vector<128x256xf32> to vector<128x64xf32>
    %45 = arith.maximumf %43, %44 : vector<128x64xf32>
    %c0_27 = arith.constant 0 : index
    %c0_28 = arith.constant 0 : index
    %46 = vector.load %arg7[%c0_27, %c0_28] : memref<128x128xf32, #tpu.memory_space<vmem>>, vector<128x128xf32>
    %cst_29 = arith.constant dense<0.000000e+00> : vector<128x64xf32>
    %47 = tpu.matmul %46, %45, %cst_29 {dimension_numbers = #tpu.dot_dimension_numbers<[1], [0], [0], [1], [0, 0, 1, 1], [], []>} : vector<128x128xf32>, vector<128x64xf32>, vector<128x64xf32> -> vector<128x64xf32>
    %48 = vector.extract_strided_slice %47 {offsets = [0, 0], sizes = [64, 64], strides = [1, 1]} : vector<128x64xf32> to vector<64x64xf32>
    %49 = vector.extract_strided_slice %47 {offsets = [64, 0], sizes = [64, 64], strides = [1, 1]} : vector<128x64xf32> to vector<64x64xf32>
    %50 = arith.maximumf %48, %49 : vector<64x64xf32>
    %cst_30 = arith.constant 0.000000e+00 : f32
    %51 = vector.broadcast %cst_30 : f32 to vector<64x64xf32>
    %52 = arith.maximumf %50, %51 : vector<64x64xf32>
    %c0_31 = arith.constant 0 : index
    %c0_32 = arith.constant 0 : index
    %53 = vector.load %arg8[%c0_31, %c0_32] : memref<256x128xf32, #tpu.memory_space<vmem>>, vector<256x128xf32>
    %c0_33 = arith.constant 0 : index
    %c0_34 = arith.constant 0 : index
    %54 = vector.load %arg9[%c0_33, %c0_34] : memref<1x128xf32, #tpu.memory_space<vmem>>, vector<1x128xf32>
    %55 = vector.extract_strided_slice %52 {offsets = [0, 0], sizes = [16, 64], strides = [1, 1]} : vector<64x64xf32> to vector<16x64xf32>
    %56 = vector.extract_strided_slice %53 {offsets = [0, 0], sizes = [64, 128], strides = [1, 1]} : vector<256x128xf32> to vector<64x128xf32>
    %cst_35 = arith.constant dense<0.000000e+00> : vector<16x128xf32>
    %57 = tpu.matmul %55, %56, %cst_35 {dimension_numbers = #tpu.dot_dimension_numbers<[1], [0], [0], [1], [0, 0, 1, 1], [], []>} : vector<16x64xf32>, vector<64x128xf32>, vector<16x128xf32> -> vector<16x128xf32>
    %58 = vector.broadcast %54 : vector<1x128xf32> to vector<16x128xf32>
    %59 = arith.addf %58, %57 : vector<16x128xf32>
    %60 = vector.extract_strided_slice %52 {offsets = [16, 0], sizes = [16, 64], strides = [1, 1]} : vector<64x64xf32> to vector<16x64xf32>
    %61 = vector.extract_strided_slice %53 {offsets = [64, 0], sizes = [64, 128], strides = [1, 1]} : vector<256x128xf32> to vector<64x128xf32>
    %cst_36 = arith.constant dense<0.000000e+00> : vector<16x128xf32>
    %62 = tpu.matmul %60, %61, %cst_36 {dimension_numbers = #tpu.dot_dimension_numbers<[1], [0], [0], [1], [0, 0, 1, 1], [], []>} : vector<16x64xf32>, vector<64x128xf32>, vector<16x128xf32> -> vector<16x128xf32>
    %63 = arith.addf %59, %62 : vector<16x128xf32>
    %64 = vector.extract_strided_slice %52 {offsets = [32, 0], sizes = [16, 64], strides = [1, 1]} : vector<64x64xf32> to vector<16x64xf32>
    %65 = vector.extract_strided_slice %53 {offsets = [128, 0], sizes = [64, 128], strides = [1, 1]} : vector<256x128xf32> to vector<64x128xf32>
    %cst_37 = arith.constant dense<0.000000e+00> : vector<16x128xf32>
    %66 = tpu.matmul %64, %65, %cst_37 {dimension_numbers = #tpu.dot_dimension_numbers<[1], [0], [0], [1], [0, 0, 1, 1], [], []>} : vector<16x64xf32>, vector<64x128xf32>, vector<16x128xf32> -> vector<16x128xf32>
    %67 = arith.addf %63, %66 : vector<16x128xf32>
    %68 = vector.extract_strided_slice %52 {offsets = [48, 0], sizes = [16, 64], strides = [1, 1]} : vector<64x64xf32> to vector<16x64xf32>
    %69 = vector.extract_strided_slice %53 {offsets = [192, 0], sizes = [64, 128], strides = [1, 1]} : vector<256x128xf32> to vector<64x128xf32>
    %cst_38 = arith.constant dense<0.000000e+00> : vector<16x128xf32>
    %70 = tpu.matmul %68, %69, %cst_38 {dimension_numbers = #tpu.dot_dimension_numbers<[1], [0], [0], [1], [0, 0, 1, 1], [], []>} : vector<16x64xf32>, vector<64x128xf32>, vector<16x128xf32> -> vector<16x128xf32>
    %71 = arith.addf %67, %70 : vector<16x128xf32>
    %cst_39 = arith.constant 0.000000e+00 : f32
    %72 = vector.broadcast %cst_39 : f32 to vector<16x128xf32>
    %73 = arith.maximumf %71, %72 : vector<16x128xf32>
    %c0_40 = arith.constant 0 : index
    %c0_41 = arith.constant 0 : index
    %74 = vector.load %arg10[%c0_40, %c0_41] : memref<128x128xf32, #tpu.memory_space<vmem>>, vector<128x128xf32>
    %cst_42 = arith.constant dense<0.000000e+00> : vector<16x128xf32>
    %75 = tpu.matmul %73, %74, %cst_42 {dimension_numbers = #tpu.dot_dimension_numbers<[1], [0], [0], [1], [0, 0, 1, 1], [], []>} : vector<16x128xf32>, vector<128x128xf32>, vector<16x128xf32> -> vector<16x128xf32>
    %c0_43 = arith.constant 0 : index
    %c0_44 = arith.constant 0 : index
    %76 = vector.load %arg11[%c0_43, %c0_44] : memref<1x128xf32, #tpu.memory_space<vmem>>, vector<1x128xf32>
    %77 = vector.broadcast %76 : vector<1x128xf32> to vector<16x128xf32>
    %78 = arith.addf %75, %77 : vector<16x128xf32>
    %cst_45 = arith.constant 0.000000e+00 : f32
    %79 = vector.broadcast %cst_45 : f32 to vector<16x128xf32>
    %80 = arith.maximumf %78, %79 : vector<16x128xf32>
    %c0_46 = arith.constant 0 : index
    %c0_47 = arith.constant 0 : index
    %81 = vector.load %arg12[%c0_46, %c0_47] : memref<128x128xf32, #tpu.memory_space<vmem>>, vector<128x128xf32>
    %cst_48 = arith.constant dense<0.000000e+00> : vector<16x128xf32>
    %82 = tpu.matmul %80, %81, %cst_48 {dimension_numbers = #tpu.dot_dimension_numbers<[1], [0], [0], [1], [0, 0, 1, 1], [], []>} : vector<16x128xf32>, vector<128x128xf32>, vector<16x128xf32> -> vector<16x128xf32>
    %c0_49 = arith.constant 0 : index
    %c0_50 = arith.constant 0 : index
    %83 = vector.load %arg13[%c0_49, %c0_50] : memref<1x128xf32, #tpu.memory_space<vmem>>, vector<1x128xf32>
    %84 = vector.broadcast %83 : vector<1x128xf32> to vector<16x128xf32>
    %85 = arith.addf %82, %84 : vector<16x128xf32>
    %cst_51 = arith.constant dense<0xFF800000> : vector<16xf32>
    %86 = vector.multi_reduction <maximumf>, %85, %cst_51 [1] : vector<16x128xf32> to vector<16xf32>
    %87 = vector.shape_cast %86 : vector<16xf32> to vector<16x1xf32>
    %88 = vector.broadcast %87 : vector<16x1xf32> to vector<16x128xf32>
    %89 = arith.subf %85, %88 : vector<16x128xf32>
    %90 = math.exp %89 : vector<16x128xf32>
    %cst_52 = arith.constant dense<0.000000e+00> : vector<16xf32>
    %91 = vector.multi_reduction <add>, %90, %cst_52 [1] : vector<16x128xf32> to vector<16xf32>
    %92 = vector.shape_cast %91 : vector<16xf32> to vector<16x1xf32>
    %93 = math.log %92 : vector<16x1xf32>
    %94 = arith.addf %93, %87 : vector<16x1xf32>
    %95 = vector.broadcast %94 : vector<16x1xf32> to vector<16x128xf32>
    %96 = arith.subf %85, %95 : vector<16x128xf32>
    %c0_53 = arith.constant 0 : index
    %c0_54 = arith.constant 0 : index
    %97 = vector.load %arg14[%c0_53, %c0_54] : memref<16x128xf32, #tpu.memory_space<vmem>>, vector<16x128xf32>
    tpu.vector_store %arg14[%c0_53, %c0_54], %96 {strides = array<i32>} : memref<16x128xf32, #tpu.memory_space<vmem>>, vector<16x128xf32>,
    return
  }
  func.func @transform_0(%arg0: i32) -> (i32, i32) {
    %c0_i32 = arith.constant 0 : i32
    %c0_i32_0 = arith.constant 0 : i32
    return %arg0, %c0_i32 : i32, i32
  }
  func.func @transform_1(%arg0: i32) -> (i32, i32) {
    %c0_i32 = arith.constant 0 : i32
    %c0_i32_0 = arith.constant 0 : i32
    %c0_i32_1 = arith.constant 0 : i32
    return %c0_i32, %c0_i32_0 : i32, i32
  }
  func.func @transform_2(%arg0: i32) -> (i32, i32) {
    %c0_i32 = arith.constant 0 : i32
    %c0_i32_0 = arith.constant 0 : i32
    %c0_i32_1 = arith.constant 0 : i32
    return %c0_i32, %c0_i32_0 : i32, i32
  }
  func.func @transform_3(%arg0: i32) -> (i32, i32) {
    %c0_i32 = arith.constant 0 : i32
    %c0_i32_0 = arith.constant 0 : i32
    %c0_i32_1 = arith.constant 0 : i32
    return %c0_i32, %c0_i32_0 : i32, i32
  }
  func.func @transform_4(%arg0: i32) -> (i32, i32, i32) {
    %c0_i32 = arith.constant 0 : i32
    %c0_i32_0 = arith.constant 0 : i32
    %c0_i32_1 = arith.constant 0 : i32
    %c0_i32_2 = arith.constant 0 : i32
    return %c0_i32, %c0_i32_0, %c0_i32_1 : i32, i32, i32
  }
  func.func @transform_5(%arg0: i32) -> (i32, i32) {
    %c0_i32 = arith.constant 0 : i32
    %c0_i32_0 = arith.constant 0 : i32
    %c0_i32_1 = arith.constant 0 : i32
    return %c0_i32, %c0_i32_0 : i32, i32
  }
  func.func @transform_6(%arg0: i32) -> (i32, i32) {
    %c0_i32 = arith.constant 0 : i32
    %c0_i32_0 = arith.constant 0 : i32
    %c0_i32_1 = arith.constant 0 : i32
    return %c0_i32, %c0_i32_0 : i32, i32
  }
  func.func @transform_7(%arg0: i32) -> (i32, i32) {
    %c0_i32 = arith.constant 0 : i32
    %c0_i32_0 = arith.constant 0 : i32
    %c0_i32_1 = arith.constant 0 : i32
    return %c0_i32, %c0_i32_0 : i32, i32
  }
  func.func @transform_8(%arg0: i32) -> (i32, i32) {
    %c0_i32 = arith.constant 0 : i32
    %c0_i32_0 = arith.constant 0 : i32
    %c0_i32_1 = arith.constant 0 : i32
    return %c0_i32, %c0_i32_0 : i32, i32
  }
  func.func @transform_9(%arg0: i32) -> (i32, i32) {
    %c0_i32 = arith.constant 0 : i32
    %c0_i32_0 = arith.constant 0 : i32
    %c0_i32_1 = arith.constant 0 : i32
    return %c0_i32, %c0_i32_0 : i32, i32
  }
  func.func @transform_10(%arg0: i32) -> (i32, i32) {
    %c0_i32 = arith.constant 0 : i32
    %c0_i32_0 = arith.constant 0 : i32
    %c0_i32_1 = arith.constant 0 : i32
    return %c0_i32, %c0_i32_0 : i32, i32
  }
  func.func @transform_11(%arg0: i32) -> (i32, i32) {
    %c0_i32 = arith.constant 0 : i32
    %c0_i32_0 = arith.constant 0 : i32
    %c0_i32_1 = arith.constant 0 : i32
    return %c0_i32, %c0_i32_0 : i32, i32
  }
  func.func @transform_12(%arg0: i32) -> (i32, i32) {
    %c0_i32 = arith.constant 0 : i32
    %c0_i32_0 = arith.constant 0 : i32
    %c0_i32_1 = arith.constant 0 : i32
    return %c0_i32, %c0_i32_0 : i32, i32
  }
  func.func @transform_13(%arg0: i32) -> (i32, i32) {
    %c0_i32 = arith.constant 0 : i32
    %c0_i32_0 = arith.constant 0 : i32
    return %arg0, %c0_i32 : i32, i32
  }
}

</mosaic_0001>

<bundles_post_ra>
// kernel: softmax_model_forward.1
= control target key start
LH: loop header
LB: loop body
LE: loop exit
PB: predicated region body
PF: predicated region fallthrough
CT: control target
= control target key end

     0   :  { %s7280_s25 = smov 0   ;;  %s10524_s0 = inlined_call_operand.vmem [shape: f32[768,140], index: 0, kind: input, shape index: {}]   ;;  %s10525_s1 = inlined_call_operand.vmem [shape: f32[140,256], index: 1, kind: input, shape index: {}]   ;;  %s10526_s2 = inlined_call_operand.vmem [shape: f32[1,256], index: 2, kind: input, shape index: {}]   ;;  %s10527_s3 = inlined_call_operand.vmem [shape: f32[1280,384], index: 3, kind: input, shape index: {}]   ;;  %s10528_s4 = inlined_call_operand.vmem [shape: f32[5,72,256], index: 4, kind: input, shape index: {}]   ;;  %s10529_s5 = inlined_call_operand.vmem [shape: f32[1,256], index: 5, kind: input, shape index: {}]   ;;  %s10530_s6 = inlined_call_operand.vmem [shape: f32[128,128], index: 6, kind: input, shape index: {}]   ;;  %s10531_s7 = inlined_call_operand.vmem [shape: f32[256,128], index: 7, kind: input, shape index: {}]   ;;  %s10532_s8 = inlined_call_operand.vmem [shape: f32[1,128], index: 8, kind: input, shape index: {}]   ;;  %s10533_s9 = inlined_call_operand.vmem [shape: f32[128,128], index: 9, kind: input, shape index: {}]   ;;  %s10534_s10 = inlined_call_operand.vmem [shape: f32[1,128], index: 10, kind: input, shape index: {}]   ;;  %s10535_s11 = inlined_call_operand.vmem [shape: f32[128,128], index: 11, kind: input, shape index: {}]   ;;  %s10536_s12 = inlined_call_operand.vmem [shape: f32[1,128], index: 12, kind: input, shape index: {}]   ;;  %s10537_s13 = inlined_call_operand.vmem [shape: f32[32,128], index: 13, kind: output, shape index: {}]  }
   0x1 LB: > { %s5671_s26 = sadd.s32 4294967295, %s7205_s25   ;;  %p5675_p0 = scmp.ge.s32.totalorder %s7205_s25, 1  ;;  %s7205_s25 = sphi %s7280_s25, %s23_s25  }
   0x2   : > { %p389_p1 = scmp.lt.s32.totalorder %s7205_s25, 3 }
   0x4   : > { %p390_p2 = pnand %p5675_p0, %p389_p1 }
   0x6   : > { %393 = sbr.rel (%p390_p2) target bundleno = 2729 (0xaa9), region = 72 }
   0xd   : > { %v544_v0 = vld [vmem:[%s10525_s1 + $0x8] sm:$0xff]  ;;  %v546_v1 = vld [vmem:[%s10525_s1 + $0x18] sm:$0xff]  ;;  %v543_v2 = vld [vmem:[%s10525_s1] sm:$0xff]  ;;  %s434_s16 = smul.u32 48, %s5671_s26  ;;  %vm591_vm0 = vcmask 97280   ;;  %vm736_vm1 = vcmask 1043456  }
   0xe   : > { %v6654_v3 = vpack.c.bf16 %v546_v1, %v544_v0  ;;  %v545_v4 = vld [vmem:[%s10525_s1 + $0x10] sm:$0xff]  ;;  %v548_v5 = vld [vmem:[%s10525_s1 + $0x28] sm:$0xff]  ;;  %v550_v6 = vld [vmem:[%s10525_s1 + $0x38] sm:$0xff]  ;;  %vm7207_vm2 = vmmov 1   ;;  %vm3533_vm4 = vcmask 588800   ;;  %vm5052_vm5 = vcmask 523264  }
   0xf   : > { %v6656_v7 = vpack.c.bf16 %v545_v4, %v543_v2  ;;  %v6658_v8 = vpack.c.bf16 %v550_v6, %v548_v5  ;;  %v547_v9 = vld [vmem:[%s10525_s1 + $0x20] sm:$0xff]  ;;  %v549_v10 = vld [vmem:[%s10525_s1 + $0x30] sm:$0xff]  ;;  %v552_v11 = vld [vmem:[%s10525_s1 + $0x48] sm:$0xff]  ;;  %p435_p3 = scmp.lt.s32.totalorder %s434_s16, 95 }
  0x10   : > { %6655 = vmatprep.subr.bf16.mxu0 %v6654_v3  ;;  %v554_v12 = vld [vmem:[%s10525_s1 + $0x58] sm:$0xff]  ;;  %v6660_v13 = vpack.c.bf16 %v549_v10, %v547_v9  ;;  %v551_v15 = vld [vmem:[%s10525_s1 + $0x40] sm:$0xff]  ;;  %v553_v16 = vld [vmem:[%s10525_s1 + $0x50] sm:$0xff] }
  0x11   : > { %6657 = vmatpush1.bf16.msra.mxu0 %v6656_v7  ;;  %s10692_s16 = smov (!%p435_p3, %s434_s16), 95  ;;  %v6662_v14 = vpack.c.bf16 %v554_v12, %v552_v11  ;;  %v556_v17 = vld [vmem:[%s10525_s1 + $0x68] sm:$0xff]  ;;  %v558_v18 = vld [vmem:[%s10525_s1 + $0x78] sm:$0xff]  ;;  %v6664_v19 = vpack.c.bf16 %v553_v16, %v551_v15  ;;  %v555_v21 = vld [vmem:[%s10525_s1 + $0x60] sm:$0xff] }
  0x12   : > { %6659 = vmatprep.subr.bf16.mxu0 %v6658_v8  ;;  %s5895_s27 = sshll.u32 %s10692_s16, 4  ;;  %v6666_v20 = vpack.c.bf16 %v558_v18, %v556_v17  ;;  %v557_v22 = vld [vmem:[%s10525_s1 + $0x70] sm:$0xff]  ;;  %v560_v23 = vld [vmem:[%s10525_s1 + $0x88] sm:$0xff]  ;;  %v562_v24 = vld [vmem:[%s10525_s1 + $0x98] sm:$0xff]  ;;  %s5678_s16 = sshll.u32 %s5671_s26, 1 }
  0x13   : > { %s7341_s18 = scalar_lea.vmem %s10524_s0, %s5895_s27  ;;  %v6668_v25 = vpack.c.bf16 %v557_v22, %v555_v21  ;;  %v6670_v27 = vpack.c.bf16 %v562_v24, %v560_v23  ;;  %v559_v28 = vld [vmem:[%s10525_s1 + $0x80] sm:$0xff]  ;;  %v561_v29 = vld [vmem:[%s10525_s1 + $0x90] sm:$0xff]  ;;  %v564_v30 = vld [vmem:[%s10525_s1 + $0xa8] sm:$0xff]  ;;  %p442_p4 = scmp.lt.s32.totalorder %s5678_s16, 3 }
  0x14   : > { %v448_v26 = vld [vmem:[%s7341_s18 + $0x8] sm:$0xff]  ;;  %v566_v31 = vld [vmem:[%s10525_s1 + $0xb8] sm:$0xff]  ;;  %v6672_v32 = vpack.c.bf16 %v561_v29, %v559_v28  ;;  %v563_v34 = vld [vmem:[%s10525_s1 + $0xa0] sm:$0xff] }
  0x15   : > { %6661 = vmatpush1.bf16.msra.mxu0 %v6660_v13  ;;  %5682 = vmatprep.mubr.msk.f32.mxu0 %vm591_vm0, %v448_v26  ;;  %v6674_v33 = vpack.c.bf16 %v566_v31, %v564_v30  ;;  %v565_v35 = vld [vmem:[%s10525_s1 + $0xb0] sm:$0xff]  ;;  %v568_v36 = vld [vmem:[%s10525_s1 + $0xc8] sm:$0xff]  ;;  %v570_v37 = vld [vmem:[%s10525_s1 + $0xd8] sm:$0xff]  ;;  %s10694_s16 = smov (!%p442_p4, %s5678_s16), 3 }
  0x16   : > { %6663 = vmatprep.subr.bf16.mxu0 %v6662_v14  ;;  %v6676_v38 = vpack.c.bf16 %v565_v35, %v563_v34  ;;  %v6678_v39 = vpack.c.bf16 %v570_v37, %v568_v36  ;;  %v567_v40 = vld [vmem:[%s10525_s1 + $0xc0] sm:$0xff]  ;;  %v569_v41 = vld [vmem:[%s10525_s1 + $0xd0] sm:$0xff]  ;;  %v572_v42 = vld [vmem:[%s10525_s1 + $0xe8] sm:$0xff]  ;;  %s5679_s21 = sshll.u32 %s10694_s16, 3 }
  0x17   : > { %v574_v43 = vld [vmem:[%s10525_s1 + $0xf8] sm:$0xff]  ;;  %v6680_v44 = vpack.c.bf16 %v569_v41, %v567_v40  ;;  %v571_v46 = vld [vmem:[%s10525_s1 + $0xe0] sm:$0xff]  ;;  %v573_v47 = vld [vmem:[%s10525_s1 + $0xf0] sm:$0xff]  ;;  %v7208_v40 = vmov 0.0|0.0   ;;  %s445_s24 = scalar_lea.vmem %s10537_s13, %s5679_s21 }
  0x18   : > { %v6682_v45 = vpack.c.bf16 %v574_v43, %v572_v42  ;;  %v576_v48 = vld [vmem:[%s10525_s1 + $0x108] sm:$0xff]  ;;  %v578_v49 = vld [vmem:[%s10525_s1 + $0x118] sm:$0xf]  ;;  %v6684_v50 = vpack.c.bf16 %v573_v47, %v571_v46  ;;  %v575_v52 = vld [vmem:[%s10525_s1 + $0x100] sm:$0xff]  ;;  %6692 = vmatprep.subr.bf16.mxu1 %v7208_v40 }
  0x19   : > { %6665 = vmatpush1.bf16.msra.mxu0 %v6664_v19  ;;  %v6686_v51 = vpack.c.bf16 %v578_v49, %v576_v48  ;;  %v577_v53 = vld [vmem:[%s10525_s1 + $0x110] sm:$0xf]  ;;  %vm6687_vm3 = vmpackc.low %vm736_vm1, %vm7207_vm2  ;;  %v447_v55 = vld [vmem:[%s7341_s18] sm:$0xff] }
  0x1a   : > { %6667 = vmatprep.subr.bf16.mxu0 %v6666_v20  ;;  %v6689_v54 = vpack.c.bf16 %v577_v53, %v575_v52  ;;  %v450_v56 = vld [vmem:[%s7341_s18 + $0x18] sm:$0xff]  ;;  %v449_v57 = vld [vmem:[%s7341_s18 + $0x10] sm:$0xff]  ;;  %v452_v58 = vld [vmem:[%s7341_s18 + $0x28] sm:$0xff] }
  0x1b   : > { %v451_v59 = vld [vmem:[%s7341_s18 + $0x20] sm:$0xff]  ;;  %v454_v60 = vld [vmem:[%s7341_s18 + $0x38] sm:$0xff]  ;;  %v453_v61 = vld [vmem:[%s7341_s18 + $0x30] sm:$0xff] }
  0x1c   : > { %v456_v62 = vld [vmem:[%s7341_s18 + $0x48] sm:$0xff]  ;;  %v455_v63 = vld [vmem:[%s7341_s18 + $0x40] sm:$0xff]  ;;  %v458_v0 = vld [vmem:[%s7341_s18 + $0x58] sm:$0xff] }
  0x1d   : > { %6669 = vmatpush1.bf16.msra.mxu0 %v6668_v25  ;;  %v457_v1 = vld [vmem:[%s7341_s18 + $0x50] sm:$0xff]  ;;  %v460_v2 = vld [vmem:[%s7341_s18 + $0x68] sm:$0xff]  ;;  %v459_v3 = vld [vmem:[%s7341_s18 + $0x60] sm:$0xff] }
  0x1e   : > { %6671 = vmatprep.subr.bf16.mxu0 %v6670_v27  ;;  %v462_v4 = vld [vmem:[%s7341_s18 + $0x78] sm:$0xff]  ;;  %v461_v5 = vld [vmem:[%s7341_s18 + $0x70] sm:$0xff]  ;;  %v464_v6 = vld [vmem:[%s7341_s18 + $0x88] sm:$0xff] }
  0x1f   : > { %v463_v7 = vld [vmem:[%s7341_s18 + $0x80] sm:$0xff]  ;;  %v466_v8 = vld [vmem:[%s7341_s18 + $0x98] sm:$0xff]  ;;  %v465_v9 = vld [vmem:[%s7341_s18 + $0x90] sm:$0xff] }
  0x20   : > { %v468_v10 = vld [vmem:[%s7341_s18 + $0xa8] sm:$0xff]  ;;  %v467_v11 = vld [vmem:[%s7341_s18 + $0xa0] sm:$0xff]  ;;  %v470_v12 = vld [vmem:[%s7341_s18 + $0xb8] sm:$0xff] }
  0x21   : > { %6673 = vmatpush1.bf16.msra.mxu0 %v6672_v32  ;;  %v469_v13 = vld [vmem:[%s7341_s18 + $0xb0] sm:$0xff]  ;;  %v472_v14 = vld [vmem:[%s7341_s18 + $0xc8] sm:$0xff]  ;;  %v471_v15 = vld [vmem:[%s7341_s18 + $0xc0] sm:$0xff] }
  0x22   : > { %6675 = vmatprep.subr.bf16.mxu0 %v6674_v33  ;;  %v474_v16 = vld [vmem:[%s7341_s18 + $0xd8] sm:$0xff]  ;;  %v473_v17 = vld [vmem:[%s7341_s18 + $0xd0] sm:$0xff]  ;;  %v476_v18 = vld [vmem:[%s7341_s18 + $0xe8] sm:$0xff] }
  0x23   : > { %v475_v19 = vld [vmem:[%s7341_s18 + $0xe0] sm:$0xff]  ;;  %v478_v20 = vld [vmem:[%s7341_s18 + $0xf8] sm:$0xff]  ;;  %v477_v21 = vld [vmem:[%s7341_s18 + $0xf0] sm:$0xff] }
  0x24   : > { %v480_v22 = vld [vmem:[%s7341_s18 + $0x108] sm:$0xff]  ;;  %v479_v23 = vld [vmem:[%s7341_s18 + $0x100] sm:$0xff]  ;;  %v482_v24 = vld [vmem:[%s7341_s18 + $0x118] sm:$0xff] }
  0x25   : > { %6677 = vmatpush1.bf16.msra.mxu0 %v6676_v38  ;;  %v481_v25 = vld [vmem:[%s7341_s18 + $0x110] sm:$0xff]  ;;  %v484_v26 = vld [vmem:[%s7341_s18 + $0x128] sm:$0xff]  ;;  %v483_v27 = vld [vmem:[%s7341_s18 + $0x120] sm:$0xff] }
  0x26   : > { %6679 = vmatprep.subr.bf16.mxu0 %v6678_v39  ;;  %v486_v28 = vld [vmem:[%s7341_s18 + $0x138] sm:$0xff]  ;;  %v485_v29 = vld [vmem:[%s7341_s18 + $0x130] sm:$0xff]  ;;  %v488_v30 = vld [vmem:[%s7341_s18 + $0x148] sm:$0xff] }
  0x27   : > { %v487_v31 = vld [vmem:[%s7341_s18 + $0x140] sm:$0xff]  ;;  %v490_v32 = vld [vmem:[%s7341_s18 + $0x158] sm:$0xff]  ;;  %v489_v33 = vld [vmem:[%s7341_s18 + $0x150] sm:$0xff] }
  0x28   : > { %v492_v34 = vld [vmem:[%s7341_s18 + $0x168] sm:$0xff]  ;;  %v491_v35 = vld [vmem:[%s7341_s18 + $0x160] sm:$0xff]  ;;  %v494_v36 = vld [vmem:[%s7341_s18 + $0x178] sm:$0xff] }
  0x29   : > { %6681 = vmatpush1.bf16.msra.mxu0 %v6680_v44  ;;  %v493_v37 = vld [vmem:[%s7341_s18 + $0x170] sm:$0xff]  ;;  %v496_v38 = vld [vmem:[%s7341_s18 + $0x188] sm:$0xff]  ;;  %v495_v39 = vld [vmem:[%s7341_s18 + $0x180] sm:$0xff] }
  0x2a   : > { %6683 = vmatprep.subr.bf16.mxu0 %v6682_v45  ;;  %v498_v41 = vld [vmem:[%s7341_s18 + $0x198] sm:$0xff]  ;;  %v497_v42 = vld [vmem:[%s7341_s18 + $0x190] sm:$0xff]  ;;  %v500_v43 = vld [vmem:[%s7341_s18 + $0x1a8] sm:$0xff] }
  0x2b   : > { %v499_v44 = vld [vmem:[%s7341_s18 + $0x1a0] sm:$0xff]  ;;  %v502_v45 = vld [vmem:[%s7341_s18 + $0x1b8] sm:$0xff]  ;;  %v501_v46 = vld [vmem:[%s7341_s18 + $0x1b0] sm:$0xff] }
  0x2c   : > { %v504_v47 = vld [vmem:[%s7341_s18 + $0x1c8] sm:$0xff]  ;;  %v503_v48 = vld [vmem:[%s7341_s18 + $0x1c0] sm:$0xff]  ;;  %v506_v49 = vld [vmem:[%s7341_s18 + $0x1d8] sm:$0xff] }
  0x2d   : > { %6685 = vmatpush1.bf16.msra.mxu0 %v6684_v50  ;;  %v505_v50 = vld [vmem:[%s7341_s18 + $0x1d0] sm:$0xff]  ;;  %v507_v52 = vld [vmem:[%s7341_s18 + $0x1e0] sm:$0xff]  ;;  %v510_v53 = vld [vmem:[%s7341_s18 + $0x1f8] sm:$0xff] }
  0x2e   : > { %6688 = vmatprep.subr.msk.bf16.mxu0 %vm6687_vm3, %v6686_v51  ;;  %v508_v51 = vld [vmem:[%s7341_s18 + $0x1e8] sm:$0xff] }
  0x31   : > { %6691 = vmatpush1.bf16.msk.msra.mxu0 %vm6687_vm3, %v6689_v54  ;;  %v509_v54 = vld [vmem:[%s7341_s18 + $0x1f0] sm:$0xff] }
  0x34   : > { %808 = vmatmul.mubr.f32.vlgmr.msra.gmra.mrb[0].mxu0 %v447_v55  ;;  %v512_v55 = vld [vmem:[%s7341_s18 + $0x208] sm:$0xff] }
  0x35   : > { %5683 = vmatprep.mubr.msk.f32.mxu0 %vm591_vm0, %v450_v56  ;;  %v511_v56 = vld [vmem:[%s7341_s18 + $0x200] sm:$0xff] }
  0x38   : > { %814 = vmatmul.mubr.f32.gmra.mrb[2].mxu0 %v449_v57  ;;  %v514_v57 = vld [vmem:[%s7341_s18 + $0x218] sm:$0xff] }
  0x39   : > { %5684 = vmatprep.mubr.msk.f32.mxu0 %vm591_vm0, %v452_v58  ;;  %v513_v58 = vld [vmem:[%s7341_s18 + $0x210] sm:$0xff] }
  0x3c   : > { %820 = vmatmul.mubr.f32.gmra.mrb[4].mxu0 %v451_v59  ;;  %v516_v59 = vld [vmem:[%s7341_s18 + $0x228] sm:$0xff] }
  0x3d   : > { %5685 = vmatprep.mubr.msk.f32.mxu0 %vm591_vm0, %v454_v60  ;;  %v515_v60 = vld [vmem:[%s7341_s18 + $0x220] sm:$0xff] }
  0x40   : > { %826 = vmatmul.mubr.f32.gmra.mrb[6].mxu0 %v453_v61  ;;  %v518_v61 = vld [vmem:[%s7341_s18 + $0x238] sm:$0xff] }
  0x41   : > { %5686 = vmatprep.mubr.msk.f32.mxu0 %vm591_vm0, %v456_v62  ;;  %v517_v62 = vld [vmem:[%s7341_s18 + $0x230] sm:$0xff] }
  0x44   : > { %832 = vmatmul.mubr.f32.gmra.mrb[8].mxu0 %v455_v63  ;;  %v520_v63 = vld [vmem:[%s7341_s18 + $0x248] sm:$0xff] }
  0x45   : > { %5687 = vmatprep.mubr.msk.f32.mxu0 %vm591_vm0, %v458_v0  ;;  %v519_v0 = vld [vmem:[%s7341_s18 + $0x240] sm:$0xff] }
  0x48   : > { %838 = vmatmul.mubr.f32.gmra.mrb[10].mxu0 %v457_v1  ;;  %v522_v1 = vld [vmem:[%s7341_s18 + $0x258] sm:$0xff] }
  0x49   : > { %5688 = vmatprep.mubr.msk.f32.mxu0 %vm591_vm0, %v460_v2  ;;  %v521_v2 = vld [vmem:[%s7341_s18 + $0x250] sm:$0xff] }
  0x4c   : > { %844 = vmatmul.mubr.f32.gmra.mrb[12].mxu0 %v459_v3  ;;  %v524_v3 = vld [vmem:[%s7341_s18 + $0x268] sm:$0xff] }
  0x4d   : > { %5689 = vmatprep.mubr.msk.f32.mxu0 %vm591_vm0, %v462_v4  ;;  %v523_v4 = vld [vmem:[%s7341_s18 + $0x260] sm:$0xff] }
  0x50   : > { %850 = vmatmul.mubr.f32.gmra.mrb[14].mxu0 %v461_v5  ;;  %v526_v5 = vld [vmem:[%s7341_s18 + $0x278] sm:$0xff] }
  0x51   : > { %5690 = vmatprep.mubr.msk.f32.mxu0 %vm591_vm0, %v464_v6  ;;  %v525_v6 = vld [vmem:[%s7341_s18 + $0x270] sm:$0xff] }
  0x54   : > { %856 = vmatmul.mubr.f32.gmra.mrb[16].mxu0 %v463_v7  ;;  %v528_v7 = vld [vmem:[%s7341_s18 + $0x288] sm:$0xff] }
  0x55   : > { %5691 = vmatprep.mubr.msk.f32.mxu0 %vm591_vm0, %v466_v8  ;;  %v527_v8 = vld [vmem:[%s7341_s18 + $0x280] sm:$0xff] }
  0x58   : > { %862 = vmatmul.mubr.f32.gmra.mrb[18].mxu0 %v465_v9  ;;  %v530_v9 = vld [vmem:[%s7341_s18 + $0x298] sm:$0xff] }
  0x59   : > { %5692 = vmatprep.mubr.msk.f32.mxu0 %vm591_vm0, %v468_v10  ;;  %v529_v10 = vld [vmem:[%s7341_s18 + $0x290] sm:$0xff] }
  0x5c   : > { %868 = vmatmul.mubr.f32.gmra.mrb[20].mxu0 %v467_v11  ;;  %v532_v11 = vld [vmem:[%s7341_s18 + $0x2a8] sm:$0xff] }
  0x5d   : > { %5693 = vmatprep.mubr.msk.f32.mxu0 %vm591_vm0, %v470_v12  ;;  %v531_v12 = vld [vmem:[%s7341_s18 + $0x2a0] sm:$0xff] }
  0x60   : > { %874 = vmatmul.mubr.f32.gmra.mrb[22].mxu0 %v469_v13  ;;  %v534_v13 = vld [vmem:[%s7341_s18 + $0x2b8] sm:$0xff] }
  0x61   : > { %5694 = vmatprep.mubr.msk.f32.mxu0 %vm591_vm0, %v472_v14  ;;  %v533_v14 = vld [vmem:[%s7341_s18 + $0x2b0] sm:$0xff] }
  0x64   : > { %880 = vmatmul.mubr.f32.gmra.mrb[24].mxu0 %v471_v15  ;;  %v536_v15 = vld [vmem:[%s7341_s18 + $0x2c8] sm:$0xff] }
  0x65   : > { %5695 = vmatprep.mubr.msk.f32.mxu0 %vm591_vm0, %v474_v16  ;;  %v535_v16 = vld [vmem:[%s7341_s18 + $0x2c0] sm:$0xff] }
  0x68   : > { %886 = vmatmul.mubr.f32.gmra.mrb[26].mxu0 %v473_v17  ;;  %v538_v17 = vld [vmem:[%s7341_s18 + $0x2d8] sm:$0xff] }
  0x69   : > { %5696 = vmatprep.mubr.msk.f32.mxu0 %vm591_vm0, %v476_v18  ;;  %v537_v18 = vld [vmem:[%s7341_s18 + $0x2d0] sm:$0xff] }
  0x6c   : > { %892 = vmatmul.mubr.f32.gmra.mrb[28].mxu0 %v475_v19  ;;  %v540_v19 = vld [vmem:[%s7341_s18 + $0x2e8] sm:$0xff] }
  0x6d   : > { %5697 = vmatprep.mubr.msk.f32.mxu0 %vm591_vm0, %v478_v20  ;;  %v539_v20 = vld [vmem:[%s7341_s18 + $0x2e0] sm:$0xff] }
  0x70   : > { %898 = vmatmul.mubr.f32.gmra.mrb[30].mxu0 %v477_v21  ;;  %v542_v21 = vld [vmem:[%s7341_s18 + $0x2f8] sm:$0xff] }
  0x71   : > { %5698 = vmatprep.mubr.msk.f32.mxu0 %vm591_vm0, %v480_v22  ;;  %v541_v22 = vld [vmem:[%s7341_s18 + $0x2f0] sm:$0xff] }
  0x74   : > { %904 = vmatmul.mubr.f32.gmra.mrb[32].mxu0 %v479_v23  ;;  %v581_v23 = vlaneseq }
  0x75   : > { %5699 = vmatprep.mubr.msk.f32.mxu0 %vm591_vm0, %v482_v24 }
  0x76   : > { %v7548_v24 = vshrl.u32 %v581_v23, 7 }
  0x78   : > { %910 = vmatmul.mubr.f32.gmra.mrb[34].mxu0 %v481_v25  ;;  %10544 = vst [vmem:[#allocation2_spill] sm:$0xff] %v7548_v24  ;;  %v10539_v25 = vsub.s32 0, %v7548_v24 }
  0x79   : > { %5700 = vmatprep.mubr.msk.f32.mxu0 %vm591_vm0, %v484_v26  ;;  %v579_v26 = vld [vmem:[%s10526_s2] sm:$0x3] }
  0x7c   : > { %916 = vmatmul.mubr.f32.gmra.mrb[36].mxu0 %v483_v27  ;;  %v10538_v27 = vsub.s32 1, %v7548_v24 }
  0x7d   : > { %5701 = vmatprep.mubr.msk.f32.mxu0 %vm591_vm0, %v486_v28  ;;  %v7557_v28 = vrot.slane %v579_v26, %v10539_v25  ;;  %v1435_v25 = vld [vmem:[%s10527_s3 + $0x918] sm:$0xff] }
  0x80   : > { %922 = vmatmul.mubr.f32.gmra.mrb[38].mxu0 %v485_v29  ;;  %v7561_v29 = vrot.slane %v579_v26, %v10538_v27 }
  0x81   : > { %5702 = vmatprep.mubr.msk.f32.mxu0 %vm591_vm0, %v488_v30 }
  0x84   : > { %928 = vmatmul.mubr.f32.gmra.mrb[40].mxu0 %v487_v31 }
  0x85   : > { %5703 = vmatprep.mubr.msk.f32.mxu0 %vm591_vm0, %v490_v32 }
  0x88   : > { %934 = vmatmul.mubr.f32.gmra.mrb[42].mxu0 %v489_v33 }
  0x89   : > { %5704 = vmatprep.mubr.msk.f32.mxu0 %vm591_vm0, %v492_v34 }
  0x8c   : > { %940 = vmatmul.mubr.f32.gmra.mrb[44].mxu0 %v491_v35 }
  0x8d   : > { %5705 = vmatprep.mubr.msk.f32.mxu0 %vm591_vm0, %v494_v36  ;;  %v1145_v36 = vld [vmem:[%s10527_s3 + $0x8] sm:$0xff] }
  0x8e   : > { %1688 = vmatprep.mubr.f32.mxu1 %v1145_v36 }
  0x90   : > { %946 = vmatmul.mubr.f32.gmra.mrb[46].mxu0 %v493_v37 }
  0x91   : > { %5706 = vmatprep.mubr.msk.f32.mxu0 %vm591_vm0, %v496_v38 }
  0x94   : > { %952 = vmatmul.mubr.f32.gmra.mrb[48].mxu0 %v495_v39 }
  0x95   : > { %5707 = vmatprep.mubr.msk.f32.mxu0 %vm591_vm0, %v498_v41 }
  0x98   : > { %958 = vmatmul.mubr.f32.gmra.mrb[50].mxu0 %v497_v42 }
  0x99   : > { %5708 = vmatprep.mubr.msk.f32.mxu0 %vm591_vm0, %v500_v43 }
  0x9c   : > { %964 = vmatmul.mubr.f32.gmra.mrb[52].mxu0 %v499_v44 }
  0x9d   : > { %5709 = vmatprep.mubr.msk.f32.mxu0 %vm591_vm0, %v502_v45 }
  0xa0   : > { %970 = vmatmul.mubr.f32.gmra.mrb[54].mxu0 %v501_v46 }
  0xa1   : > { %5710 = vmatprep.mubr.msk.f32.mxu0 %vm591_vm0, %v504_v47 }
  0xa4   : > { %976 = vmatmul.mubr.f32.gmra.mrb[56].mxu0 %v503_v48 }
  0xa5   : > { %5711 = vmatprep.mubr.msk.f32.mxu0 %vm591_vm0, %v506_v49 }
  0xa8   : > { %982 = vmatmul.mubr.f32.gmra.mrb[58].mxu0 %v505_v50 }
  0xa9   : > { %5712 = vmatprep.mubr.msk.f32.mxu0 %vm591_vm0, %v508_v51 }
  0xac   : > { %988 = vmatmul.mubr.f32.gmra.mrb[60].mxu0 %v507_v52 }
  0xad   : > { %5713 = vmatprep.mubr.msk.f32.mxu0 %vm591_vm0, %v510_v53 }
  0xb0   : > { %994 = vmatmul.mubr.f32.gmra.mrb[62].mxu0 %v509_v54 }
  0xb1   : > { %5714 = vmatprep.mubr.msk.f32.mxu0 %vm591_vm0, %v512_v55 }
  0xb4   : > { %1000 = vmatmul.mubr.f32.gmra.mrb[64].mxu0 %v511_v56 }
  0xb5   : > { %5715 = vmatprep.mubr.msk.f32.mxu0 %vm591_vm0, %v514_v57 }
  0xb8   : > { %1006 = vmatmul.mubr.f32.gmra.mrb[66].mxu0 %v513_v58 }
  0xb9   : > { %5716 = vmatprep.mubr.msk.f32.mxu0 %vm591_vm0, %v516_v59 }
  0xbc   : > { %1012 = vmatmul.mubr.f32.gmra.mrb[68].mxu0 %v515_v60 }
  0xbd   : > { %5717 = vmatprep.mubr.msk.f32.mxu0 %vm591_vm0, %v518_v61 }
  0xc0   : > { %1018 = vmatmul.mubr.f32.gmra.mrb[70].mxu0 %v517_v62 }
  0xc1   : > { %5718 = vmatprep.mubr.msk.f32.mxu0 %vm591_vm0, %v520_v63 }
  0xc4   : > { %1024 = vmatmul.mubr.f32.gmra.mrb[72].mxu0 %v519_v0 }
  0xc5   : > { %5719 = vmatprep.mubr.msk.f32.mxu0 %vm591_vm0, %v522_v1 }
  0xc8   : > { %1030 = vmatmul.mubr.f32.gmra.mrb[74].mxu0 %v521_v2 }
  0xc9   : > { %5720 = vmatprep.mubr.msk.f32.mxu0 %vm591_vm0, %v524_v3 }
  0xcc   : > { %1036 = vmatmul.mubr.f32.gmra.mrb[76].mxu0 %v523_v4 }
  0xcd   : > { %5721 = vmatprep.mubr.msk.f32.mxu0 %vm591_vm0, %v526_v5 }
  0xd0   : > { %1042 = vmatmul.mubr.f32.gmra.mrb[78].mxu0 %v525_v6 }
  0xd1   : > { %5722 = vmatprep.mubr.msk.f32.mxu0 %vm591_vm0, %v528_v7 }
  0xd4   : > { %1048 = vmatmul.mubr.f32.gmra.mrb[80].mxu0 %v527_v8 }
  0xd5   : > { %5723 = vmatprep.mubr.msk.f32.mxu0 %vm591_vm0, %v530_v9 }
  0xd8   : > { %1054 = vmatmul.mubr.f32.gmra.mrb[82].mxu0 %v529_v10 }
  0xd9   : > { %5724 = vmatprep.mubr.msk.f32.mxu0 %vm591_vm0, %v532_v11 }
  0xdc   : > { %1060 = vmatmul.mubr.f32.gmra.mrb[84].mxu0 %v531_v12 }
  0xdd   : > { %5725 = vmatprep.mubr.msk.f32.mxu0 %vm591_vm0, %v534_v13 }
  0xe0   : > { %1066 = vmatmul.mubr.f32.gmra.mrb[86].mxu0 %v533_v14 }
  0xe1   : > { %5726 = vmatprep.mubr.msk.f32.mxu0 %vm591_vm0, %v536_v15 }
  0xe4   : > { %1072 = vmatmul.mubr.f32.gmra.mrb[88].mxu0 %v535_v16 }
  0xe5   : > { %5727 = vmatprep.mubr.msk.f32.mxu0 %vm591_vm0, %v538_v17 }
  0xe8   : > { %1078 = vmatmul.mubr.f32.gmra.mrb[90].mxu0 %v537_v18 }
  0xe9   : > { %5728 = vmatprep.mubr.msk.f32.mxu0 %vm591_vm0, %v540_v19 }
  0xec   : > { %1084 = vmatmul.mubr.f32.gmra.mrb[92].mxu0 %v539_v20 }
  0xed   : > { %5729 = vmatprep.mubr.msk.f32.mxu0 %vm591_vm0, %v542_v21 }
  0xf0   : > { %1090 = vmatmul.mubr.f32.gmra.mrb[94].mxu0 %v541_v22 }
 0x107   : > { %v809_v30 = vpop.f32.mrb[0].mxu0 }
 0x108   : > { %v811_v31 = vpop.f32.mrb[1].mxu0  ;;  %v810_v32 = vadd.f32 %v809_v30, %v7557_v28 }
 0x109   : > { %v812_v33 = vadd.f32 %v811_v31, %v7561_v29 }
 0x10b   : > { %v815_v34 = vpop.f32.mrb[2].mxu0  ;;  %v1096_v35 = vmax.f32 %v810_v32, %v812_v33 }
 0x10c   : > { %v817_v37 = vpop.f32.mrb[3].mxu0  ;;  %v816_v38 = vadd.f32 %v815_v34, %v7557_v28 }
 0x10d   : > { %v818_v39 = vadd.f32 %v817_v37, %v7561_v29 }
 0x10f   : > { %v821_v41 = vpop.f32.mrb[4].mxu0  ;;  %v1097_v42 = vmax.f32 %v816_v38, %v818_v39 }
 0x110   : > { %v823_v43 = vpop.f32.mrb[5].mxu0  ;;  %v822_v44 = vadd.f32 %v821_v41, %v7557_v28 }
 0x111   : > { %v6693_v45 = vpack.c.bf16 %v1097_v42, %v1096_v35  ;;  %v824_v46 = vadd.f32 %v823_v43, %v7561_v29 }
 0x113   : > { %v827_v47 = vpop.f32.mrb[6].mxu0  ;;  %6694 = vmatpush1.bf16.msra.mxu1 %v6693_v45  ;;  %v1098_v48 = vmax.f32 %v822_v44, %v824_v46 }
 0x114   : > { %v829_v49 = vpop.f32.mrb[7].mxu0  ;;  %6695 = vmatprep.subr.bf16.mxu1 %v7208_v40  ;;  %v828_v50 = vadd.f32 %v827_v47, %v7557_v28 }
 0x115   : > { %v830_v51 = vadd.f32 %v829_v49, %v7561_v29 }
 0x117   : > { %v833_v52 = vpop.f32.mrb[8].mxu0  ;;  %v1099_v53 = vmax.f32 %v828_v50, %v830_v51 }
 0x118   : > { %v835_v54 = vpop.f32.mrb[9].mxu0  ;;  %v834_v55 = vadd.f32 %v833_v52, %v7557_v28 }
 0x119   : > { %v6696_v56 = vpack.c.bf16 %v1099_v53, %v1098_v48  ;;  %v836_v57 = vadd.f32 %v835_v54, %v7561_v29 }
 0x11b   : > { %v839_v58 = vpop.f32.mrb[10].mxu0  ;;  %6697 = vmatpush1.bf16.msra.mxu1 %v6696_v56  ;;  %v1100_v59 = vmax.f32 %v834_v55, %v836_v57 }
 0x11c   : > { %v841_v60 = vpop.f32.mrb[11].mxu0  ;;  %6698 = vmatprep.subr.bf16.mxu1 %v7208_v40  ;;  %v840_v61 = vadd.f32 %v839_v58, %v7557_v28 }
 0x11d   : > { %v842_v62 = vadd.f32 %v841_v60, %v7561_v29 }
 0x11f   : > { %v845_v63 = vpop.f32.mrb[12].mxu0  ;;  %v1101_v0 = vmax.f32 %v840_v61, %v842_v62 }
 0x120   : > { %v847_v1 = vpop.f32.mrb[13].mxu0  ;;  %v846_v2 = vadd.f32 %v845_v63, %v7557_v28 }
 0x121   : > { %v6699_v3 = vpack.c.bf16 %v1101_v0, %v1100_v59  ;;  %v848_v4 = vadd.f32 %v847_v1, %v7561_v29 }
 0x123   : > { %v851_v5 = vpop.f32.mrb[14].mxu0  ;;  %6700 = vmatpush1.bf16.msra.mxu1 %v6699_v3  ;;  %v1102_v6 = vmax.f32 %v846_v2, %v848_v4 }
 0x124   : > { %v853_v7 = vpop.f32.mrb[15].mxu0  ;;  %6701 = vmatprep.subr.bf16.mxu1 %v7208_v40  ;;  %v852_v8 = vadd.f32 %v851_v5, %v7557_v28 }
 0x125   : > { %v854_v9 = vadd.f32 %v853_v7, %v7561_v29  ;;  %v1146_v7 = vld [vmem:[%s10527_s3 + $0x10] sm:$0xff] }
 0x126   : > { %6212 = vmatprep.mubr.f32.mxu0 %v1146_v7 }
 0x127   : > { %v857_v10 = vpop.f32.mrb[16].mxu0  ;;  %v1103_v11 = vmax.f32 %v852_v8, %v854_v9 }
 0x128   : > { %v859_v12 = vpop.f32.mrb[17].mxu0  ;;  %v858_v13 = vadd.f32 %v857_v10, %v7557_v28 }
 0x129   : > { %v6702_v14 = vpack.c.bf16 %v1103_v11, %v1102_v6  ;;  %v860_v15 = vadd.f32 %v859_v12, %v7561_v29 }
 0x12b   : > { %v863_v16 = vpop.f32.mrb[18].mxu0  ;;  %6703 = vmatpush1.bf16.msra.mxu1 %v6702_v14  ;;  %v1104_v17 = vmax.f32 %v858_v13, %v860_v15 }
 0x12c   : > { %v865_v18 = vpop.f32.mrb[19].mxu0  ;;  %6704 = vmatprep.subr.bf16.mxu1 %v7208_v40  ;;  %v864_v19 = vadd.f32 %v863_v16, %v7557_v28 }
 0x12d   : > { %v866_v20 = vadd.f32 %v865_v18, %v7561_v29 }
 0x12f   : > { %v869_v21 = vpop.f32.mrb[20].mxu0  ;;  %v1105_v22 = vmax.f32 %v864_v19, %v866_v20 }
 0x130   : > { %v871_v23 = vpop.f32.mrb[21].mxu0  ;;  %v870_v26 = vadd.f32 %v869_v21, %v7557_v28 }
 0x131   : > { %v6705_v30 = vpack.c.bf16 %v1105_v22, %v1104_v17  ;;  %v872_v31 = vadd.f32 %v871_v23, %v7561_v29 }
 0x133   : > { %v875_v32 = vpop.f32.mrb[22].mxu0  ;;  %6706 = vmatpush1.bf16.msra.mxu1 %v6705_v30  ;;  %v1106_v33 = vmax.f32 %v870_v26, %v872_v31 }
 0x134   : > { %v877_v34 = vpop.f32.mrb[23].mxu0  ;;  %6707 = vmatprep.subr.bf16.mxu1 %v7208_v40  ;;  %v876_v35 = vadd.f32 %v875_v32, %v7557_v28 }
 0x135   : > { %v878_v36 = vadd.f32 %v877_v34, %v7561_v29 }
 0x137   : > { %v881_v37 = vpop.f32.mrb[24].mxu0  ;;  %v1107_v38 = vmax.f32 %v876_v35, %v878_v36 }
 0x138   : > { %v883_v39 = vpop.f32.mrb[25].mxu0  ;;  %v882_v41 = vadd.f32 %v881_v37, %v7557_v28 }
 0x139   : > { %v6708_v42 = vpack.c.bf16 %v1107_v38, %v1106_v33  ;;  %v884_v43 = vadd.f32 %v883_v39, %v7561_v29 }
 0x13b   : > { %v887_v44 = vpop.f32.mrb[26].mxu0  ;;  %6709 = vmatpush1.bf16.msra.mxu1 %v6708_v42  ;;  %v1108_v45 = vmax.f32 %v882_v41, %v884_v43 }
 0x13c   : > { %v889_v46 = vpop.f32.mrb[27].mxu0  ;;  %6710 = vmatprep.subr.bf16.mxu1 %v7208_v40  ;;  %v888_v47 = vadd.f32 %v887_v44, %v7557_v28 }
 0x13d   : > { %v890_v48 = vadd.f32 %v889_v46, %v7561_v29 }
 0x13f   : > { %v893_v49 = vpop.f32.mrb[28].mxu0  ;;  %v1109_v50 = vmax.f32 %v888_v47, %v890_v48 }
 0x140   : > { %v895_v51 = vpop.f32.mrb[29].mxu0  ;;  %v894_v52 = vadd.f32 %v893_v49, %v7557_v28 }
 0x141   : > { %v6711_v53 = vpack.c.bf16 %v1109_v50, %v1108_v45  ;;  %v896_v54 = vadd.f32 %v895_v51, %v7561_v29 }
 0x143   : > { %v899_v55 = vpop.f32.mrb[30].mxu0  ;;  %6712 = vmatpush1.bf16.msra.mxu1 %v6711_v53  ;;  %v1110_v56 = vmax.f32 %v894_v52, %v896_v54 }
 0x144   : > { %v901_v57 = vpop.f32.mrb[31].mxu0  ;;  %6713 = vmatprep.subr.bf16.mxu1 %v7208_v40  ;;  %v900_v58 = vadd.f32 %v899_v55, %v7557_v28 }
 0x145   : > { %v902_v59 = vadd.f32 %v901_v57, %v7561_v29 }
 0x147   : > { %v905_v60 = vpop.f32.mrb[32].mxu0  ;;  %v1111_v61 = vmax.f32 %v900_v58, %v902_v59 }
 0x148   : > { %v906_v62 = vadd.f32 %v905_v60, %v7557_v28  ;;  %v907_v63 = vpop.f32.mrb[33].mxu0 }
 0x149   : > { %v908_v0 = vadd.f32 %v907_v63, %v7561_v29  ;;  %v6714_v1 = vpack.c.bf16 %v1111_v61, %v1110_v56 }
 0x14b   : > { %v1112_v2 = vmax.f32 %v906_v62, %v908_v0  ;;  %v911_v3 = vpop.f32.mrb[34].mxu0  ;;  %6715 = vmatpush1.bf16.msra.mxu1 %v6714_v1 }
 0x14c   : > { %v912_v4 = vadd.f32 %v911_v3, %v7557_v28  ;;  %v913_v5 = vpop.f32.mrb[35].mxu0  ;;  %6716 = vmatprep.subr.bf16.mxu1 %v7208_v40 }
 0x14d   : > { %v914_v6 = vadd.f32 %v913_v5, %v7561_v29 }
 0x14f   : > { %v1113_v8 = vmax.f32 %v912_v4, %v914_v6  ;;  %v917_v9 = vpop.f32.mrb[36].mxu0 }
 0x150   : > { %v918_v10 = vadd.f32 %v917_v9, %v7557_v28  ;;  %v919_v11 = vpop.f32.mrb[37].mxu0 }
 0x151   : > { %v920_v12 = vadd.f32 %v919_v11, %v7561_v29  ;;  %v6717_v13 = vpack.c.bf16 %v1113_v8, %v1112_v2 }
 0x153   : > { %v1114_v14 = vmax.f32 %v918_v10, %v920_v12  ;;  %v923_v15 = vpop.f32.mrb[38].mxu0  ;;  %6718 = vmatpush1.bf16.msra.mxu1 %v6717_v13 }
 0x154   : > { %v924_v16 = vadd.f32 %v923_v15, %v7557_v28  ;;  %v925_v17 = vpop.f32.mrb[39].mxu0  ;;  %6719 = vmatprep.subr.bf16.mxu1 %v7208_v40 }
 0x155   : > { %v926_v18 = vadd.f32 %v925_v17, %v7561_v29 }
 0x157   : > { %v1115_v19 = vmax.f32 %v924_v16, %v926_v18  ;;  %v929_v20 = vpop.f32.mrb[40].mxu0 }
 0x158   : > { %v930_v21 = vadd.f32 %v929_v20, %v7557_v28  ;;  %v931_v22 = vpop.f32.mrb[41].mxu0 }
 0x159   : > { %v932_v23 = vadd.f32 %v931_v22, %v7561_v29  ;;  %v6720_v26 = vpack.c.bf16 %v1115_v19, %v1114_v14 }
 0x15b   : > { %v1116_v30 = vmax.f32 %v930_v21, %v932_v23  ;;  %v935_v31 = vpop.f32.mrb[42].mxu0  ;;  %6721 = vmatpush1.bf16.msra.mxu1 %v6720_v26 }
 0x15c   : > { %v936_v32 = vadd.f32 %v935_v31, %v7557_v28  ;;  %v937_v33 = vpop.f32.mrb[43].mxu0  ;;  %6722 = vmatprep.subr.bf16.mxu1 %v7208_v40 }
 0x15d   : > { %v938_v34 = vadd.f32 %v937_v33, %v7561_v29 }
 0x15f   : > { %v1117_v35 = vmax.f32 %v936_v32, %v938_v34  ;;  %v941_v36 = vpop.f32.mrb[44].mxu0 }
 0x160   : > { %v942_v37 = vadd.f32 %v941_v36, %v7557_v28  ;;  %v943_v38 = vpop.f32.mrb[45].mxu0 }
 0x161   : > { %v944_v39 = vadd.f32 %v943_v38, %v7561_v29  ;;  %v6723_v41 = vpack.c.bf16 %v1117_v35, %v1116_v30  ;;  %v1144_v38 = vld [vmem:[%s10527_s3] sm:$0xff] }
 0x163   : > { %v1118_v42 = vmax.f32 %v942_v37, %v944_v39  ;;  %v947_v43 = vpop.f32.mrb[46].mxu0  ;;  %6724 = vmatpush1.bf16.msra.mxu1 %v6723_v41 }
 0x164   : > { %v948_v44 = vadd.f32 %v947_v43, %v7557_v28  ;;  %v949_v45 = vpop.f32.mrb[47].mxu0  ;;  %6725 = vmatprep.subr.bf16.mxu1 %v7208_v40 }
 0x165   : > { %v950_v46 = vadd.f32 %v949_v45, %v7561_v29  ;;  %v1147_v45 = vld [vmem:[%s10527_s3 + $0x18] sm:$0xff] }
 0x167   : > { %v1119_v47 = vmax.f32 %v948_v44, %v950_v46  ;;  %v953_v48 = vpop.f32.mrb[48].mxu0 }
 0x168   : > { %v954_v49 = vadd.f32 %v953_v48, %v7557_v28  ;;  %v955_v50 = vpop.f32.mrb[49].mxu0  ;;  %v1151_v48 = vld [vmem:[%s10527_s3 + $0x38] sm:$0xff] }
 0x169   : > { %v956_v51 = vadd.f32 %v955_v50, %v7561_v29  ;;  %v6726_v52 = vpack.c.bf16 %v1119_v47, %v1118_v42 }
 0x16b   : > { %v1120_v53 = vmax.f32 %v954_v49, %v956_v51  ;;  %v959_v54 = vpop.f32.mrb[50].mxu0  ;;  %6727 = vmatpush1.bf16.msra.mxu1 %v6726_v52 }
 0x16c   : > { %v960_v55 = vadd.f32 %v959_v54, %v7557_v28  ;;  %v961_v56 = vpop.f32.mrb[51].mxu0  ;;  %6728 = vmatprep.subr.bf16.mxu1 %v7208_v40 }
 0x16d   : > { %v962_v57 = vadd.f32 %v961_v56, %v7561_v29  ;;  %v1154_v56 = vld [vmem:[%s10527_s3 + $0x50] sm:$0xff] }
 0x16f   : > { %v1121_v58 = vmax.f32 %v960_v55, %v962_v57  ;;  %v965_v59 = vpop.f32.mrb[52].mxu0 }
 0x170   : > { %v966_v60 = vadd.f32 %v965_v59, %v7557_v28  ;;  %v967_v61 = vpop.f32.mrb[53].mxu0 }
 0x171   : > { %v968_v62 = vadd.f32 %v967_v61, %v7561_v29  ;;  %v6729_v63 = vpack.c.bf16 %v1121_v58, %v1120_v53  ;;  %v1150_v53 = vld [vmem:[%s10527_s3 + $0x30] sm:$0xff] }
 0x173   : > { %v1122_v0 = vmax.f32 %v966_v60, %v968_v62  ;;  %v971_v1 = vpop.f32.mrb[54].mxu0  ;;  %6730 = vmatpush1.bf16.msra.mxu1 %v6729_v63  ;;  %v1153_v60 = vld [vmem:[%s10527_s3 + $0x48] sm:$0xff] }
 0x174   : > { %v972_v2 = vadd.f32 %v971_v1, %v7557_v28  ;;  %v973_v3 = vpop.f32.mrb[55].mxu0  ;;  %6731 = vmatprep.subr.bf16.mxu1 %v7208_v40  ;;  %v1157_v63 = vld [vmem:[%s10527_s3 + $0x68] sm:$0xff] }
 0x175   : > { %v974_v4 = vadd.f32 %v973_v3, %v7561_v29 }
 0x177   : > { %v1123_v5 = vmax.f32 %v972_v2, %v974_v4  ;;  %v977_v6 = vpop.f32.mrb[56].mxu0  ;;  %v1156_v4 = vld [vmem:[%s10527_s3 + $0x60] sm:$0xff] }
 0x178   : > { %v978_v7 = vadd.f32 %v977_v6, %v7557_v28  ;;  %v979_v8 = vpop.f32.mrb[57].mxu0 }
 0x179   : > { %v980_v9 = vadd.f32 %v979_v8, %v7561_v29  ;;  %v6732_v10 = vpack.c.bf16 %v1123_v5, %v1122_v0 }
 0x17b   : > { %v1124_v11 = vmax.f32 %v978_v7, %v980_v9  ;;  %v983_v12 = vpop.f32.mrb[58].mxu0  ;;  %6733 = vmatpush1.bf16.msra.mxu1 %v6732_v10  ;;  %v1160_v7 = vld [vmem:[%s10527_s3 + $0x80] sm:$0xff] }
 0x17c   : > { %v984_v13 = vadd.f32 %v983_v12, %v7557_v28  ;;  %v985_v14 = vpop.f32.mrb[59].mxu0  ;;  %6734 = vmatprep.subr.bf16.mxu1 %v7208_v40 }
 0x17d   : > { %v986_v15 = vadd.f32 %v985_v14, %v7561_v29  ;;  %v1163_v14 = vld [vmem:[%s10527_s3 + $0x98] sm:$0xff] }
 0x17f   : > { %v1125_v16 = vmax.f32 %v984_v13, %v986_v15  ;;  %v989_v17 = vpop.f32.mrb[60].mxu0 }
 0x180   : > { %v990_v18 = vadd.f32 %v989_v17, %v7557_v28  ;;  %v991_v19 = vpop.f32.mrb[61].mxu0 }
 0x181   : > { %v992_v20 = vadd.f32 %v991_v19, %v7561_v29  ;;  %v6735_v21 = vpack.c.bf16 %v1125_v16, %v1124_v11  ;;  %v1159_v11 = vld [vmem:[%s10527_s3 + $0x78] sm:$0xff]  ;;  %v1162_v19 = vld [vmem:[%s10527_s3 + $0x90] sm:$0xff] }
 0x183   : > { %v1126_v22 = vmax.f32 %v990_v18, %v992_v20  ;;  %v995_v23 = vpop.f32.mrb[62].mxu0  ;;  %6736 = vmatpush1.bf16.msra.mxu1 %v6735_v21 }
 0x184   : > { %v996_v26 = vadd.f32 %v995_v23, %v7557_v28  ;;  %v997_v30 = vpop.f32.mrb[63].mxu0  ;;  %6737 = vmatprep.subr.bf16.mxu1 %v7208_v40  ;;  %v1148_v40 = vld [vmem:[%s10527_s3 + $0x20] sm:$0xff] }
 0x185   : > { %v998_v31 = vadd.f32 %v997_v30, %v7561_v29 }
 0x187   : > { %v1127_v32 = vmax.f32 %v996_v26, %v998_v31  ;;  %v1001_v33 = vpop.f32.mrb[64].mxu0  ;;  %v1165_v31 = vld [vmem:[%s10527_s3 + $0xa8] sm:$0xff] }
 0x188   : > { %v1002_v34 = vadd.f32 %v1001_v33, %v7557_v28  ;;  %v1003_v35 = vpop.f32.mrb[65].mxu0 }
 0x189   : > { %v6738_v36 = vpack.c.bf16 %v1127_v32, %v1126_v22  ;;  %v1004_v37 = vadd.f32 %v1003_v35, %v7561_v29  ;;  %v1166_v22 = vld [vmem:[%s10527_s3 + $0xb0] sm:$0xff] }
 0x18b   : > { %6739 = vmatpush1.bf16.msra.mxu1 %v6738_v36  ;;  %v1128_v39 = vmax.f32 %v1002_v34, %v1004_v37  ;;  %v1007_v41 = vpop.f32.mrb[66].mxu0  ;;  %v1169_v34 = vld [vmem:[%s10527_s3 + $0xc8] sm:$0xff] }
 0x18c   : > { %v1008_v42 = vadd.f32 %v1007_v41, %v7557_v28  ;;  %v1009_v43 = vpop.f32.mrb[67].mxu0 }
 0x18d   : > { %v1010_v44 = vadd.f32 %v1009_v43, %v7561_v29 }
 0x18e   : > { %1689 = vmatmul.mubr.f32.vlgmr.msra.gmra.mrb[0].mxu1 %v1144_v38 }
 0x18f   : > { %1693 = vmatprep.mubr.f32.mxu1 %v1148_v40  ;;  %v1129_v46 = vmax.f32 %v1008_v42, %v1010_v44  ;;  %v1013_v47 = vpop.f32.mrb[68].mxu0  ;;  %v1172_v42 = vld [vmem:[%s10527_s3 + $0xe0] sm:$0xff] }
 0x190   : > { %v1014_v49 = vadd.f32 %v1013_v47, %v7557_v28  ;;  %v1015_v50 = vpop.f32.mrb[69].mxu0 }
 0x191   : > { %v1016_v51 = vadd.f32 %v1015_v50, %v7561_v29  ;;  %v6740_v52 = vpack.c.bf16 %v1129_v46, %v1128_v39  ;;  %v1168_v39 = vld [vmem:[%s10527_s3 + $0xc0] sm:$0xff]  ;;  %v1171_v46 = vld [vmem:[%s10527_s3 + $0xd8] sm:$0xff] }
 0x192   : > { %1694 = vmatmul.mubr.f32.gmra.mrb[2].mxu1 %v1147_v45 }
 0x193   : > { %1698 = vmatprep.mubr.f32.mxu1 %v1151_v48  ;;  %v1130_v54 = vmax.f32 %v1014_v49, %v1016_v51  ;;  %v1019_v55 = vpop.f32.mrb[70].mxu0  ;;  %6741 = vmatprep.subr.bf16.mxu0 %v6740_v52  ;;  %v1175_v49 = vld [vmem:[%s10527_s3 + $0xf8] sm:$0xff] }
 0x194   : > { %v1020_v57 = vadd.f32 %v1019_v55, %v7557_v28  ;;  %v1021_v58 = vpop.f32.mrb[71].mxu0  ;;  %6743 = vmatpush3.bf16.msra.mxu0 %v6740_v52 }
 0x195   : > { %v1022_v59 = vadd.f32 %v1021_v58, %v7561_v29 }
 0x196   : > { %1699 = vmatmul.mubr.f32.gmra.mrb[4].mxu1 %v1150_v53 }
 0x197   : > { %1703 = vmatprep.mubr.f32.mxu1 %v1154_v56  ;;  %v1131_v61 = vmax.f32 %v1020_v57, %v1022_v59  ;;  %v1025_v62 = vpop.f32.mrb[72].mxu0  ;;  %v1178_v57 = vld [vmem:[%s10527_s3 + $0x110] sm:$0xff] }
 0x198   : > { %v1026_v0 = vadd.f32 %v1025_v62, %v7557_v28  ;;  %v1027_v1 = vpop.f32.mrb[73].mxu0 }
 0x199   : > { %v1028_v2 = vadd.f32 %v1027_v1, %v7561_v29  ;;  %v6744_v3 = vpack.c.bf16 %v1131_v61, %v1130_v54  ;;  %v1174_v54 = vld [vmem:[%s10527_s3 + $0xf0] sm:$0xff]  ;;  %v1177_v61 = vld [vmem:[%s10527_s3 + $0x108] sm:$0xff] }
 0x19a   : > { %1704 = vmatmul.mubr.f32.gmra.mrb[6].mxu1 %v1153_v60  ;;  %v1181_v1 = vld [vmem:[%s10527_s3 + $0x128] sm:$0xff] }
 0x19b   : > { %1708 = vmatprep.mubr.f32.mxu1 %v1157_v63  ;;  %v1132_v5 = vmax.f32 %v1026_v0, %v1028_v2  ;;  %v1031_v6 = vpop.f32.mrb[74].mxu0  ;;  %6745 = vmatprep.subr.bf16.mxu0 %v6744_v3 }
 0x19c   : > { %v1032_v8 = vadd.f32 %v1031_v6, %v7557_v28  ;;  %v1033_v9 = vpop.f32.mrb[75].mxu0  ;;  %6747 = vmatpush3.bf16.msra.mxu0 %v6744_v3  ;;  %v1180_v6 = vld [vmem:[%s10527_s3 + $0x120] sm:$0xff] }
 0x19d   : > { %v1034_v10 = vadd.f32 %v1033_v9, %v7561_v29 }
 0x19e   : > { %1709 = vmatmul.mubr.f32.gmra.mrb[8].mxu1 %v1156_v4 }
 0x19f   : > { %1713 = vmatprep.mubr.f32.mxu1 %v1160_v7  ;;  %v1133_v12 = vmax.f32 %v1032_v8, %v1034_v10  ;;  %v1037_v13 = vpop.f32.mrb[76].mxu0  ;;  %v1184_v10 = vld [vmem:[%s10527_s3 + $0x140] sm:$0xff] }
 0x1a0   : > { %v1038_v15 = vadd.f32 %v1037_v13, %v7557_v28  ;;  %v1039_v16 = vpop.f32.mrb[77].mxu0 }
 0x1a1   : > { %v1040_v17 = vadd.f32 %v1039_v16, %v7561_v29  ;;  %v6748_v18 = vpack.c.bf16 %v1133_v12, %v1132_v5 }
 0x1a2   : > { %1714 = vmatmul.mubr.f32.gmra.mrb[10].mxu1 %v1159_v11 }
 0x1a3   : > { %1718 = vmatprep.mubr.f32.mxu1 %v1163_v14  ;;  %v1134_v20 = vmax.f32 %v1038_v15, %v1040_v17  ;;  %v1043_v21 = vpop.f32.mrb[78].mxu0  ;;  %6749 = vmatprep.subr.bf16.mxu0 %v6748_v18  ;;  %v1183_v14 = vld [vmem:[%s10527_s3 + $0x138] sm:$0xff] }
 0x1a4   : > { %v1044_v23 = vadd.f32 %v1043_v21, %v7557_v28  ;;  %v1045_v26 = vpop.f32.mrb[79].mxu0  ;;  %6751 = vmatpush3.bf16.msra.mxu0 %v6748_v18  ;;  %v1187_v17 = vld [vmem:[%s10527_s3 + $0x158] sm:$0xff] }
 0x1a5   : > { %v1046_v30 = vadd.f32 %v1045_v26, %v7561_v29 }
 0x1a6   : > { %1719 = vmatmul.mubr.f32.gmra.mrb[12].mxu1 %v1162_v19 }
 0x1a7   : > { %1723 = vmatprep.mubr.f32.mxu1 %v1166_v22  ;;  %v1135_v32 = vmax.f32 %v1044_v23, %v1046_v30  ;;  %v1049_v33 = vpop.f32.mrb[80].mxu0  ;;  %v1186_v22 = vld [vmem:[%s10527_s3 + $0x150] sm:$0xff] }
 0x1a8   : > { %v1050_v35 = vadd.f32 %v1049_v33, %v7557_v28  ;;  %v1051_v36 = vpop.f32.mrb[81].mxu0  ;;  %v1190_v30 = vld [vmem:[%s10527_s3 + $0x170] sm:$0xff]  ;;  %v1189_v33 = vld [vmem:[%s10527_s3 + $0x168] sm:$0xff] }
 0x1a9   : > { %v1052_v37 = vadd.f32 %v1051_v36, %v7561_v29  ;;  %v6752_v38 = vpack.c.bf16 %v1135_v32, %v1134_v20  ;;  %v1196_v36 = vld [vmem:[%s10527_s3 + $0x1a0] sm:$0xff] }
 0x1aa   : > { %1724 = vmatmul.mubr.f32.gmra.mrb[14].mxu1 %v1165_v31 }
 0x1ab   : > { %1728 = vmatprep.mubr.f32.mxu1 %v1169_v34  ;;  %v1136_v41 = vmax.f32 %v1050_v35, %v1052_v37  ;;  %v1055_v40 = vpop.f32.mrb[82].mxu0  ;;  %6753 = vmatprep.subr.bf16.mxu0 %v6752_v38  ;;  %v1193_v34 = vld [vmem:[%s10527_s3 + $0x188] sm:$0xff]  ;;  %v1192_v35 = vld [vmem:[%s10527_s3 + $0x180] sm:$0xff] }
 0x1ac   : > { %v1056_v43 = vadd.f32 %v1055_v40, %v7557_v28  ;;  %v1057_v44 = vpop.f32.mrb[83].mxu0  ;;  %6755 = vmatpush3.bf16.msra.mxu0 %v6752_v38  ;;  %v1152_v37 = vld [vmem:[%s10527_s3 + $0x40] sm:$0xff]  ;;  %v1195_v38 = vld [vmem:[%s10527_s3 + $0x198] sm:$0xff]  ;;  %v1158_v40 = vld [vmem:[%s10527_s3 + $0x70] sm:$0xff] }
 0x1ad   : > { %v1058_v45 = vadd.f32 %v1057_v44, %v7561_v29  ;;  %v1202_v44 = vld [vmem:[%s10527_s3 + $0x1d0] sm:$0xff] }
 0x1ae   : > { %1729 = vmatmul.mubr.f32.gmra.mrb[16].mxu1 %v1168_v39  ;;  %v1155_v39 = vld [vmem:[%s10527_s3 + $0x58] sm:$0xff] }
 0x1af   : > { %1733 = vmatprep.mubr.f32.mxu1 %v1172_v42  ;;  %v1137_v47 = vmax.f32 %v1056_v43, %v1058_v45  ;;  %v1061_v48 = vpop.f32.mrb[84].mxu0  ;;  %v1198_v42 = vld [vmem:[%s10527_s3 + $0x1b0] sm:$0xff]  ;;  %v1161_v43 = vld [vmem:[%s10527_s3 + $0x88] sm:$0xff]  ;;  %v1164_v45 = vld [vmem:[%s10527_s3 + $0xa0] sm:$0xff] }
 0x1b0   : > { %v1062_v50 = vadd.f32 %v1061_v48, %v7557_v28  ;;  %v1063_v51 = vpop.f32.mrb[85].mxu0  ;;  %v1205_v48 = vld [vmem:[%s10527_s3 + $0x1e8] sm:$0xff] }
 0x1b1   : > { %v1064_v52 = vadd.f32 %v1063_v51, %v7561_v29  ;;  %v6756_v53 = vpack.c.bf16 %v1137_v47, %v1136_v41  ;;  %v1199_v41 = vld [vmem:[%s10527_s3 + $0x1b8] sm:$0xff]  ;;  %v1173_v51 = vld [vmem:[%s10527_s3 + $0xe8] sm:$0xff] }
 0x1b2   : > { %1734 = vmatmul.mubr.f32.gmra.mrb[18].mxu1 %v1171_v46  ;;  %v1201_v46 = vld [vmem:[%s10527_s3 + $0x1c8] sm:$0xff]  ;;  %v1167_v47 = vld [vmem:[%s10527_s3 + $0xb8] sm:$0xff] }
 0x1b3   : > { %1738 = vmatprep.mubr.f32.mxu1 %v1175_v49  ;;  %v1138_v55 = vmax.f32 %v1062_v50, %v1064_v52  ;;  %v1067_v56 = vpop.f32.mrb[86].mxu0  ;;  %6757 = vmatprep.subr.bf16.mxu0 %v6756_v53  ;;  %v1170_v49 = vld [vmem:[%s10527_s3 + $0xd0] sm:$0xff]  ;;  %v1204_v50 = vld [vmem:[%s10527_s3 + $0x1e0] sm:$0xff] }
 0x1b4   : > { %v1068_v58 = vadd.f32 %v1067_v56, %v7557_v28  ;;  %v1069_v59 = vpop.f32.mrb[87].mxu0  ;;  %6759 = vmatpush3.bf16.msra.mxu0 %v6756_v53  ;;  %v1208_v52 = vld [vmem:[%s10527_s3 + $0x200] sm:$0xff]  ;;  %v1211_v56 = vld [vmem:[%s10527_s3 + $0x218] sm:$0xff] }
 0x1b5   : > { %v1070_v60 = vadd.f32 %v1069_v59, %v7561_v29  ;;  %v1176_v53 = vld [vmem:[%s10527_s3 + $0x100] sm:$0xff]  ;;  %v1185_v59 = vld [vmem:[%s10527_s3 + $0x148] sm:$0xff] }
 0x1b6   : > { %1739 = vmatmul.mubr.f32.gmra.mrb[20].mxu1 %v1174_v54  ;;  %v1207_v54 = vld [vmem:[%s10527_s3 + $0x1f8] sm:$0xff] }
 0x1b7   : > { %1743 = vmatprep.mubr.f32.mxu1 %v1178_v57  ;;  %v1139_v62 = vmax.f32 %v1068_v58, %v1070_v60  ;;  %v1073_v63 = vpop.f32.mrb[88].mxu0  ;;  %v1182_v57 = vld [vmem:[%s10527_s3 + $0x130] sm:$0xff] }
 0x1b8   : > { %v1074_v0 = vadd.f32 %v1073_v63, %v7557_v28  ;;  %v1075_v2 = vpop.f32.mrb[89].mxu0  ;;  %v1210_v58 = vld [vmem:[%s10527_s3 + $0x210] sm:$0xff]  ;;  %v1191_v63 = vld [vmem:[%s10527_s3 + $0x178] sm:$0xff] }
 0x1b9   : > { %v1076_v3 = vadd.f32 %v1075_v2, %v7561_v29  ;;  %v6760_v4 = vpack.c.bf16 %v1139_v62, %v1138_v55  ;;  %v1179_v55 = vld [vmem:[%s10527_s3 + $0x118] sm:$0xff]  ;;  %v1214_v60 = vld [vmem:[%s10527_s3 + $0x230] sm:$0xff]  ;;  %v1213_v62 = vld [vmem:[%s10527_s3 + $0x228] sm:$0xff] }
 0x1ba   : > { %1744 = vmatmul.mubr.f32.gmra.mrb[22].mxu1 %v1177_v61  ;;  %v1188_v61 = vld [vmem:[%s10527_s3 + $0x160] sm:$0xff] }
 0x1bb   : > { %1748 = vmatprep.mubr.f32.mxu1 %v1181_v1  ;;  %v1140_v5 = vmax.f32 %v1074_v0, %v1076_v3  ;;  %v1079_v7 = vpop.f32.mrb[90].mxu0  ;;  %6761 = vmatprep.subr.bf16.mxu0 %v6760_v4  ;;  %v1217_v0 = vld [vmem:[%s10527_s3 + $0x248] sm:$0xff]  ;;  %v1194_v1 = vld [vmem:[%s10527_s3 + $0x190] sm:$0xff]  ;;  %v1216_v2 = vld [vmem:[%s10527_s3 + $0x240] sm:$0xff] }
 0x1bc   : > { %v1080_v8 = vadd.f32 %v1079_v7, %v7557_v28  ;;  %v1081_v9 = vpop.f32.mrb[91].mxu0  ;;  %6763 = vmatpush3.bf16.msra.mxu0 %v6760_v4  ;;  %v1197_v3 = vld [vmem:[%s10527_s3 + $0x1a8] sm:$0xff]  ;;  %v1220_v4 = vld [vmem:[%s10527_s3 + $0x260] sm:$0xff]  ;;  %v1203_v7 = vld [vmem:[%s10527_s3 + $0x1d8] sm:$0xff] }
 0x1bd   : > { %v1082_v11 = vadd.f32 %v1081_v9, %v7561_v29  ;;  %v1206_v9 = vld [vmem:[%s10527_s3 + $0x1f0] sm:$0xff] }
 0x1be   : > { %1749 = vmatmul.mubr.f32.gmra.mrb[24].mxu1 %v1180_v6  ;;  %v1219_v6 = vld [vmem:[%s10527_s3 + $0x258] sm:$0xff] }
 0x1bf   : > { %v1141_v12 = vmax.f32 %v1080_v8, %v1082_v11  ;;  %v1085_v13 = vpop.f32.mrb[92].mxu0  ;;  %1753 = vmatprep.mubr.f32.mxu1 %v1184_v10  ;;  %v1223_v8 = vld [vmem:[%s10527_s3 + $0x278] sm:$0xff]  ;;  %v1222_v10 = vld [vmem:[%s10527_s3 + $0x270] sm:$0xff]  ;;  %v1209_v11 = vld [vmem:[%s10527_s3 + $0x208] sm:$0xff] }
 0x1c0   : > { %v1086_v15 = vadd.f32 %v1085_v13, %v7557_v28  ;;  %v1087_v16 = vpop.f32.mrb[93].mxu0  ;;  %v1212_v13 = vld [vmem:[%s10527_s3 + $0x220] sm:$0xff] }
 0x1c1   : > { %v1088_v18 = vadd.f32 %v1087_v16, %v7561_v29  ;;  %v6764_v19 = vpack.c.bf16 %v1141_v12, %v1140_v5  ;;  %v1200_v5 = vld [vmem:[%s10527_s3 + $0x1c0] sm:$0xff]  ;;  %v1226_v12 = vld [vmem:[%s10527_s3 + $0x290] sm:$0xff]  ;;  %v1229_v16 = vld [vmem:[%s10527_s3 + $0x2a8] sm:$0xff] }
 0x1c2   : > { %1754 = vmatmul.mubr.f32.gmra.mrb[26].mxu1 %v1183_v14  ;;  %v1225_v14 = vld [vmem:[%s10527_s3 + $0x288] sm:$0xff] }
 0x1c3   : > { %v1142_v20 = vmax.f32 %v1086_v15, %v1088_v18  ;;  %v1091_v21 = vpop.f32.mrb[94].mxu0  ;;  %1758 = vmatprep.mubr.f32.mxu1 %v1187_v17  ;;  %6765 = vmatprep.subr.bf16.mxu0 %v6764_v19  ;;  %v1215_v15 = vld [vmem:[%s10527_s3 + $0x238] sm:$0xff]  ;;  %v1218_v17 = vld [vmem:[%s10527_s3 + $0x250] sm:$0xff]  ;;  %v1228_v18 = vld [vmem:[%s10527_s3 + $0x2a0] sm:$0xff] }
 0x1c4   : > { %v1092_v23 = vadd.f32 %v1091_v21, %v7557_v28  ;;  %v1093_v26 = vpop.f32.mrb[95].mxu0  ;;  %6767 = vmatpush3.bf16.msra.mxu0 %v6764_v19  ;;  %v1221_v19 = vld [vmem:[%s10527_s3 + $0x268] sm:$0xff]  ;;  %v1224_v21 = vld [vmem:[%s10527_s3 + $0x280] sm:$0xff] }
 0x1c5   : > { %v1094_v31 = vadd.f32 %v1093_v26, %v7561_v29  ;;  %v1149_v29 = vld [vmem:[%s10527_s3 + $0x28] sm:$0xff]  ;;  %v1235_v26 = vld [vmem:[%s10527_s3 + $0x2d8] sm:$0xff] }
 0x1c6   : > { %1759 = vmatmul.mubr.f32.gmra.mrb[28].mxu1 %v1186_v22  ;;  %v1231_v22 = vld [vmem:[%s10527_s3 + $0x2b8] sm:$0xff] }
 0x1c7   : > { %v1143_v32 = vmax.f32 %v1092_v23, %v1094_v31  ;;  %1763 = vmatprep.mubr.f32.mxu1 %v1190_v30  ;;  %v1227_v23 = vld [vmem:[%s10527_s3 + $0x298] sm:$0xff]  ;;  %v1230_v30 = vld [vmem:[%s10527_s3 + $0x2b0] sm:$0xff] }
 0x1c8   : > { %v1234_v31 = vld [vmem:[%s10527_s3 + $0x2d0] sm:$0xff] }
 0x1c9   : > { %v6768_v28 = vpack.c.bf16 %v1143_v32, %v1142_v20  ;;  %v1232_v20 = vld [vmem:[%s10527_s3 + $0x2c0] sm:$0xff]  ;;  %v1233_v32 = vld [vmem:[%s10527_s3 + $0x2c8] sm:$0xff] }
 0x1ca   : > { %1764 = vmatmul.mubr.f32.gmra.mrb[30].mxu1 %v1189_v33  ;;  %v1238_v33 = vld [vmem:[%s10527_s3 + $0x2f0] sm:$0xff] }
 0x1cb   : > { %6769 = vmatprep.subr.bf16.mxu0 %v6768_v28  ;;  %1768 = vmatprep.mubr.f32.mxu1 %v1193_v34  ;;  %v1236_v34 = vld [vmem:[%s10527_s3 + $0x2e0] sm:$0xff] }
 0x1cc   : > { %6771 = vmatpush3.bf16.msra.mxu0 %v6768_v28  ;;  %v1237_v28 = vld [vmem:[%s10527_s3 + $0x2e8] sm:$0xff] }
 0x1ce   : > { %1769 = vmatmul.mubr.f32.gmra.mrb[32].mxu1 %v1192_v35  ;;  %v1239_v35 = vld [vmem:[%s10527_s3 + $0x2f8] sm:$0xff] }
 0x1cf   : > { %6213 = vmatmul.mubr.f32.vlgmr.msra.gmra.mrb[96].mxu0 %v1149_v29  ;;  %1773 = vmatprep.mubr.f32.mxu1 %v1196_v36  ;;  %v1241_v29 = vld [vmem:[%s10527_s3 + $0x308] sm:$0xff]  ;;  %v1242_v36 = vld [vmem:[%s10527_s3 + $0x310] sm:$0xff] }
 0x1d0   : > { %6215 = vmatprep.mubr.f32.mxu0 %v1152_v37  ;;  %v1240_v37 = vld [vmem:[%s10527_s3 + $0x300] sm:$0xff] }
 0x1d2   : > { %1774 = vmatmul.mubr.f32.gmra.mrb[34].mxu1 %v1195_v38  ;;  %v1245_v38 = vld [vmem:[%s10527_s3 + $0x328] sm:$0xff] }
 0x1d3   : > { %6216 = vmatmul.mubr.f32.gmra.mrb[98].mxu0 %v1155_v39  ;;  %1778 = vmatprep.mubr.f32.mxu1 %v1199_v41  ;;  %v1244_v39 = vld [vmem:[%s10527_s3 + $0x320] sm:$0xff] }
 0x1d4   : > { %6218 = vmatprep.mubr.f32.mxu0 %v1158_v40  ;;  %v1248_v41 = vld [vmem:[%s10527_s3 + $0x340] sm:$0xff]  ;;  %v1243_v40 = vld [vmem:[%s10527_s3 + $0x318] sm:$0xff] }
 0x1d6   : > { %1779 = vmatmul.mubr.f32.gmra.mrb[36].mxu1 %v1198_v42  ;;  %v1247_v42 = vld [vmem:[%s10527_s3 + $0x338] sm:$0xff] }
 0x1d7   : > { %6219 = vmatmul.mubr.f32.gmra.mrb[100].mxu0 %v1161_v43  ;;  %1783 = vmatprep.mubr.f32.mxu1 %v1202_v44  ;;  %v1251_v43 = vld [vmem:[%s10527_s3 + $0x358] sm:$0xff]  ;;  %v1254_v44 = vld [vmem:[%s10527_s3 + $0x370] sm:$0xff] }
 0x1d8   : > { %6221 = vmatprep.mubr.f32.mxu0 %v1164_v45  ;;  %v1246_v45 = vld [vmem:[%s10527_s3 + $0x330] sm:$0xff] }
 0x1da   : > { %1784 = vmatmul.mubr.f32.gmra.mrb[38].mxu1 %v1201_v46  ;;  %v1250_v46 = vld [vmem:[%s10527_s3 + $0x350] sm:$0xff] }
 0x1db   : > { %6222 = vmatmul.mubr.f32.gmra.mrb[102].mxu0 %v1167_v47  ;;  %1788 = vmatprep.mubr.f32.mxu1 %v1205_v48  ;;  %v1257_v47 = vld [vmem:[%s10527_s3 + $0x388] sm:$0xff]  ;;  %v1260_v48 = vld [vmem:[%s10527_s3 + $0x3a0] sm:$0xff] }
 0x1dc   : > { %6224 = vmatprep.mubr.f32.mxu0 %v1170_v49  ;;  %v1249_v49 = vld [vmem:[%s10527_s3 + $0x348] sm:$0xff] }
 0x1de   : > { %1789 = vmatmul.mubr.f32.gmra.mrb[40].mxu1 %v1204_v50  ;;  %v1253_v50 = vld [vmem:[%s10527_s3 + $0x368] sm:$0xff] }
 0x1df   : > { %6225 = vmatmul.mubr.f32.gmra.mrb[104].mxu0 %v1173_v51  ;;  %1793 = vmatprep.mubr.f32.mxu1 %v1208_v52  ;;  %v1263_v51 = vld [vmem:[%s10527_s3 + $0x3b8] sm:$0xff]  ;;  %v1266_v52 = vld [vmem:[%s10527_s3 + $0x3d0] sm:$0xff] }
 0x1e0   : > { %6227 = vmatprep.mubr.f32.mxu0 %v1176_v53  ;;  %v1252_v53 = vld [vmem:[%s10527_s3 + $0x360] sm:$0xff] }
 0x1e2   : > { %1794 = vmatmul.mubr.f32.gmra.mrb[42].mxu1 %v1207_v54  ;;  %v1256_v54 = vld [vmem:[%s10527_s3 + $0x380] sm:$0xff] }
 0x1e3   : > { %6228 = vmatmul.mubr.f32.gmra.mrb[106].mxu0 %v1179_v55  ;;  %1798 = vmatprep.mubr.f32.mxu1 %v1211_v56  ;;  %v1269_v55 = vld [vmem:[%s10527_s3 + $0x3e8] sm:$0xff]  ;;  %v1272_v56 = vld [vmem:[%s10527_s3 + $0x400] sm:$0xff] }
 0x1e4   : > { %6230 = vmatprep.mubr.f32.mxu0 %v1182_v57  ;;  %v1255_v57 = vld [vmem:[%s10527_s3 + $0x378] sm:$0xff] }
 0x1e6   : > { %1799 = vmatmul.mubr.f32.gmra.mrb[44].mxu1 %v1210_v58  ;;  %v1259_v58 = vld [vmem:[%s10527_s3 + $0x398] sm:$0xff] }
 0x1e7   : > { %6231 = vmatmul.mubr.f32.gmra.mrb[108].mxu0 %v1185_v59  ;;  %1803 = vmatprep.mubr.f32.mxu1 %v1214_v60  ;;  %v1275_v59 = vld [vmem:[%s10527_s3 + $0x418] sm:$0xff]  ;;  %v1278_v60 = vld [vmem:[%s10527_s3 + $0x430] sm:$0xff] }
 0x1e8   : > { %6233 = vmatprep.mubr.f32.mxu0 %v1188_v61  ;;  %v1258_v61 = vld [vmem:[%s10527_s3 + $0x390] sm:$0xff] }
 0x1ea   : > { %1804 = vmatmul.mubr.f32.gmra.mrb[46].mxu1 %v1213_v62  ;;  %v1262_v62 = vld [vmem:[%s10527_s3 + $0x3b0] sm:$0xff] }
 0x1eb   : > { %6234 = vmatmul.mubr.f32.gmra.mrb[110].mxu0 %v1191_v63  ;;  %1808 = vmatprep.mubr.f32.mxu1 %v1217_v0  ;;  %v1281_v63 = vld [vmem:[%s10527_s3 + $0x448] sm:$0xff]  ;;  %v1284_v0 = vld [vmem:[%s10527_s3 + $0x460] sm:$0xff] }
 0x1ec   : > { %6236 = vmatprep.mubr.f32.mxu0 %v1194_v1  ;;  %v1261_v1 = vld [vmem:[%s10527_s3 + $0x3a8] sm:$0xff] }
 0x1ee   : > { %1809 = vmatmul.mubr.f32.gmra.mrb[48].mxu1 %v1216_v2  ;;  %v1265_v2 = vld [vmem:[%s10527_s3 + $0x3c8] sm:$0xff] }
 0x1ef   : > { %6237 = vmatmul.mubr.f32.gmra.mrb[112].mxu0 %v1197_v3  ;;  %1813 = vmatprep.mubr.f32.mxu1 %v1220_v4  ;;  %v1287_v3 = vld [vmem:[%s10527_s3 + $0x478] sm:$0xff]  ;;  %v1290_v4 = vld [vmem:[%s10527_s3 + $0x490] sm:$0xff] }
 0x1f0   : > { %6239 = vmatprep.mubr.f32.mxu0 %v1200_v5  ;;  %v1264_v5 = vld [vmem:[%s10527_s3 + $0x3c0] sm:$0xff] }
 0x1f2   : > { %1814 = vmatmul.mubr.f32.gmra.mrb[50].mxu1 %v1219_v6  ;;  %v1268_v6 = vld [vmem:[%s10527_s3 + $0x3e0] sm:$0xff] }
 0x1f3   : > { %6240 = vmatmul.mubr.f32.gmra.mrb[114].mxu0 %v1203_v7  ;;  %1818 = vmatprep.mubr.f32.mxu1 %v1223_v8  ;;  %v1293_v7 = vld [vmem:[%s10527_s3 + $0x4a8] sm:$0xff]  ;;  %v1296_v8 = vld [vmem:[%s10527_s3 + $0x4c0] sm:$0xff] }
 0x1f4   : > { %6242 = vmatprep.mubr.f32.mxu0 %v1206_v9  ;;  %v1267_v9 = vld [vmem:[%s10527_s3 + $0x3d8] sm:$0xff] }
 0x1f6   : > { %1819 = vmatmul.mubr.f32.gmra.mrb[52].mxu1 %v1222_v10  ;;  %v1271_v10 = vld [vmem:[%s10527_s3 + $0x3f8] sm:$0xff] }
 0x1f7   : > { %6243 = vmatmul.mubr.f32.gmra.mrb[116].mxu0 %v1209_v11  ;;  %1823 = vmatprep.mubr.f32.mxu1 %v1226_v12  ;;  %v1299_v11 = vld [vmem:[%s10527_s3 + $0x4d8] sm:$0xff]  ;;  %v1302_v12 = vld [vmem:[%s10527_s3 + $0x4f0] sm:$0xff] }
 0x1f8   : > { %6245 = vmatprep.mubr.f32.mxu0 %v1212_v13  ;;  %v1270_v13 = vld [vmem:[%s10527_s3 + $0x3f0] sm:$0xff] }
 0x1fa   : > { %1824 = vmatmul.mubr.f32.gmra.mrb[54].mxu1 %v1225_v14  ;;  %v1274_v14 = vld [vmem:[%s10527_s3 + $0x410] sm:$0xff] }
 0x1fb   : > { %6246 = vmatmul.mubr.f32.gmra.mrb[118].mxu0 %v1215_v15  ;;  %1828 = vmatprep.mubr.f32.mxu1 %v1229_v16  ;;  %v1305_v15 = vld [vmem:[%s10527_s3 + $0x508] sm:$0xff]  ;;  %v1308_v16 = vld [vmem:[%s10527_s3 + $0x520] sm:$0xff] }
 0x1fc   : > { %6248 = vmatprep.mubr.f32.mxu0 %v1218_v17  ;;  %v1273_v17 = vld [vmem:[%s10527_s3 + $0x408] sm:$0xff] }
 0x1fe   : > { %1829 = vmatmul.mubr.f32.gmra.mrb[56].mxu1 %v1228_v18  ;;  %v1277_v18 = vld [vmem:[%s10527_s3 + $0x428] sm:$0xff] }
 0x1ff   : > { %6249 = vmatmul.mubr.f32.gmra.mrb[120].mxu0 %v1221_v19  ;;  %1833 = vmatprep.mubr.f32.mxu1 %v1232_v20  ;;  %v1311_v19 = vld [vmem:[%s10527_s3 + $0x538] sm:$0xff]  ;;  %v1314_v20 = vld [vmem:[%s10527_s3 + $0x550] sm:$0xff] }
 0x200   : > { %6251 = vmatprep.mubr.f32.mxu0 %v1224_v21  ;;  %v1276_v21 = vld [vmem:[%s10527_s3 + $0x420] sm:$0xff] }
 0x202   : > { %1834 = vmatmul.mubr.f32.gmra.mrb[58].mxu1 %v1231_v22  ;;  %v1280_v22 = vld [vmem:[%s10527_s3 + $0x440] sm:$0xff] }
 0x203   : > { %6252 = vmatmul.mubr.f32.gmra.mrb[122].mxu0 %v1227_v23  ;;  %1838 = vmatprep.mubr.f32.mxu1 %v1235_v26  ;;  %v1317_v23 = vld [vmem:[%s10527_s3 + $0x568] sm:$0xff]  ;;  %v1320_v26 = vld [vmem:[%s10527_s3 + $0x580] sm:$0xff] }
 0x204   : > { %6254 = vmatprep.mubr.f32.mxu0 %v1230_v30  ;;  %v1279_v30 = vld [vmem:[%s10527_s3 + $0x438] sm:$0xff] }
 0x206   : > { %1839 = vmatmul.mubr.f32.gmra.mrb[60].mxu1 %v1234_v31  ;;  %v1283_v31 = vld [vmem:[%s10527_s3 + $0x458] sm:$0xff] }
 0x207   : > { %6255 = vmatmul.mubr.f32.gmra.mrb[124].mxu0 %v1233_v32  ;;  %1843 = vmatprep.mubr.f32.mxu1 %v1238_v33  ;;  %v1323_v32 = vld [vmem:[%s10527_s3 + $0x598] sm:$0xff]  ;;  %v1326_v33 = vld [vmem:[%s10527_s3 + $0x5b0] sm:$0xff] }
 0x208   : > { %6257 = vmatprep.mubr.f32.mxu0 %v1236_v34  ;;  %v1282_v34 = vld [vmem:[%s10527_s3 + $0x450] sm:$0xff] }
 0x20a   : > { %1844 = vmatmul.mubr.f32.gmra.mrb[62].mxu1 %v1237_v28  ;;  %v1286_v28 = vld [vmem:[%s10527_s3 + $0x470] sm:$0xff] }
 0x20b   : > { %6258 = vmatmul.mubr.f32.gmra.mrb[126].mxu0 %v1239_v35  ;;  %1848 = vmatprep.mubr.f32.mxu1 %v1241_v29  ;;  %v1329_v35 = vld [vmem:[%s10527_s3 + $0x5c8] sm:$0xff]  ;;  %v1332_v29 = vld [vmem:[%s10527_s3 + $0x5e0] sm:$0xff] }
 0x20c   : > { %6260 = vmatprep.mubr.f32.mxu0 %v1242_v36  ;;  %v1285_v36 = vld [vmem:[%s10527_s3 + $0x468] sm:$0xff] }
 0x20e   : > { %1849 = vmatmul.mubr.f32.gmra.mrb[64].mxu1 %v1240_v37  ;;  %v1289_v37 = vld [vmem:[%s10527_s3 + $0x488] sm:$0xff] }
 0x20f   : > { %6261 = vmatmul.mubr.f32.gmra.mrb[128].mxu0 %v1245_v38  ;;  %1853 = vmatprep.mubr.f32.mxu1 %v1244_v39  ;;  %v1335_v38 = vld [vmem:[%s10527_s3 + $0x5f8] sm:$0xff]  ;;  %v1338_v39 = vld [vmem:[%s10527_s3 + $0x610] sm:$0xff] }
 0x210   : > { %6263 = vmatprep.mubr.f32.mxu0 %v1248_v41  ;;  %v1288_v41 = vld [vmem:[%s10527_s3 + $0x480] sm:$0xff] }
 0x212   : > { %1854 = vmatmul.mubr.f32.gmra.mrb[66].mxu1 %v1243_v40  ;;  %v1292_v40 = vld [vmem:[%s10527_s3 + $0x4a0] sm:$0xff] }
 0x213   : > { %1858 = vmatprep.mubr.f32.mxu1 %v1247_v42  ;;  %6264 = vmatmul.mubr.f32.gmra.mrb[130].mxu0 %v1251_v43  ;;  %v1341_v42 = vld [vmem:[%s10527_s3 + $0x628] sm:$0xff]  ;;  %v1344_v43 = vld [vmem:[%s10527_s3 + $0x640] sm:$0xff] }
 0x214   : > { %6266 = vmatprep.mubr.f32.mxu0 %v1254_v44  ;;  %v1291_v44 = vld [vmem:[%s10527_s3 + $0x498] sm:$0xff] }
 0x216   : > { %1859 = vmatmul.mubr.f32.gmra.mrb[68].mxu1 %v1246_v45  ;;  %v1295_v45 = vld [vmem:[%s10527_s3 + $0x4b8] sm:$0xff] }
 0x217   : > { %1863 = vmatprep.mubr.f32.mxu1 %v1250_v46  ;;  %6267 = vmatmul.mubr.f32.gmra.mrb[132].mxu0 %v1257_v47  ;;  %v1347_v46 = vld [vmem:[%s10527_s3 + $0x658] sm:$0xff]  ;;  %v1350_v47 = vld [vmem:[%s10527_s3 + $0x670] sm:$0xff] }
 0x218   : > { %6269 = vmatprep.mubr.f32.mxu0 %v1260_v48  ;;  %v1294_v48 = vld [vmem:[%s10527_s3 + $0x4b0] sm:$0xff] }
 0x21a   : > { %1864 = vmatmul.mubr.f32.gmra.mrb[70].mxu1 %v1249_v49  ;;  %v1298_v49 = vld [vmem:[%s10527_s3 + $0x4d0] sm:$0xff] }
 0x21b   : > { %1868 = vmatprep.mubr.f32.mxu1 %v1253_v50  ;;  %6270 = vmatmul.mubr.f32.gmra.mrb[134].mxu0 %v1263_v51  ;;  %v1353_v50 = vld [vmem:[%s10527_s3 + $0x688] sm:$0xff]  ;;  %v1356_v51 = vld [vmem:[%s10527_s3 + $0x6a0] sm:$0xff] }
 0x21c   : > { %6272 = vmatprep.mubr.f32.mxu0 %v1266_v52  ;;  %v1297_v52 = vld [vmem:[%s10527_s3 + $0x4c8] sm:$0xff] }
 0x21e   : > { %1869 = vmatmul.mubr.f32.gmra.mrb[72].mxu1 %v1252_v53  ;;  %v1301_v53 = vld [vmem:[%s10527_s3 + $0x4e8] sm:$0xff] }
 0x21f   : > { %1873 = vmatprep.mubr.f32.mxu1 %v1256_v54  ;;  %6273 = vmatmul.mubr.f32.gmra.mrb[136].mxu0 %v1269_v55  ;;  %v1359_v54 = vld [vmem:[%s10527_s3 + $0x6b8] sm:$0xff]  ;;  %v1362_v55 = vld [vmem:[%s10527_s3 + $0x6d0] sm:$0xff] }
 0x220   : > { %6275 = vmatprep.mubr.f32.mxu0 %v1272_v56  ;;  %v1300_v56 = vld [vmem:[%s10527_s3 + $0x4e0] sm:$0xff] }
 0x222   : > { %1874 = vmatmul.mubr.f32.gmra.mrb[74].mxu1 %v1255_v57  ;;  %v1304_v57 = vld [vmem:[%s10527_s3 + $0x500] sm:$0xff] }
 0x223   : > { %1878 = vmatprep.mubr.f32.mxu1 %v1259_v58  ;;  %6276 = vmatmul.mubr.f32.gmra.mrb[138].mxu0 %v1275_v59  ;;  %v1365_v58 = vld [vmem:[%s10527_s3 + $0x6e8] sm:$0xff]  ;;  %v1368_v59 = vld [vmem:[%s10527_s3 + $0x700] sm:$0xff] }
 0x224   : > { %6278 = vmatprep.mubr.f32.mxu0 %v1278_v60  ;;  %v1303_v60 = vld [vmem:[%s10527_s3 + $0x4f8] sm:$0xff] }
 0x226   : > { %1879 = vmatmul.mubr.f32.gmra.mrb[76].mxu1 %v1258_v61  ;;  %v1307_v61 = vld [vmem:[%s10527_s3 + $0x518] sm:$0xff] }
 0x227   : > { %1883 = vmatprep.mubr.f32.mxu1 %v1262_v62  ;;  %6279 = vmatmul.mubr.f32.gmra.mrb[140].mxu0 %v1281_v63  ;;  %v1371_v62 = vld [vmem:[%s10527_s3 + $0x718] sm:$0xff] }
 0x228   : > { %6281 = vmatprep.mubr.f32.mxu0 %v1284_v0  ;;  %v1374_v0 = vld [vmem:[%s10527_s3 + $0x730] sm:$0xff] }
 0x22a   : > { %1884 = vmatmul.mubr.f32.gmra.mrb[78].mxu1 %v1261_v1 }
 0x22b   : > { %1888 = vmatprep.mubr.f32.mxu1 %v1265_v2  ;;  %6282 = vmatmul.mubr.f32.gmra.mrb[142].mxu0 %v1287_v3  ;;  %v1306_v2 = vld [vmem:[%s10527_s3 + $0x510] sm:$0xff] }
 0x22c   : > { %6284 = vmatprep.mubr.f32.mxu0 %v1290_v4  ;;  %v1310_v3 = vld [vmem:[%s10527_s3 + $0x530] sm:$0xff]  ;;  %v1377_v4 = vld [vmem:[%s10527_s3 + $0x748] sm:$0xff] }
 0x22e   : > { %1889 = vmatmul.mubr.f32.gmra.mrb[80].mxu1 %v1264_v5 }
 0x22f   : > { %1893 = vmatprep.mubr.f32.mxu1 %v1268_v6  ;;  %6285 = vmatmul.mubr.f32.gmra.mrb[144].mxu0 %v1293_v7  ;;  %v1380_v6 = vld [vmem:[%s10527_s3 + $0x760] sm:$0xff] }
 0x230   : > { %6287 = vmatprep.mubr.f32.mxu0 %v1296_v8  ;;  %v1309_v8 = vld [vmem:[%s10527_s3 + $0x528] sm:$0xff] }
 0x232   : > { %1894 = vmatmul.mubr.f32.gmra.mrb[82].mxu1 %v1267_v9  ;;  %v1313_v9 = vld [vmem:[%s10527_s3 + $0x548] sm:$0xff] }
 0x233   : > { %1898 = vmatprep.mubr.f32.mxu1 %v1271_v10  ;;  %6288 = vmatmul.mubr.f32.gmra.mrb[146].mxu0 %v1299_v11  ;;  %v1383_v10 = vld [vmem:[%s10527_s3 + $0x778] sm:$0xff] }
 0x234   : > { %6290 = vmatprep.mubr.f32.mxu0 %v1302_v12  ;;  %v1386_v12 = vld [vmem:[%s10527_s3 + $0x790] sm:$0xff] }
 0x236   : > { %1899 = vmatmul.mubr.f32.gmra.mrb[84].mxu1 %v1270_v13 }
 0x237   : > { %1903 = vmatprep.mubr.f32.mxu1 %v1274_v14  ;;  %6291 = vmatmul.mubr.f32.gmra.mrb[148].mxu0 %v1305_v15  ;;  %v1312_v14 = vld [vmem:[%s10527_s3 + $0x540] sm:$0xff] }
 0x238   : > { %6293 = vmatprep.mubr.f32.mxu0 %v1308_v16  ;;  %v1316_v15 = vld [vmem:[%s10527_s3 + $0x560] sm:$0xff]  ;;  %v1389_v16 = vld [vmem:[%s10527_s3 + $0x7a8] sm:$0xff] }
 0x23a   : > { %1904 = vmatmul.mubr.f32.gmra.mrb[86].mxu1 %v1273_v17 }
 0x23b   : > { %1908 = vmatprep.mubr.f32.mxu1 %v1277_v18  ;;  %6294 = vmatmul.mubr.f32.gmra.mrb[150].mxu0 %v1311_v19  ;;  %v1392_v18 = vld [vmem:[%s10527_s3 + $0x7c0] sm:$0xff] }
 0x23c   : > { %6296 = vmatprep.mubr.f32.mxu0 %v1314_v20  ;;  %v1315_v20 = vld [vmem:[%s10527_s3 + $0x558] sm:$0xff] }
 0x23e   : > { %1909 = vmatmul.mubr.f32.gmra.mrb[88].mxu1 %v1276_v21  ;;  %v1319_v21 = vld [vmem:[%s10527_s3 + $0x578] sm:$0xff] }
 0x23f   : > { %1913 = vmatprep.mubr.f32.mxu1 %v1280_v22  ;;  %6297 = vmatmul.mubr.f32.gmra.mrb[152].mxu0 %v1317_v23  ;;  %v1395_v22 = vld [vmem:[%s10527_s3 + $0x7d8] sm:$0xff] }
 0x240   : > { %6299 = vmatprep.mubr.f32.mxu0 %v1320_v26  ;;  %v1398_v26 = vld [vmem:[%s10527_s3 + $0x7f0] sm:$0xff] }
 0x242   : > { %1914 = vmatmul.mubr.f32.gmra.mrb[90].mxu1 %v1279_v30 }
 0x243   : > { %1918 = vmatprep.mubr.f32.mxu1 %v1283_v31  ;;  %6300 = vmatmul.mubr.f32.gmra.mrb[154].mxu0 %v1323_v32  ;;  %v1318_v31 = vld [vmem:[%s10527_s3 + $0x570] sm:$0xff] }
 0x244   : > { %6302 = vmatprep.mubr.f32.mxu0 %v1326_v33  ;;  %v1322_v32 = vld [vmem:[%s10527_s3 + $0x590] sm:$0xff]  ;;  %v1401_v33 = vld [vmem:[%s10527_s3 + $0x808] sm:$0xff] }
 0x246   : > { %1919 = vmatmul.mubr.f32.gmra.mrb[92].mxu1 %v1282_v34 }
 0x247   : > { %1923 = vmatprep.mubr.f32.mxu1 %v1286_v28  ;;  %6303 = vmatmul.mubr.f32.gmra.mrb[156].mxu0 %v1329_v35  ;;  %v1404_v28 = vld [vmem:[%s10527_s3 + $0x820] sm:$0xff] }
 0x248   : > { %6305 = vmatprep.mubr.f32.mxu0 %v1332_v29  ;;  %v1321_v29 = vld [vmem:[%s10527_s3 + $0x588] sm:$0xff] }
 0x24a   : > { %1924 = vmatmul.mubr.f32.gmra.mrb[94].mxu1 %v1285_v36  ;;  %v1325_v36 = vld [vmem:[%s10527_s3 + $0x5a8] sm:$0xff] }
 0x24b   : > { %1928 = vmatprep.mubr.f32.mxu1 %v1289_v37  ;;  %6306 = vmatmul.mubr.f32.gmra.mrb[158].mxu0 %v1335_v38  ;;  %v1407_v37 = vld [vmem:[%s10527_s3 + $0x838] sm:$0xff] }
 0x24c   : > { %6308 = vmatprep.mubr.f32.mxu0 %v1338_v39  ;;  %v1410_v39 = vld [vmem:[%s10527_s3 + $0x850] sm:$0xff] }
 0x24e   : > { %1929 = vmatmul.mubr.f32.gmra.mrb[96].mxu1 %v1288_v41 }
 0x24f   : > { %1933 = vmatprep.mubr.f32.mxu1 %v1292_v40  ;;  %6309 = vmatmul.mubr.f32.gmra.mrb[160].mxu0 %v1341_v42  ;;  %v1324_v40 = vld [vmem:[%s10527_s3 + $0x5a0] sm:$0xff] }
 0x250   : > { %6311 = vmatprep.mubr.f32.mxu0 %v1344_v43  ;;  %v1328_v42 = vld [vmem:[%s10527_s3 + $0x5c0] sm:$0xff]  ;;  %v1413_v43 = vld [vmem:[%s10527_s3 + $0x868] sm:$0xff] }
 0x252   : > { %1934 = vmatmul.mubr.f32.gmra.mrb[98].mxu1 %v1291_v44 }
 0x253   : > { %1938 = vmatprep.mubr.f32.mxu1 %v1295_v45  ;;  %6312 = vmatmul.mubr.f32.gmra.mrb[162].mxu0 %v1347_v46  ;;  %v1416_v45 = vld [vmem:[%s10527_s3 + $0x880] sm:$0xff] }
 0x254   : > { %6314 = vmatprep.mubr.f32.mxu0 %v1350_v47  ;;  %v1327_v47 = vld [vmem:[%s10527_s3 + $0x5b8] sm:$0xff] }
 0x256   : > { %1939 = vmatmul.mubr.f32.gmra.mrb[100].mxu1 %v1294_v48  ;;  %v1331_v48 = vld [vmem:[%s10527_s3 + $0x5d8] sm:$0xff] }
 0x257   : > { %1943 = vmatprep.mubr.f32.mxu1 %v1298_v49  ;;  %6315 = vmatmul.mubr.f32.gmra.mrb[164].mxu0 %v1353_v50  ;;  %v1419_v49 = vld [vmem:[%s10527_s3 + $0x898] sm:$0xff] }
 0x258   : > { %6317 = vmatprep.mubr.f32.mxu0 %v1356_v51  ;;  %v1422_v51 = vld [vmem:[%s10527_s3 + $0x8b0] sm:$0xff] }
 0x25a   : > { %1944 = vmatmul.mubr.f32.gmra.mrb[102].mxu1 %v1297_v52 }
 0x25b   : > { %1948 = vmatprep.mubr.f32.mxu1 %v1301_v53  ;;  %6318 = vmatmul.mubr.f32.gmra.mrb[166].mxu0 %v1359_v54  ;;  %v1330_v53 = vld [vmem:[%s10527_s3 + $0x5d0] sm:$0xff] }
 0x25c   : > { %6320 = vmatprep.mubr.f32.mxu0 %v1362_v55  ;;  %v1334_v54 = vld [vmem:[%s10527_s3 + $0x5f0] sm:$0xff]  ;;  %v1425_v55 = vld [vmem:[%s10527_s3 + $0x8c8] sm:$0xff] }
 0x25e   : > { %1949 = vmatmul.mubr.f32.gmra.mrb[104].mxu1 %v1300_v56 }
 0x25f   : > { %1953 = vmatprep.mubr.f32.mxu1 %v1304_v57  ;;  %6321 = vmatmul.mubr.f32.gmra.mrb[168].mxu0 %v1365_v58  ;;  %v1428_v57 = vld [vmem:[%s10527_s3 + $0x8e0] sm:$0xff] }
 0x260   : > { %6323 = vmatprep.mubr.f32.mxu0 %v1368_v59  ;;  %v1333_v59 = vld [vmem:[%s10527_s3 + $0x5e8] sm:$0xff] }
 0x261   : > { %v8229_v63 = vpop.f32.mrb[0].mxu1 }
 0x262   : > { %v1692_v1 = vpop.f32.mrb[1].mxu1  ;;  %1954 = vmatmul.mubr.f32.gmra.mrb[106].mxu1 %v1303_v60  ;;  %v1337_v60 = vld [vmem:[%s10527_s3 + $0x608] sm:$0xff] }
 0x263   : > { %1958 = vmatprep.mubr.f32.mxu1 %v1307_v61  ;;  %6324 = vmatmul.mubr.f32.gmra.mrb[170].mxu0 %v1371_v62  ;;  %v1431_v61 = vld [vmem:[%s10527_s3 + $0x8f8] sm:$0xff]  ;;  %v1434_v1 = vld [vmem:[%s10527_s3 + $0x910] sm:$0xff] }
 0x264   : > { %6326 = vmatprep.mubr.f32.mxu0 %v1374_v0 }
 0x265   : > { %v8243_v5 = vpop.f32.mrb[2].mxu1 }
 0x266   : > { %v1697_v7 = vpop.f32.mrb[3].mxu1  ;;  %1959 = vmatmul.mubr.f32.gmra.mrb[108].mxu1 %v1306_v2  ;;  %v1336_v2 = vld [vmem:[%s10527_s3 + $0x600] sm:$0xff] }
 0x267   : > { %1963 = vmatprep.mubr.f32.mxu1 %v1310_v3  ;;  %6327 = vmatmul.mubr.f32.gmra.mrb[172].mxu0 %v1377_v4  ;;  %v1340_v3 = vld [vmem:[%s10527_s3 + $0x620] sm:$0xff]  ;;  %v1437_v4 = vld [vmem:[%s10527_s3 + $0x928] sm:$0xff] }
 0x268   : > { %6329 = vmatprep.mubr.f32.mxu0 %v1380_v6 }
 0x269   : > { %v8257_v11 = vpop.f32.mrb[4].mxu1 }
 0x26a   : > { %v1702_v13 = vpop.f32.mrb[5].mxu1  ;;  %1964 = vmatmul.mubr.f32.gmra.mrb[110].mxu1 %v1309_v8  ;;  %v1339_v8 = vld [vmem:[%s10527_s3 + $0x618] sm:$0xff] }
 0x26b   : > { %1968 = vmatprep.mubr.f32.mxu1 %v1313_v9  ;;  %6330 = vmatmul.mubr.f32.gmra.mrb[174].mxu0 %v1383_v10  ;;  %v1343_v9 = vld [vmem:[%s10527_s3 + $0x638] sm:$0xff]  ;;  %v1440_v13 = vld [vmem:[%s10527_s3 + $0x940] sm:$0xff] }
 0x26c   : > { %6332 = vmatprep.mubr.f32.mxu0 %v1386_v12 }
 0x26d   : > { %v8271_v17 = vpop.f32.mrb[6].mxu1 }
 0x26e   : > { %v1707_v19 = vpop.f32.mrb[7].mxu1  ;;  %1969 = vmatmul.mubr.f32.gmra.mrb[112].mxu1 %v1312_v14  ;;  %v1443_v14 = vld [vmem:[%s10527_s3 + $0x958] sm:$0xff] }
 0x26f   : > { %1973 = vmatprep.mubr.f32.mxu1 %v1316_v15  ;;  %6333 = vmatmul.mubr.f32.gmra.mrb[176].mxu0 %v1389_v16  ;;  %v1342_v15 = vld [vmem:[%s10527_s3 + $0x630] sm:$0xff] }
 0x270   : > { %6335 = vmatprep.mubr.f32.mxu0 %v1392_v18  ;;  %v1346_v16 = vld [vmem:[%s10527_s3 + $0x650] sm:$0xff] }
 0x271   : > { %v8285_v23 = vpop.f32.mrb[8].mxu1 }
 0x272   : > { %v1712_v30 = vpop.f32.mrb[9].mxu1  ;;  %1974 = vmatmul.mubr.f32.gmra.mrb[114].mxu1 %v1315_v20  ;;  %v1345_v20 = vld [vmem:[%s10527_s3 + $0x648] sm:$0xff] }
 0x273   : > { %1978 = vmatprep.mubr.f32.mxu1 %v1319_v21  ;;  %6336 = vmatmul.mubr.f32.gmra.mrb[178].mxu0 %v1395_v22  ;;  %v1349_v21 = vld [vmem:[%s10527_s3 + $0x668] sm:$0xff]  ;;  %v1446_v30 = vld [vmem:[%s10527_s3 + $0x970] sm:$0xff] }
 0x274   : > { %6338 = vmatprep.mubr.f32.mxu0 %v1398_v26 }
 0x275   : > { %v8299_v34 = vpop.f32.mrb[10].mxu1 }
 0x276   : > { %v1717_v35 = vpop.f32.mrb[11].mxu1  ;;  %1979 = vmatmul.mubr.f32.gmra.mrb[116].mxu1 %v1318_v31  ;;  %v1449_v31 = vld [vmem:[%s10527_s3 + $0x988] sm:$0xff] }
 0x277   : > { %1983 = vmatprep.mubr.f32.mxu1 %v1322_v32  ;;  %6339 = vmatmul.mubr.f32.gmra.mrb[180].mxu0 %v1401_v33  ;;  %v1348_v32 = vld [vmem:[%s10527_s3 + $0x660] sm:$0xff] }
 0x278   : > { %6341 = vmatprep.mubr.f32.mxu0 %v1404_v28  ;;  %v1352_v33 = vld [vmem:[%s10527_s3 + $0x680] sm:$0xff] }
 0x279   : > { %v8313_v38 = vpop.f32.mrb[12].mxu1 }
 0x27a   : > { %v1722_v41 = vpop.f32.mrb[13].mxu1  ;;  %1984 = vmatmul.mubr.f32.gmra.mrb[118].mxu1 %v1321_v29  ;;  %v1351_v29 = vld [vmem:[%s10527_s3 + $0x678] sm:$0xff] }
 0x27b   : > { %1988 = vmatprep.mubr.f32.mxu1 %v1325_v36  ;;  %6342 = vmatmul.mubr.f32.gmra.mrb[182].mxu0 %v1407_v37  ;;  %v1355_v36 = vld [vmem:[%s10527_s3 + $0x698] sm:$0xff] }
 0x27c   : > { %6344 = vmatprep.mubr.f32.mxu0 %v1410_v39 }
 0x27d   : > { %v8327_v44 = vpop.f32.mrb[14].mxu1 }
 0x27e   : > { %v1727_v46 = vpop.f32.mrb[15].mxu1  ;;  %1989 = vmatmul.mubr.f32.gmra.mrb[120].mxu1 %v1324_v40  ;;  %v1452_v40 = vld [vmem:[%s10527_s3 + $0x9a0] sm:$0xff] }
 0x27f   : > { %1993 = vmatprep.mubr.f32.mxu1 %v1328_v42  ;;  %6345 = vmatmul.mubr.f32.gmra.mrb[184].mxu0 %v1413_v43  ;;  %v1455_v42 = vld [vmem:[%s10527_s3 + $0x9b8] sm:$0xff]  ;;  %v1354_v46 = vld [vmem:[%s10527_s3 + $0x690] sm:$0xff] }
 0x280   : > { %6347 = vmatprep.mubr.f32.mxu0 %v1416_v45 }
 0x281   : > { %v8341_v50 = vpop.f32.mrb[16].mxu1 }
 0x282   : > { %v1732_v52 = vpop.f32.mrb[17].mxu1  ;;  %1994 = vmatmul.mubr.f32.gmra.mrb[122].mxu1 %v1327_v47 }
 0x283   : > { %1998 = vmatprep.mubr.f32.mxu1 %v1331_v48  ;;  %6348 = vmatmul.mubr.f32.gmra.mrb[186].mxu0 %v1419_v49  ;;  %v1358_v48 = vld [vmem:[%s10527_s3 + $0x6b0] sm:$0xff] }
 0x284   : > { %6350 = vmatprep.mubr.f32.mxu0 %v1422_v51 }
 0x285   : > { %v8355_v56 = vpop.f32.mrb[18].mxu1 }
 0x286   : > { %v1737_v58 = vpop.f32.mrb[19].mxu1  ;;  %1999 = vmatmul.mubr.f32.gmra.mrb[124].mxu1 %v1330_v53 }
 0x287   : > { %2003 = vmatprep.mubr.f32.mxu1 %v1334_v54  ;;  %6351 = vmatmul.mubr.f32.gmra.mrb[188].mxu0 %v1425_v55  ;;  %v1361_v55 = vld [vmem:[%s10527_s3 + $0x6c8] sm:$0xff] }
 0x288   : > { %6353 = vmatprep.mubr.f32.mxu0 %v1428_v57 }
 0x289   : > { %v8369_v62 = vpop.f32.mrb[20].mxu1 }
 0x28a   : > { %v1742_v0 = vpop.f32.mrb[21].mxu1  ;;  %2004 = vmatmul.mubr.f32.gmra.mrb[126].mxu1 %v1333_v59 }
 0x28b   : > { %2008 = vmatprep.mubr.f32.mxu1 %v1337_v60  ;;  %6354 = vmatmul.mubr.f32.gmra.mrb[190].mxu0 %v1431_v61  ;;  %v1461_v60 = vld [vmem:[%s10527_s3 + $0x9e8] sm:$0xff]  ;;  %v1360_v0 = vld [vmem:[%s10527_s3 + $0x6c0] sm:$0xff] }
 0x28c   : > { %6356 = vmatprep.mubr.f32.mxu0 %v1434_v1 }
 0x28d   : > { %v8383_v6 = vpop.f32.mrb[22].mxu1 }
 0x28e   : > { %v1747_v7 = vpop.f32.mrb[23].mxu1  ;;  %2009 = vmatmul.mubr.f32.gmra.mrb[128].mxu1 %v1336_v2  ;;  %v1364_v2 = vld [vmem:[%s10527_s3 + $0x6e0] sm:$0xff] }
 0x28f   : > { %2013 = vmatprep.mubr.f32.mxu1 %v1340_v3  ;;  %6357 = vmatmul.mubr.f32.gmra.mrb[192].mxu0 %v1437_v4 }
 0x290   : > { %6359 = vmatprep.mubr.f32.mxu0 %v1440_v13 }
 0x291   : > { %v8391_v10 = vpop.f32.mrb[24].mxu1 }
 0x292   : > { %v1752_v12 = vpop.f32.mrb[25].mxu1  ;;  %2014 = vmatmul.mubr.f32.gmra.mrb[130].mxu1 %v1339_v8 }
 0x293   : > { %2018 = vmatprep.mubr.f32.mxu1 %v1343_v9  ;;  %6360 = vmatmul.mubr.f32.gmra.mrb[194].mxu0 %v1443_v14  ;;  %v1367_v12 = vld [vmem:[%s10527_s3 + $0x6f8] sm:$0xff] }
 0x294   : > { %6362 = vmatprep.mubr.f32.mxu0 %v1446_v30 }
 0x295   : > { %v8405_v18 = vpop.f32.mrb[26].mxu1 }
 0x296   : > { %v1757_v19 = vpop.f32.mrb[27].mxu1  ;;  %2019 = vmatmul.mubr.f32.gmra.mrb[132].mxu1 %v1342_v15 }
 0x297   : > { %2023 = vmatprep.mubr.f32.mxu1 %v1346_v16  ;;  %6363 = vmatmul.mubr.f32.gmra.mrb[196].mxu0 %v1449_v31  ;;  %v1467_v16 = vld [vmem:[%s10527_s3 + $0xa18] sm:$0xff] }
 0x298   : > { %6365 = vmatprep.mubr.f32.mxu0 %v1452_v40  ;;  %v1473_v40 = vld [vmem:[%s10527_s3 + $0xa48] sm:$0xff] }
 0x299   : > { %v8413_v22 = vpop.f32.mrb[28].mxu1 }
 0x29a   : > { %v1762_v26 = vpop.f32.mrb[29].mxu1  ;;  %2024 = vmatmul.mubr.f32.gmra.mrb[134].mxu1 %v1345_v20  ;;  %v1366_v20 = vld [vmem:[%s10527_s3 + $0x6f0] sm:$0xff] }
 0x29b   : > { %2028 = vmatprep.mubr.f32.mxu1 %v1349_v21  ;;  %6366 = vmatmul.mubr.f32.gmra.mrb[198].mxu0 %v1455_v42  ;;  %v1370_v26 = vld [vmem:[%s10527_s3 + $0x710] sm:$0xff] }
 0x29d   : > { %v8427_v28 = vpop.f32.mrb[30].mxu1 }
 0x29e   : > { %v1767_v35 = vpop.f32.mrb[31].mxu1  ;;  %2029 = vmatmul.mubr.f32.gmra.mrb[136].mxu1 %v1348_v32 }
 0x29f   : > { %2033 = vmatprep.mubr.f32.mxu1 %v1352_v33 }
 0x2a1   : > { %v8435_v37 = vpop.f32.mrb[32].mxu1 }
 0x2a2   : > { %v1772_v39 = vpop.f32.mrb[33].mxu1  ;;  %2034 = vmatmul.mubr.f32.gmra.mrb[138].mxu1 %v1351_v29  ;;  %v6214_v41 = vpop.f32.mrb[96].mxu0  ;;  %v1373_v29 = vld [vmem:[%s10527_s3 + $0x728] sm:$0xff] }
 0x2a3   : > { %v8444_v43 = vadd.f32 %v6214_v41, %v8243_v5  ;;  %v2555_v45 = vpop.f32.mrb[97].mxu0  ;;  %2038 = vmatprep.mubr.f32.mxu1 %v1355_v36 }
 0x2a4   : > { %v8450_v47 = vadd.f32 %v2555_v45, %v8229_v63  ;;  %v1357_v63 = vld [vmem:[%s10527_s3 + $0x6a8] sm:$0xff]  ;;  %v1372_v45 = vld [vmem:[%s10527_s3 + $0x720] sm:$0xff] }
 0x2a5   : > { %v8455_v49 = vpop.f32.mrb[34].mxu1 }
 0x2a6   : > { %v1777_v51 = vpop.f32.mrb[35].mxu1  ;;  %2039 = vmatmul.mubr.f32.gmra.mrb[140].mxu1 %v1354_v46  ;;  %v6217_v5 = vpop.f32.mrb[98].mxu0 }
 0x2a7   : > { %v8458_v52 = vadd.f32 %v6217_v5, %v8271_v17  ;;  %v2565_v53 = vpop.f32.mrb[99].mxu0  ;;  %2043 = vmatprep.mubr.f32.mxu1 %v1358_v48  ;;  %v1458_v17 = vld [vmem:[%s10527_s3 + $0x9d0] sm:$0xff]  ;;  %v1376_v48 = vld [vmem:[%s10527_s3 + $0x740] sm:$0xff] }
 0x2a8   : > { %v8464_v54 = vadd.f32 %v2565_v53, %v8257_v11  ;;  %6368 = vmatprep.mubr.f32.mxu0 %v1458_v17 }
 0x2a9   : > { %v8469_v57 = vpop.f32.mrb[36].mxu1  ;;  %6369 = vmatmul.mubr.f32.gmra.mrb[200].mxu0 %v1461_v60 }
 0x2aa   : > { %v1782_v58 = vpop.f32.mrb[37].mxu1  ;;  %2044 = vmatmul.mubr.f32.gmra.mrb[142].mxu1 %v1357_v63  ;;  %v6220_v59 = vpop.f32.mrb[100].mxu0 }
 0x2ab   : > { %v8478_v11 = vadd.f32 %v6220_v59, %v8299_v34  ;;  %v2575_v61 = vpop.f32.mrb[101].mxu0  ;;  %2048 = vmatprep.mubr.f32.mxu1 %v1361_v55  ;;  %v1375_v55 = vld [vmem:[%s10527_s3 + $0x738] sm:$0xff] }
 0x2ac   : > { %v8484_v1 = vadd.f32 %v2575_v61, %v8285_v23  ;;  %v1363_v23 = vld [vmem:[%s10527_s3 + $0x6d8] sm:$0xff] }
 0x2ad   : > { %v8489_v3 = vpop.f32.mrb[38].mxu1  ;;  %v1379_v58 = vld [vmem:[%s10527_s3 + $0x758] sm:$0xff] }
 0x2ae   : > { %v1787_v4 = vpop.f32.mrb[39].mxu1  ;;  %2049 = vmatmul.mubr.f32.gmra.mrb[144].mxu1 %v1360_v0  ;;  %v6223_v34 = vpop.f32.mrb[102].mxu0  ;;  %v1479_v61 = vld [vmem:[%s10527_s3 + $0xa78] sm:$0xff] }
 0x2af   : > { %v8492_v7 = vadd.f32 %v6223_v34, %v8327_v44  ;;  %v2585_v8 = vpop.f32.mrb[103].mxu0  ;;  %2053 = vmatprep.mubr.f32.mxu1 %v1364_v2  ;;  %v1464_v44 = vld [vmem:[%s10527_s3 + $0xa00] sm:$0xff]  ;;  %v1378_v2 = vld [vmem:[%s10527_s3 + $0x750] sm:$0xff] }
 0x2b0   : > { %v8498_v9 = vadd.f32 %v2585_v8, %v8313_v38  ;;  %6371 = vmatprep.mubr.f32.mxu0 %v1464_v44  ;;  %v1382_v34 = vld [vmem:[%s10527_s3 + $0x770] sm:$0xff]  ;;  %v1381_v44 = vld [vmem:[%s10527_s3 + $0x768] sm:$0xff] }
 0x2b1   : > { %v8503_v13 = vpop.f32.mrb[40].mxu1  ;;  %6372 = vmatmul.mubr.f32.gmra.mrb[202].mxu0 %v1467_v16 }
 0x2b2   : > { %v1792_v14 = vpop.f32.mrb[41].mxu1  ;;  %2054 = vmatmul.mubr.f32.gmra.mrb[146].mxu1 %v1363_v23  ;;  %v6226_v15 = vpop.f32.mrb[104].mxu0 }
 0x2b3   : > { %v8512_v38 = vadd.f32 %v6226_v15, %v8355_v56  ;;  %v2595_v19 = vpop.f32.mrb[105].mxu0  ;;  %2058 = vmatprep.mubr.f32.mxu1 %v1367_v12  ;;  %v1485_v14 = vld [vmem:[%s10527_s3 + $0xaa8] sm:$0xff] }
 0x2b4   : > { %v8518_v21 = vadd.f32 %v2595_v19, %v8341_v50  ;;  %v1369_v50 = vld [vmem:[%s10527_s3 + $0x708] sm:$0xff] }
 0x2b5   : > { %v8523_v30 = vpop.f32.mrb[42].mxu1  ;;  %v1385_v19 = vld [vmem:[%s10527_s3 + $0x788] sm:$0xff] }
 0x2b6   : > { %v1797_v31 = vpop.f32.mrb[43].mxu1  ;;  %2059 = vmatmul.mubr.f32.gmra.mrb[148].mxu1 %v1366_v20  ;;  %v6229_v56 = vpop.f32.mrb[106].mxu0 }
 0x2b7   : > { %v8526_v32 = vadd.f32 %v6229_v56, %v8383_v6  ;;  %v2605_v33 = vpop.f32.mrb[107].mxu0  ;;  %2063 = vmatprep.mubr.f32.mxu1 %v1370_v26  ;;  %v1470_v6 = vld [vmem:[%s10527_s3 + $0xa30] sm:$0xff]  ;;  %v1491_v56 = vld [vmem:[%s10527_s3 + $0xad8] sm:$0xff] }
 0x2b8   : > { %v8532_v35 = vadd.f32 %v2605_v33, %v8369_v62  ;;  %6374 = vmatprep.mubr.f32.mxu0 %v1470_v6 }
 0x2b9   : > { %v8537_v36 = vpop.f32.mrb[44].mxu1  ;;  %6375 = vmatmul.mubr.f32.gmra.mrb[204].mxu0 %v1473_v40 }
 0x2ba   : > { %v1802_v39 = vpop.f32.mrb[45].mxu1  ;;  %2064 = vmatmul.mubr.f32.gmra.mrb[150].mxu1 %v1369_v50  ;;  %v6232_v41 = vpop.f32.mrb[108].mxu0  ;;  %v1384_v50 = vld [vmem:[%s10527_s3 + $0x780] sm:$0xff] }
 0x2bb   : > { %v8546_v62 = vadd.f32 %v6232_v41, %v8405_v18  ;;  %v2615_v42 = vpop.f32.mrb[109].mxu0  ;;  %2068 = vmatprep.mubr.f32.mxu1 %v1373_v29  ;;  %v1388_v39 = vld [vmem:[%s10527_s3 + $0x7a0] sm:$0xff] }
 0x2bc   : > { %v8552_v46 = vadd.f32 %v2615_v42, %v8391_v10  ;;  %v1497_v42 = vld [vmem:[%s10527_s3 + $0xb08] sm:$0xff] }
 0x2bd   : > { %v1805_v51 = vpop.f32.mrb[46].mxu1 }
 0x2be   : > { %v1807_v5 = vpop.f32.mrb[47].mxu1  ;;  %2069 = vmatmul.mubr.f32.gmra.mrb[152].mxu1 %v1372_v45  ;;  %v6235_v18 = vpop.f32.mrb[110].mxu0 }
 0x2bf   : > { %v8558_v53 = vadd.f32 %v6235_v18, %v8427_v28  ;;  %v2625_v63 = vpop.f32.mrb[111].mxu0  ;;  %2073 = vmatprep.mubr.f32.mxu1 %v1376_v48  ;;  %v1476_v28 = vld [vmem:[%s10527_s3 + $0xa60] sm:$0xff]  ;;  %v1387_v48 = vld [vmem:[%s10527_s3 + $0x798] sm:$0xff] }
 0x2c0   : > { %v8564_v10 = vadd.f32 %v2625_v63, %v8413_v22  ;;  %6377 = vmatprep.mubr.f32.mxu0 %v1476_v28  ;;  %v1391_v18 = vld [vmem:[%s10527_s3 + $0x7b8] sm:$0xff] }
 0x2c1   : > { %v8569_v59 = vpop.f32.mrb[48].mxu1  ;;  %6378 = vmatmul.mubr.f32.gmra.mrb[206].mxu0 %v1479_v61  ;;  %v1503_v28 = vld [vmem:[%s10527_s3 + $0xb38] sm:$0xff] }
 0x2c2   : > { %v1812_v17 = vpop.f32.mrb[49].mxu1  ;;  %2074 = vmatmul.mubr.f32.gmra.mrb[154].mxu1 %v1375_v55  ;;  %v6238_v60 = vpop.f32.mrb[112].mxu0 }
 0x2c3   : > { %v8578_v22 = vadd.f32 %v6238_v60, %v8455_v49  ;;  %v2635_v0 = vpop.f32.mrb[113].mxu0  ;;  %2078 = vmatprep.mubr.f32.mxu1 %v1379_v58  ;;  %v1482_v49 = vld [vmem:[%s10527_s3 + $0xa90] sm:$0xff] }
 0x2c4   : > { %v8584_v4 = vadd.f32 %v2635_v0, %v8435_v37  ;;  %6380 = vmatprep.mubr.f32.mxu0 %v1482_v49  ;;  %v1390_v60 = vld [vmem:[%s10527_s3 + $0x7b0] sm:$0xff] }
 0x2c5   : > { %v1815_v8 = vpop.f32.mrb[50].mxu1  ;;  %6381 = vmatmul.mubr.f32.gmra.mrb[208].mxu0 %v1485_v14  ;;  %v1394_v0 = vld [vmem:[%s10527_s3 + $0x7d0] sm:$0xff]  ;;  %v1393_v14 = vld [vmem:[%s10527_s3 + $0x7c8] sm:$0xff] }
 0x2c6   : > { %v1817_v23 = vpop.f32.mrb[51].mxu1  ;;  %2079 = vmatmul.mubr.f32.gmra.mrb[156].mxu1 %v1378_v2  ;;  %v6241_v12 = vpop.f32.mrb[114].mxu0 }
 0x2c7   : > { %v8596_v37 = vadd.f32 %v6241_v12, %v8489_v3  ;;  %v2645_v15 = vpop.f32.mrb[115].mxu0  ;;  %2083 = vmatprep.mubr.f32.mxu1 %v1382_v34  ;;  %v1488_v3 = vld [vmem:[%s10527_s3 + $0xac0] sm:$0xff]  ;;  %v1506_v34 = vld [vmem:[%s10527_s3 + $0xb50] sm:$0xff]  ;;  %v1509_v23 = vld [vmem:[%s10527_s3 + $0xb68] sm:$0xff] }
 0x2c8   : > { %v8602_v16 = vadd.f32 %v2645_v15, %v8469_v57  ;;  %6383 = vmatprep.mubr.f32.mxu0 %v1488_v3  ;;  %v1512_v3 = vld [vmem:[%s10527_s3 + $0xb80] sm:$0xff] }
 0x2c9   : > { %v1820_v20 = vpop.f32.mrb[52].mxu1  ;;  %6384 = vmatmul.mubr.f32.gmra.mrb[210].mxu0 %v1491_v56  ;;  %v1515_v56 = vld [vmem:[%s10527_s3 + $0xb98] sm:$0xff] }
 0x2ca   : > { %v1822_v26 = vpop.f32.mrb[53].mxu1  ;;  %2084 = vmatmul.mubr.f32.gmra.mrb[158].mxu1 %v1381_v44  ;;  %v6244_v31 = vpop.f32.mrb[116].mxu0  ;;  %v1397_v44 = vld [vmem:[%s10527_s3 + $0x7e8] sm:$0xff] }
 0x2cb   : > { %v8614_v57 = vadd.f32 %v6244_v31, %v8523_v30  ;;  %v2655_v33 = vpop.f32.mrb[117].mxu0  ;;  %2088 = vmatprep.mubr.f32.mxu1 %v1385_v19  ;;  %v1494_v30 = vld [vmem:[%s10527_s3 + $0xaf0] sm:$0xff] }
 0x2cc   : > { %v8620_v29 = vadd.f32 %v2655_v33, %v8503_v13  ;;  %6386 = vmatprep.mubr.f32.mxu0 %v1494_v30 }
 0x2cd   : > { %10545 = vst [vmem:[#allocation3_spill] sm:$0xff] %v8614_v57  ;;  %v1825_v41 = vpop.f32.mrb[54].mxu1  ;;  %6387 = vmatmul.mubr.f32.gmra.mrb[212].mxu0 %v1497_v42 }
 0x2ce   : > { %10546 = vst [vmem:[#allocation4_spill] sm:$0xff] %v8620_v29  ;;  %v1827_v6 = vpop.f32.mrb[55].mxu1  ;;  %2089 = vmatmul.mubr.f32.gmra.mrb[160].mxu1 %v1384_v50  ;;  %v6247_v40 = vpop.f32.mrb[118].mxu0  ;;  %v1396_v50 = vld [vmem:[%s10527_s3 + $0x7e0] sm:$0xff] }
 0x2cf   : > { %v8631_v45 = vadd.f32 %v6247_v40, %v1805_v51  ;;  %v2665_v13 = vpop.f32.mrb[119].mxu0  ;;  %2093 = vmatprep.mubr.f32.mxu1 %v1388_v39  ;;  %v1500_v51 = vld [vmem:[%s10527_s3 + $0xb20] sm:$0xff]  ;;  %v1518_v6 = vld [vmem:[%s10527_s3 + $0xbb0] sm:$0xff] }
 0x2d0   : > { %v8637_v5 = vadd.f32 %v2665_v13, %v8537_v36  ;;  %6389 = vmatprep.mubr.f32.mxu0 %v1500_v51  ;;  %v1521_v13 = vld [vmem:[%s10527_s3 + $0xbc8] sm:$0xff] }
 0x2d1   : > { %10547 = vst [vmem:[#allocation5_spill] sm:$0xff] %v8631_v45  ;;  %v1830_v63 = vpop.f32.mrb[56].mxu1  ;;  %6390 = vmatmul.mubr.f32.gmra.mrb[214].mxu0 %v1503_v28  ;;  %v1524_v28 = vld [vmem:[%s10527_s3 + $0xbe0] sm:$0xff] }
 0x2d2   : > { %10548 = vst [vmem:[#allocation6_spill] sm:$0xff] %v8637_v5  ;;  %v1832_v55 = vpop.f32.mrb[57].mxu1  ;;  %2094 = vmatmul.mubr.f32.gmra.mrb[162].mxu1 %v1387_v48  ;;  %v6250_v58 = vpop.f32.mrb[120].mxu0  ;;  %6392 = vmatprep.mubr.f32.mxu0 %v1506_v34  ;;  %v1402_v34 = vld [vmem:[%s10527_s3 + $0x810] sm:$0xff] }
 0x2d3   : > { %v8648_v17 = vadd.f32 %v6250_v58, %v1815_v8  ;;  %v2675_v36 = vpop.f32.mrb[121].mxu0  ;;  %2098 = vmatprep.mubr.f32.mxu1 %v1391_v18  ;;  %v1403_v55 = vld [vmem:[%s10527_s3 + $0x818] sm:$0xff] }
 0x2d4   : > { %v8654_v61 = vadd.f32 %v2675_v36, %v8569_v59 }
 0x2d5   : > { %10549 = vst [vmem:[#allocation7_spill] sm:$0xff] %v8648_v17  ;;  %v1835_v2 = vpop.f32.mrb[58].mxu1  ;;  %6393 = vmatmul.mubr.f32.gmra.mrb[216].mxu0 %v1509_v23  ;;  %v1489_v17 = vld [vmem:[%s10527_s3 + $0xac8] sm:$0xff] }
 0x2d6   : > { %10550 = vst [vmem:[#allocation8_spill] sm:$0xff] %v8654_v61  ;;  %v1837_v8 = vpop.f32.mrb[59].mxu1  ;;  %2099 = vmatmul.mubr.f32.gmra.mrb[164].mxu1 %v1390_v60  ;;  %v6253_v49 = vpop.f32.mrb[122].mxu0  ;;  %6395 = vmatprep.mubr.f32.mxu0 %v1512_v3  ;;  %v1533_v3 = vld [vmem:[%s10527_s3 + $0xc28] sm:$0xff] }
 0x2d7   : > { %v8665_v12 = vadd.f32 %v6253_v49, %v1825_v41  ;;  %v2685_v59 = vpop.f32.mrb[123].mxu0  ;;  %2103 = vmatprep.mubr.f32.mxu1 %v1394_v0  ;;  %v1400_v41 = vld [vmem:[%s10527_s3 + $0x800] sm:$0xff]  ;;  %v1527_v0 = vld [vmem:[%s10527_s3 + $0xbf8] sm:$0xff]  ;;  %v1406_v49 = vld [vmem:[%s10527_s3 + $0x830] sm:$0xff] }
 0x2d8   : > { %v8670_v15 = vadd.f32 %v2685_v59, %v1820_v20  ;;  %v1530_v59 = vld [vmem:[%s10527_s3 + $0xc10] sm:$0xff] }
 0x2d9   : > { %10551 = vst [vmem:[#allocation9_spill] sm:$0xff] %v8665_v12  ;;  %v1840_v19 = vpop.f32.mrb[60].mxu1  ;;  %6396 = vmatmul.mubr.f32.gmra.mrb[218].mxu0 %v1515_v56  ;;  %v1409_v56 = vld [vmem:[%s10527_s3 + $0x848] sm:$0xff] }
 0x2da   : > { %10552 = vst [vmem:[#allocation10_spill] sm:$0xff] %v8670_v15  ;;  %v1842_v26 = vpop.f32.mrb[61].mxu1  ;;  %2104 = vmatmul.mubr.f32.gmra.mrb[166].mxu1 %v1393_v14  ;;  %v6256_v31 = vpop.f32.mrb[124].mxu0  ;;  %6398 = vmatprep.mubr.f32.mxu0 %v1518_v6 }
 0x2db   : > { %v8681_v33 = vadd.f32 %v6256_v31, %v1835_v2  ;;  %v2695_v20 = vpop.f32.mrb[125].mxu0  ;;  %2108 = vmatprep.mubr.f32.mxu1 %v1397_v44  ;;  %v1405_v31 = vld [vmem:[%s10527_s3 + $0x828] sm:$0xff] }
 0x2dc   : > { %v8686_v39 = vadd.f32 %v2695_v20, %v1830_v63  ;;  %v1399_v63 = vld [vmem:[%s10527_s3 + $0x7f8] sm:$0xff] }
 0x2dd   : > { %10553 = vst [vmem:[#allocation11_spill] sm:$0xff] %v8681_v33  ;;  %v1845_v30 = vpop.f32.mrb[62].mxu1  ;;  %6399 = vmatmul.mubr.f32.gmra.mrb[220].mxu0 %v1521_v13 }
 0x2de   : > { %10554 = vst [vmem:[#allocation12_spill] sm:$0xff] %v8686_v39  ;;  %v1847_v40 = vpop.f32.mrb[63].mxu1  ;;  %2109 = vmatmul.mubr.f32.gmra.mrb[168].mxu1 %v1396_v50  ;;  %v6259_v42 = vpop.f32.mrb[126].mxu0  ;;  %6401 = vmatprep.mubr.f32.mxu0 %v1524_v28  ;;  %v1536_v50 = vld [vmem:[%s10527_s3 + $0xc40] sm:$0xff] }
 0x2df   : > { %v8697_v48 = vadd.f32 %v6259_v42, %v1845_v30  ;;  %v2705_v18 = vpop.f32.mrb[127].mxu0  ;;  %2113 = vmatprep.mubr.f32.mxu1 %v1400_v41  ;;  %v1539_v40 = vld [vmem:[%s10527_s3 + $0xc58] sm:$0xff]  ;;  %v1408_v42 = vld [vmem:[%s10527_s3 + $0x840] sm:$0xff] }
 0x2e0   : > { %v8702_v51 = vadd.f32 %v2705_v18, %v1840_v19  ;;  %v1412_v18 = vld [vmem:[%s10527_s3 + $0x860] sm:$0xff] }
 0x2e1   : > { %10555 = vst [vmem:[#allocation13_spill] sm:$0xff] %v8697_v48  ;;  %v1850_v58 = vpop.f32.mrb[64].mxu1  ;;  %6402 = vmatmul.mubr.f32.gmra.mrb[222].mxu0 %v1527_v0  ;;  %v1411_v0 = vld [vmem:[%s10527_s3 + $0x858] sm:$0xff] }
 0x2e2   : > { %10556 = vst [vmem:[#allocation14_spill] sm:$0xff] %v8702_v51  ;;  %v1852_v36 = vpop.f32.mrb[65].mxu1  ;;  %2114 = vmatmul.mubr.f32.gmra.mrb[170].mxu1 %v1399_v63  ;;  %v6262_v60 = vpop.f32.mrb[128].mxu0  ;;  %6404 = vmatprep.mubr.f32.mxu0 %v1530_v59 }
 0x2e3   : > { %v2715_v2 = vpop.f32.mrb[129].mxu0  ;;  %2118 = vmatprep.mubr.f32.mxu1 %v1403_v55  ;;  %v1542_v55 = vld [vmem:[%s10527_s3 + $0xc70] sm:$0xff] }
 0x2e4   : > { %v8716_v8 = vadd.f32 %v2715_v2, %v1850_v58 }
 0x2e5   : > { %v1855_v23 = vpop.f32.mrb[66].mxu1  ;;  %6405 = vmatmul.mubr.f32.gmra.mrb[224].mxu0 %v1533_v3  ;;  %v1551_v3 = vld [vmem:[%s10527_s3 + $0xcb8] sm:$0xff] }
 0x2e6   : > { %10557 = vst [vmem:[#allocation15_spill] sm:$0xff] %v8716_v8  ;;  %v8724_v14 = vadd.f32 %v6262_v60, %v1855_v23  ;;  %v1857_v44 = vpop.f32.mrb[67].mxu1  ;;  %2119 = vmatmul.mubr.f32.gmra.mrb[172].mxu1 %v1402_v34  ;;  %v6265_v19 = vpop.f32.mrb[130].mxu0  ;;  %6407 = vmatprep.mubr.f32.mxu0 %v1536_v50  ;;  %v1545_v60 = vld [vmem:[%s10527_s3 + $0xc88] sm:$0xff]  ;;  %v1415_v34 = vld [vmem:[%s10527_s3 + $0x878] sm:$0xff]  ;;  %v1548_v23 = vld [vmem:[%s10527_s3 + $0xca0] sm:$0xff] }
 0x2e7   : > { %2123 = vmatprep.mubr.f32.mxu1 %v1406_v49  ;;  %v2725_v26 = vpop.f32.mrb[131].mxu0  ;;  %v1554_v50 = vld [vmem:[%s10527_s3 + $0xcd0] sm:$0xff] }
 0x2e8   : > { %10558 = vst [vmem:[#allocation16_spill] sm:$0xff] %v8724_v14 }
 0x2e9   : > { %v1860_v20 = vpop.f32.mrb[68].mxu1  ;;  %6408 = vmatmul.mubr.f32.gmra.mrb[226].mxu0 %v1539_v40 }
 0x2ea   : > { %v8738_v41 = vadd.f32 %v2725_v26, %v1860_v20  ;;  %v1862_v30 = vpop.f32.mrb[69].mxu1  ;;  %2124 = vmatmul.mubr.f32.gmra.mrb[174].mxu1 %v1405_v31  ;;  %v6268_v6 = vpop.f32.mrb[132].mxu0  ;;  %6410 = vmatprep.mubr.f32.mxu0 %v1542_v55  ;;  %v1414_v26 = vld [vmem:[%s10527_s3 + $0x870] sm:$0xff] }
 0x2eb   : > { %2128 = vmatprep.mubr.f32.mxu1 %v1409_v56  ;;  %v2735_v13 = vpop.f32.mrb[133].mxu0  ;;  %v1418_v56 = vld [vmem:[%s10527_s3 + $0x890] sm:$0xff] }
 0x2ec   : > { %10559 = vst [vmem:[#allocation17_spill] sm:$0xff] %v8738_v41 }
 0x2ed   : > { %v1865_v63 = vpop.f32.mrb[70].mxu1  ;;  %6411 = vmatmul.mubr.f32.gmra.mrb[228].mxu0 %v1545_v60 }
 0x2ee   : > { %v8752_v58 = vadd.f32 %v6265_v19, %v1865_v63  ;;  %v1867_v28 = vpop.f32.mrb[71].mxu1  ;;  %2129 = vmatmul.mubr.f32.gmra.mrb[176].mxu1 %v1408_v42  ;;  %v6271_v36 = vpop.f32.mrb[134].mxu0  ;;  %6413 = vmatprep.mubr.f32.mxu0 %v1548_v23  ;;  %v1420_v23 = vld [vmem:[%s10527_s3 + $0x8a0] sm:$0xff] }
 0x2ef   : > { %2133 = vmatprep.mubr.f32.mxu1 %v1412_v18  ;;  %v2745_v2 = vpop.f32.mrb[135].mxu0  ;;  %v1417_v18 = vld [vmem:[%s10527_s3 + $0x888] sm:$0xff]  ;;  %v1560_v28 = vld [vmem:[%s10527_s3 + $0xd00] sm:$0xff] }
 0x2f0   : > { %10560 = vst [vmem:[#allocation18_spill] sm:$0xff] %v8752_v58 }
 0x2f1   : > { %v1870_v49 = vpop.f32.mrb[72].mxu1  ;;  %6414 = vmatmul.mubr.f32.gmra.mrb[230].mxu0 %v1551_v3 }
 0x2f2   : > { %v8766_v59 = vadd.f32 %v2735_v13, %v1870_v49  ;;  %v1872_v44 = vpop.f32.mrb[73].mxu1  ;;  %2134 = vmatmul.mubr.f32.gmra.mrb[178].mxu1 %v1411_v0  ;;  %v6274_v19 = vpop.f32.mrb[136].mxu0  ;;  %6416 = vmatprep.mubr.f32.mxu0 %v1554_v50  ;;  %v1557_v13 = vld [vmem:[%s10527_s3 + $0xce8] sm:$0xff]  ;;  %v1563_v49 = vld [vmem:[%s10527_s3 + $0xd18] sm:$0xff] }
 0x2f3   : > { %2138 = vmatprep.mubr.f32.mxu1 %v1415_v34  ;;  %v2755_v31 = vpop.f32.mrb[137].mxu0 }
 0x2f4   : > { %10561 = vst [vmem:[#allocation19_spill] sm:$0xff] %v8766_v59 }
 0x2f5   : > { %v1875_v20 = vpop.f32.mrb[74].mxu1  ;;  %6417 = vmatmul.mubr.f32.gmra.mrb[232].mxu0 %v1557_v13  ;;  %v1423_v13 = vld [vmem:[%s10527_s3 + $0x8b8] sm:$0xff] }
 0x2f6   : > { %v8780_v30 = vadd.f32 %v6268_v6, %v1875_v20  ;;  %v1877_v40 = vpop.f32.mrb[75].mxu1  ;;  %2139 = vmatmul.mubr.f32.gmra.mrb[180].mxu1 %v1414_v26  ;;  %v8782_v42 = vpop.f32.mrb[138].mxu0  ;;  %v1421_v6 = vld [vmem:[%s10527_s3 + $0x8a8] sm:$0xff]  ;;  %6419 = vmatprep.mubr.f32.mxu0 %v1560_v28  ;;  %v1566_v26 = vld [vmem:[%s10527_s3 + $0xd30] sm:$0xff] }
 0x2f7   : > { %2143 = vmatprep.mubr.f32.mxu1 %v1418_v56  ;;  %v2765_v63 = vpop.f32.mrb[139].mxu0  ;;  %v1569_v40 = vld [vmem:[%s10527_s3 + $0xd48] sm:$0xff] }
 0x2f8   : > { %10562 = vst [vmem:[#allocation20_spill] sm:$0xff] %v8780_v30 }
 0x2f9   : > { %v1880_v55 = vpop.f32.mrb[76].mxu1  ;;  %6420 = vmatmul.mubr.f32.gmra.mrb[234].mxu0 %v1563_v49 }
 0x2fa   : > { %v8796_v60 = vadd.f32 %v2745_v2, %v1880_v55  ;;  %v1882_v0 = vpop.f32.mrb[77].mxu1  ;;  %2144 = vmatmul.mubr.f32.gmra.mrb[182].mxu1 %v1417_v18  ;;  %v8798_v34 = vpop.f32.mrb[140].mxu0  ;;  %v1424_v2 = vld [vmem:[%s10527_s3 + $0x8c0] sm:$0xff]  ;;  %6422 = vmatprep.mubr.f32.mxu0 %v1566_v26 }
 0x2fb   : > { %2148 = vmatprep.mubr.f32.mxu1 %v1421_v6  ;;  %v8806_v44 = vpop.f32.mrb[141].mxu0  ;;  %v1572_v55 = vld [vmem:[%s10527_s3 + $0xd60] sm:$0xff] }
 0x2fc   : > { %10563 = vst [vmem:[#allocation21_spill] sm:$0xff] %v8796_v60  ;;  %v1441_v60 = vld [vmem:[%s10527_s3 + $0x948] sm:$0xff] }
 0x2fd   : > { %v1885_v3 = vpop.f32.mrb[78].mxu1  ;;  %6423 = vmatmul.mubr.f32.gmra.mrb[236].mxu0 %v1569_v40 }
 0x2fe   : > { %v8814_v56 = vadd.f32 %v6271_v36, %v1885_v3  ;;  %v1887_v20 = vpop.f32.mrb[79].mxu1  ;;  %2149 = vmatmul.mubr.f32.gmra.mrb[184].mxu1 %v1420_v23  ;;  %v8816_v50 = vpop.f32.mrb[142].mxu0  ;;  %v1427_v36 = vld [vmem:[%s10527_s3 + $0x8d8] sm:$0xff]  ;;  %6425 = vmatprep.mubr.f32.mxu0 %v1572_v55  ;;  %v1429_v55 = vld [vmem:[%s10527_s3 + $0x8e8] sm:$0xff] }
 0x2ff   : > { %2153 = vmatprep.mubr.f32.mxu1 %v1424_v2  ;;  %v8824_v18 = vpop.f32.mrb[143].mxu0  ;;  %v1575_v23 = vld [vmem:[%s10527_s3 + $0xd78] sm:$0xff]  ;;  %v1426_v2 = vld [vmem:[%s10527_s3 + $0x8d0] sm:$0xff] }
 0x300   : > { %10564 = vst [vmem:[#allocation22_spill] sm:$0xff] %v8814_v56  ;;  %v1578_v20 = vld [vmem:[%s10527_s3 + $0xd90] sm:$0xff] }
 0x301   : > { %v1890_v6 = vpop.f32.mrb[80].mxu1  ;;  %6426 = vmatmul.mubr.f32.gmra.mrb[238].mxu0 %v1575_v23 }
 0x302   : > { %v8832_v28 = vadd.f32 %v2755_v31, %v1890_v6  ;;  %v1892_v0 = vpop.f32.mrb[81].mxu1  ;;  %2154 = vmatmul.mubr.f32.gmra.mrb[186].mxu1 %v1423_v13  ;;  %v8834_v49 = vpop.f32.mrb[144].mxu0  ;;  %v1430_v31 = vld [vmem:[%s10527_s3 + $0x8f0] sm:$0xff]  ;;  %6428 = vmatprep.mubr.f32.mxu0 %v1578_v20  ;;  %v1581_v6 = vld [vmem:[%s10527_s3 + $0xda8] sm:$0xff] }
 0x303   : > { %2158 = vmatprep.mubr.f32.mxu1 %v1427_v36  ;;  %v8842_v3 = vpop.f32.mrb[145].mxu0 }
 0x304   : > { %10565 = vst [vmem:[#allocation23_spill] sm:$0xff] %v8832_v28 }
 0x305   : > { %v1895_v26 = vpop.f32.mrb[82].mxu1  ;;  %6429 = vmatmul.mubr.f32.gmra.mrb[240].mxu0 %v1581_v6  ;;  %v1432_v6 = vld [vmem:[%s10527_s3 + $0x900] sm:$0xff] }
 0x306   : > { %v8850_v40 = vadd.f32 %v6274_v19, %v1895_v26  ;;  %v1897_v13 = vpop.f32.mrb[83].mxu1  ;;  %2159 = vmatmul.mubr.f32.gmra.mrb[188].mxu1 %v1426_v2  ;;  %v8852_v36 = vpop.f32.mrb[146].mxu0  ;;  %v1433_v19 = vld [vmem:[%s10527_s3 + $0x908] sm:$0xff]  ;;  %v1584_v2 = vld [vmem:[%s10527_s3 + $0xdc0] sm:$0xff] }
 0x307   : > { %2163 = vmatprep.mubr.f32.mxu1 %v1430_v31  ;;  %v8860_v0 = vpop.f32.mrb[147].mxu0  ;;  %6431 = vmatprep.mubr.f32.mxu0 %v1584_v2  ;;  %v1587_v13 = vld [vmem:[%s10527_s3 + $0xdd8] sm:$0xff] }
 0x308   : > { %10566 = vst [vmem:[#allocation24_spill] sm:$0xff] %v8850_v40 }
 0x309   : > { %v1900_v23 = vpop.f32.mrb[84].mxu1  ;;  %6432 = vmatmul.mubr.f32.gmra.mrb[242].mxu0 %v1587_v13  ;;  %v1593_v13 = vld [vmem:[%s10527_s3 + $0xe08] sm:$0xff] }
 0x30a   : > { %v8868_v26 = vadd.f32 %v2765_v63, %v1900_v23  ;;  %v1902_v20 = vpop.f32.mrb[85].mxu1  ;;  %2164 = vmatmul.mubr.f32.gmra.mrb[190].mxu1 %v1429_v55  ;;  %v8870_v31 = vpop.f32.mrb[148].mxu0  ;;  %v1436_v63 = vld [vmem:[%s10527_s3 + $0x920] sm:$0xff]  ;;  %v1590_v23 = vld [vmem:[%s10527_s3 + $0xdf0] sm:$0xff] }
 0x30b   : > { %2168 = vmatprep.mubr.f32.mxu1 %v1433_v19  ;;  %v8878_v27 = vpop.f32.mrb[149].mxu0  ;;  %6434 = vmatprep.mubr.f32.mxu0 %v1590_v23 }
 0x30c   : > { %10567 = vst [vmem:[#allocation25_spill] sm:$0xff] %v8868_v26 }
 0x30d   : > { %v1905_v55 = vpop.f32.mrb[86].mxu1  ;;  %6435 = vmatmul.mubr.f32.gmra.mrb[244].mxu0 %v1593_v13  ;;  %v1599_v13 = vld [vmem:[%s10527_s3 + $0xe38] sm:$0xff] }
 0x30e   : > { %v8887_v2 = vadd.f32 %v8782_v42, %v1905_v55  ;;  %v1907_v19 = vpop.f32.mrb[87].mxu1  ;;  %2169 = vmatmul.mubr.f32.gmra.mrb[192].mxu1 %v1432_v6  ;;  %v8889_v20 = vpop.f32.mrb[150].mxu0  ;;  %v1439_v42 = vld [vmem:[%s10527_s3 + $0x938] sm:$0xff]  ;;  %v1596_v55 = vld [vmem:[%s10527_s3 + $0xe20] sm:$0xff] }
 0x30f   : > { %2173 = vmatprep.mubr.f32.mxu1 %v1436_v63  ;;  %v8897_v24 = vpop.f32.mrb[151].mxu0  ;;  %6437 = vmatprep.mubr.f32.mxu0 %v1596_v55  ;;  %v3515_v55 = vld [vmem:[%s10528_s4] sm:$0xff] }
 0x310   : > { %10568 = vst [vmem:[#allocation26_spill] sm:$0xff] %v8887_v2  ;;  %v1438_v2 = vld [vmem:[%s10527_s3 + $0x930] sm:$0xff] }
 0x311   : > { %v1910_v6 = vpop.f32.mrb[88].mxu1  ;;  %6438 = vmatmul.mubr.f32.gmra.mrb[246].mxu0 %v1599_v13 }
 0x312   : > { %v8906_v23 = vadd.f32 %v8806_v44, %v1910_v6  ;;  %v1912_v63 = vpop.f32.mrb[89].mxu1  ;;  %2174 = vmatmul.mubr.f32.gmra.mrb[194].mxu1 %v1435_v25  ;;  %v8908_v19 = vpop.f32.mrb[152].mxu0  ;;  %v3516_v44 = vld [vmem:[%s10528_s4 + $0x8] sm:$0xff]  ;;  %v3518_v25 = vld [vmem:[%s10528_s4 + $0x18] sm:$0xff]  ;;  %v1442_v6 = vld [vmem:[%s10527_s3 + $0x950] sm:$0xff] }
 0x313   : > { %2178 = vmatprep.mubr.f32.mxu1 %v1439_v42  ;;  %v8916_v26 = vpop.f32.mrb[153].mxu0  ;;  %v6772_v42 = vpack.c.bf16 %v3518_v25, %v3516_v44  ;;  %v3517_v63 = vld [vmem:[%s10528_s4 + $0x10] sm:$0xff]  ;;  %v1605_v25 = vld [vmem:[%s10527_s3 + $0xe68] sm:$0xff] }
 0x314   : > { %10569 = vst [vmem:[#allocation27_spill] sm:$0xff] %v8906_v23  ;;  %v1602_v23 = vld [vmem:[%s10527_s3 + $0xe50] sm:$0xff]  ;;  %v6774_v40 = vpack.c.bf16 %v3517_v63, %v3515_v55  ;;  %v1608_v63 = vld [vmem:[%s10527_s3 + $0xe80] sm:$0xff] }
 0x315   : > { %v1915_v13 = vpop.f32.mrb[90].mxu1  ;;  %6440 = vmatprep.mubr.f32.mxu0 %v1602_v23  ;;  %6773 = vmatprep.subr.bf16.mxu0 %v6772_v42  ;;  %v3521_v42 = vld [vmem:[%s10528_s4 + $0x30] sm:$0xff] }
 0x316   : > { %v8937_v28 = vadd.f32 %v8798_v34, %v1915_v13  ;;  %v1917_v56 = vpop.f32.mrb[91].mxu1  ;;  %2179 = vmatmul.mubr.f32.gmra.mrb[196].mxu1 %v1438_v2  ;;  %v8939_v44 = vpop.f32.mrb[154].mxu0  ;;  %v3520_v34 = vld [vmem:[%s10528_s4 + $0x28] sm:$0xff]  ;;  %6441 = vmatmul.mubr.f32.gmra.mrb[248].mxu0 %v1605_v25 }
 0x317   : > { %2183 = vmatprep.mubr.f32.mxu1 %v1442_v6  ;;  %v8947_v30 = vpop.f32.mrb[155].mxu0  ;;  %v3522_v56 = vld [vmem:[%s10528_s4 + $0x38] sm:$0xff]  ;;  %v1445_v2 = vld [vmem:[%s10527_s3 + $0x968] sm:$0xff]  ;;  %v3519_v6 = vld [vmem:[%s10528_s4 + $0x20] sm:$0xff]  ;;  %6775 = vmatpush1.bf16.msra.mxu0 %v6774_v40 }
 0x318   : > { %10570 = vst [vmem:[#allocation28_spill] sm:$0xff] %v8937_v28  ;;  %v6776_v23 = vpack.c.bf16 %v3522_v56, %v3520_v34  ;;  %v6778_v13 = vpack.c.bf16 %v3521_v42, %v3519_v6  ;;  %6443 = vmatprep.mubr.f32.mxu0 %v1608_v63  ;;  %v1611_v56 = vld [vmem:[%s10527_s3 + $0xe98] sm:$0xff]  ;;  %v1444_v40 = vld [vmem:[%s10527_s3 + $0x960] sm:$0xff]  ;;  %v1614_v63 = vld [vmem:[%s10527_s3 + $0xeb0] sm:$0xff] }
 0x319   : > { %v1920_v55 = vpop.f32.mrb[92].mxu1  ;;  %v1448_v6 = vld [vmem:[%s10527_s3 + $0x980] sm:$0xff] }
 0x31a   : > { %v8968_v28 = vadd.f32 %v8824_v18, %v1920_v55  ;;  %v1922_v25 = vpop.f32.mrb[93].mxu1  ;;  %2184 = vmatmul.mubr.f32.gmra.mrb[198].mxu1 %v1441_v60  ;;  %v8970_v34 = vpop.f32.mrb[156].mxu0  ;;  %6777 = vmatprep.subr.bf16.mxu0 %v6776_v23  ;;  %v3524_v18 = vld [vmem:[%s10528_s4 + $0x48] sm:$0xff]  ;;  %v3526_v60 = vld [vmem:[%s10528_s4 + $0x58] sm:$0xff]  ;;  %v3523_v42 = vld [vmem:[%s10528_s4 + $0x40] sm:$0xff] }
 0x31b   : > { %2188 = vmatprep.mubr.f32.mxu1 %v1445_v2  ;;  %v8978_v59 = vpop.f32.mrb[157].mxu0  ;;  %6444 = vmatmul.mubr.f32.gmra.mrb[250].mxu0 %v1611_v56  ;;  %v6780_v2 = vpack.c.bf16 %v3526_v60, %v3524_v18  ;;  %v3525_v23 = vld [vmem:[%s10528_s4 + $0x50] sm:$0xff]  ;;  %v1617_v60 = vld [vmem:[%s10527_s3 + $0xec8] sm:$0xff] }
 0x31c   : > { %10571 = vst [vmem:[#allocation29_spill] sm:$0xff] %v8968_v28  ;;  %6779 = vmatpush1.bf16.msra.mxu0 %v6778_v13  ;;  %v6782_v25 = vpack.c.bf16 %v3525_v23, %v3523_v42  ;;  %6446 = vmatprep.mubr.f32.mxu0 %v1614_v63  ;;  %v1447_v13 = vld [vmem:[%s10527_s3 + $0x978] sm:$0xff]  ;;  %v3527_v23 = vld [vmem:[%s10528_s4 + $0x60] sm:$0xff] }
 0x31d   : > { %v1925_v55 = vpop.f32.mrb[94].mxu1  ;;  %6781 = vmatprep.subr.bf16.mxu0 %v6780_v2  ;;  %v1451_v42 = vld [vmem:[%s10527_s3 + $0x998] sm:$0xff]  ;;  %v3529_v2 = vld [vmem:[%s10528_s4 + $0x70] sm:$0xff]  ;;  %v1620_v63 = vld [vmem:[%s10527_s3 + $0xee0] sm:$0xff] }
 0x31e   : > { %v8999_v28 = vadd.f32 %v8816_v50, %v1925_v55  ;;  %v1927_v56 = vpop.f32.mrb[95].mxu1  ;;  %2189 = vmatmul.mubr.f32.gmra.mrb[200].mxu1 %v1444_v40  ;;  %v9001_v18 = vpop.f32.mrb[158].mxu0  ;;  %v3528_v50 = vld [vmem:[%s10528_s4 + $0x68] sm:$0xff]  ;;  %v3530_v40 = vld [vmem:[%s10528_s4 + $0x78] sm:$0xff] }
 0x31f   : > { %2193 = vmatprep.mubr.f32.mxu1 %v1448_v6  ;;  %v9009_v58 = vpop.f32.mrb[159].mxu0  ;;  %6447 = vmatmul.mubr.f32.gmra.mrb[252].mxu0 %v1617_v60  ;;  %v6784_v6 = vpack.c.bf16 %v3530_v40, %v3528_v50  ;;  %v6786_v56 = vpack.c.bf16 %v3529_v2, %v3527_v23  ;;  %v1623_v40 = vld [vmem:[%s10527_s3 + $0xef8] sm:$0xff]  ;;  %v3532_v23 = vld [vmem:[%s10528_s4 + $0x88] sm:$0xff] }
 0x320   : > { %10572 = vst [vmem:[#allocation30_spill] sm:$0xff] %v8999_v28  ;;  %6783 = vmatpush1.bf16.msra.mxu0 %v6782_v25  ;;  %6449 = vmatprep.mubr.f32.mxu0 %v1620_v63  ;;  %v1450_v25 = vld [vmem:[%s10527_s3 + $0x990] sm:$0xff]  ;;  %v1453_v63 = vld [vmem:[%s10527_s3 + $0x9a8] sm:$0xff] }
 0x321   : > { %v1930_v55 = vpop.f32.mrb[96].mxu1  ;;  %6785 = vmatprep.subr.bf16.mxu0 %v6784_v6  ;;  %v3531_v6 = vld [vmem:[%s10528_s4 + $0x80] sm:$0xff] }
 0x322   : > { %v9030_v28 = vadd.f32 %v8842_v3, %v1930_v55  ;;  %v1932_v60 = vpop.f32.mrb[97].mxu1  ;;  %2194 = vmatmul.mubr.f32.gmra.mrb[202].mxu1 %v1447_v13  ;;  %v9032_v50 = vpop.f32.mrb[160].mxu0  ;;  %v1454_v3 = vld [vmem:[%s10527_s3 + $0x9b0] sm:$0xff] }
 0x323   : > { %2198 = vmatprep.mubr.f32.mxu1 %v1451_v42  ;;  %v9040_v41 = vpop.f32.mrb[161].mxu0  ;;  %6450 = vmatmul.mubr.f32.gmra.mrb[254].mxu0 %v1623_v40  ;;  %v10542_v60 = vmov 0.0  }
 0x324   : > { %10573 = vst [vmem:[#allocation31_spill] sm:$0xff] %v9030_v28  ;;  %6787 = vmatpush1.bf16.msra.mxu0 %v6786_v56  ;;  %3646 = vmatprep.mubr.f32.mxu0 %v10542_v60  ;;  %v1460_v60 = vld [vmem:[%s10527_s3 + $0x9e0] sm:$0xff] }
 0x325   : > { %v1935_v13 = vpop.f32.mrb[98].mxu1  ;;  %3598 = vmatprep.subr.mxu0 %v3532_v23  ;;  %v1456_v23 = vld [vmem:[%s10527_s3 + $0x9c0] sm:$0xff] }
 0x326   : > { %v9049_v42 = vadd.f32 %v8834_v49, %v1935_v13  ;;  %v1937_v2 = vpop.f32.mrb[99].mxu1  ;;  %2199 = vmatmul.mubr.f32.gmra.mrb[204].mxu1 %v1450_v25  ;;  %v9051_v55 = vpop.f32.mrb[162].mxu0  ;;  %v1457_v49 = vld [vmem:[%s10527_s3 + $0x9c8] sm:$0xff] }
 0x327   : > { %2203 = vmatprep.mubr.f32.mxu1 %v1454_v3  ;;  %v9059_v56 = vpop.f32.mrb[163].mxu0 }
 0x328   : > { %10574 = vst [vmem:[#allocation32_spill] sm:$0xff] %v9049_v42  ;;  %3599 = vmatpush1.msra.mxu0 %v3531_v6 }
 0x329   : > { %v1940_v40 = vpop.f32.mrb[100].mxu1 }
 0x32a   : > { %v9066_v25 = vadd.f32 %v8860_v0, %v1940_v40  ;;  %v1942_v13 = vpop.f32.mrb[101].mxu1  ;;  %2204 = vmatmul.mubr.f32.gmra.mrb[206].mxu1 %v1453_v63  ;;  %v9068_v3 = vpop.f32.mrb[164].mxu0 }
 0x32b   : > { %2208 = vmatprep.mubr.f32.mxu1 %v1457_v49  ;;  %v9073_v2 = vpop.f32.mrb[165].mxu0  ;;  %v1459_v49 = vld [vmem:[%s10527_s3 + $0x9d8] sm:$0xff] }
 0x32c   : > { %10575 = vst [vmem:[#allocation33_spill] sm:$0xff] %v9066_v25  ;;  %v1463_v13 = vld [vmem:[%s10527_s3 + $0x9f8] sm:$0xff] }
 0x32d   : > { %v1945_v42 = vpop.f32.mrb[102].mxu1 }
 0x32e   : > { %v9079_v6 = vadd.f32 %v8852_v36, %v1945_v42  ;;  %v1947_v0 = vpop.f32.mrb[103].mxu1  ;;  %2209 = vmatmul.mubr.f32.gmra.mrb[208].mxu1 %v1456_v23  ;;  %v9081_v63 = vpop.f32.mrb[166].mxu0 }
 0x32f   : > { %2213 = vmatprep.mubr.f32.mxu1 %v1460_v60  ;;  %v9086_v40 = vpop.f32.mrb[167].mxu0  ;;  %v1462_v60 = vld [vmem:[%s10527_s3 + $0x9f0] sm:$0xff] }
 0x330   : > { %10576 = vst [vmem:[#allocation34_spill] sm:$0xff] %v9079_v6  ;;  %v1466_v0 = vld [vmem:[%s10527_s3 + $0xa10] sm:$0xff] }
 0x331   : > { %v1950_v25 = vpop.f32.mrb[104].mxu1 }
 0x332   : > { %v9092_v28 = vadd.f32 %v8878_v27, %v1950_v25  ;;  %v1952_v36 = vpop.f32.mrb[105].mxu1  ;;  %2214 = vmatmul.mubr.f32.gmra.mrb[210].mxu1 %v1459_v49  ;;  %v9094_v42 = vpop.f32.mrb[168].mxu0  ;;  %v1465_v49 = vld [vmem:[%s10527_s3 + $0xa08] sm:$0xff] }
 0x333   : > { %2218 = vmatprep.mubr.f32.mxu1 %v1463_v13  ;;  %v9099_v23 = vpop.f32.mrb[169].mxu0  ;;  %v1469_v36 = vld [vmem:[%s10527_s3 + $0xa28] sm:$0xff] }
 0x334   : > { %10577 = vst [vmem:[#allocation35_spill] sm:$0xff] %v9092_v28 }
 0x335   : > { %v1955_v6 = vpop.f32.mrb[106].mxu1 }
 0x336   : > { %v9105_v14 = vadd.f32 %v8870_v31, %v1955_v6  ;;  %v1957_v27 = vpop.f32.mrb[107].mxu1  ;;  %2219 = vmatmul.mubr.f32.gmra.mrb[212].mxu1 %v1462_v60  ;;  %v9107_v25 = vpop.f32.mrb[170].mxu0  ;;  %v1468_v60 = vld [vmem:[%s10527_s3 + $0xa20] sm:$0xff] }
 0x337   : > { %2223 = vmatprep.mubr.f32.mxu1 %v1466_v0  ;;  %v9112_v13 = vpop.f32.mrb[171].mxu0  ;;  %v1472_v27 = vld [vmem:[%s10527_s3 + $0xa40] sm:$0xff] }
 0x338   : > { %10578 = vst [vmem:[#allocation36_spill] sm:$0xff] %v9105_v14 }
 0x339   : > { %v1960_v28 = vpop.f32.mrb[108].mxu1 }
 0x33a   : > { %v9118_v8 = vadd.f32 %v8897_v24, %v1960_v28  ;;  %v1962_v31 = vpop.f32.mrb[109].mxu1  ;;  %2224 = vmatmul.mubr.f32.gmra.mrb[214].mxu1 %v1465_v49  ;;  %v9120_v6 = vpop.f32.mrb[172].mxu0  ;;  %v1471_v49 = vld [vmem:[%s10527_s3 + $0xa38] sm:$0xff] }
 0x33b   : > { %2228 = vmatprep.mubr.f32.mxu1 %v1469_v36  ;;  %v9125_v0 = vpop.f32.mrb[173].mxu0  ;;  %v1475_v31 = vld [vmem:[%s10527_s3 + $0xa58] sm:$0xff] }
 0x33c   : > { %10579 = vst [vmem:[#allocation37_spill] sm:$0xff] %v9118_v8 }
 0x33d   : > { %v1965_v14 = vpop.f32.mrb[110].mxu1 }
 0x33e   : > { %v9131_v48 = vadd.f32 %v8889_v20, %v1965_v14  ;;  %v1967_v24 = vpop.f32.mrb[111].mxu1  ;;  %2229 = vmatmul.mubr.f32.gmra.mrb[216].mxu1 %v1468_v60  ;;  %v9133_v28 = vpop.f32.mrb[174].mxu0  ;;  %v1474_v60 = vld [vmem:[%s10527_s3 + $0xa50] sm:$0xff] }
 0x33f   : > { %2233 = vmatprep.mubr.f32.mxu1 %v1472_v27  ;;  %v9138_v36 = vpop.f32.mrb[175].mxu0  ;;  %v1478_v24 = vld [vmem:[%s10527_s3 + $0xa70] sm:$0xff] }
 0x340   : > { %10580 = vst [vmem:[#allocation38_spill] sm:$0xff] %v9131_v48 }
 0x341   : > { %v1970_v8 = vpop.f32.mrb[112].mxu1 }
 0x342   : > { %v9144_v51 = vadd.f32 %v8916_v26, %v1970_v8  ;;  %v1972_v14 = vpop.f32.mrb[113].mxu1  ;;  %2234 = vmatmul.mubr.f32.gmra.mrb[218].mxu1 %v1471_v49  ;;  %v9146_v20 = vpop.f32.mrb[176].mxu0  ;;  %v1477_v49 = vld [vmem:[%s10527_s3 + $0xa68] sm:$0xff] }
 0x343   : > { %2238 = vmatprep.mubr.f32.mxu1 %v1475_v31  ;;  %v9151_v27 = vpop.f32.mrb[177].mxu0  ;;  %v1481_v14 = vld [vmem:[%s10527_s3 + $0xa88] sm:$0xff] }
 0x344   : > { %10581 = vst [vmem:[#allocation39_spill] sm:$0xff] %v9144_v51 }
 0x345   : > { %v1975_v48 = vpop.f32.mrb[114].mxu1 }
 0x346   : > { %v9157_v33 = vadd.f32 %v8908_v19, %v1975_v48  ;;  %v1977_v8 = vpop.f32.mrb[115].mxu1  ;;  %2239 = vmatmul.mubr.f32.gmra.mrb[220].mxu1 %v1474_v60  ;;  %v9159_v26 = vpop.f32.mrb[178].mxu0  ;;  %v1480_v60 = vld [vmem:[%s10527_s3 + $0xa80] sm:$0xff] }
 0x347   : > { %2243 = vmatprep.mubr.f32.mxu1 %v1478_v24  ;;  %v9164_v31 = vpop.f32.mrb[179].mxu0  ;;  %v1484_v8 = vld [vmem:[%s10527_s3 + $0xaa0] sm:$0xff] }
 0x348   : > { %10582 = vst [vmem:[#allocation40_spill] sm:$0xff] %v9157_v33 }
 0x349   : > { %v1980_v51 = vpop.f32.mrb[116].mxu1 }
 0x34a   : > { %v9170_v39 = vadd.f32 %v8947_v30, %v1980_v51  ;;  %v1982_v48 = vpop.f32.mrb[117].mxu1  ;;  %2244 = vmatmul.mubr.f32.gmra.mrb[222].mxu1 %v1477_v49  ;;  %v9172_v19 = vpop.f32.mrb[180].mxu0  ;;  %v1483_v49 = vld [vmem:[%s10527_s3 + $0xa98] sm:$0xff] }
 0x34b   : > { %2248 = vmatprep.mubr.f32.mxu1 %v1481_v14  ;;  %v9177_v24 = vpop.f32.mrb[181].mxu0  ;;  %v1487_v48 = vld [vmem:[%s10527_s3 + $0xab8] sm:$0xff] }
 0x34c   : > { %10583 = vst [vmem:[#allocation41_spill] sm:$0xff] %v9170_v39 }
 0x34d   : > { %v1985_v33 = vpop.f32.mrb[118].mxu1 }
 0x34e   : > { %v9183_v12 = vadd.f32 %v8939_v44, %v1985_v33  ;;  %v1987_v51 = vpop.f32.mrb[119].mxu1  ;;  %2249 = vmatmul.mubr.f32.gmra.mrb[224].mxu1 %v1480_v60  ;;  %v9185_v30 = vpop.f32.mrb[182].mxu0  ;;  %v1486_v60 = vld [vmem:[%s10527_s3 + $0xab0] sm:$0xff] }
 0x34f   : > { %2253 = vmatprep.mubr.f32.mxu1 %v1484_v8  ;;  %v9190_v14 = vpop.f32.mrb[183].mxu0  ;;  %v5747_v51 = vld [vmem:[%s10528_s4 + $0x98] sm:$0xff] }
 0x350   : > { %10584 = vst [vmem:[#allocation42_spill] sm:$0xff] %v9183_v12 }
 0x351   : > { %v1990_v39 = vpop.f32.mrb[120].mxu1 }
 0x352   : > { %v9196_v15 = vadd.f32 %v8978_v59, %v1990_v39  ;;  %v1992_v33 = vpop.f32.mrb[121].mxu1  ;;  %2254 = vmatmul.mubr.f32.gmra.mrb[226].mxu1 %v1483_v49  ;;  %v9198_v44 = vpop.f32.mrb[184].mxu0  ;;  %v5749_v39 = vld [vmem:[%s10528_s4 + $0xa8] sm:$0xff]  ;;  %v1490_v59 = vld [vmem:[%s10527_s3 + $0xad0] sm:$0xff] }
 0x353   : > { %2258 = vmatprep.mubr.f32.mxu1 %v1487_v48  ;;  %v9203_v8 = vpop.f32.mrb[185].mxu0  ;;  %v6788_v49 = vpack.c.bf16 %v5749_v39, %v5747_v51  ;;  %v1493_v51 = vld [vmem:[%s10527_s3 + $0xae8] sm:$0xff] }
 0x354   : > { %10585 = vst [vmem:[#allocation43_spill] sm:$0xff] %v9196_v15 }
 0x355   : > { %v1995_v48 = vpop.f32.mrb[122].mxu1  ;;  %6789 = vmatprep.subr.bf16.mxu0 %v6788_v49 }
 0x356   : > { %v9215_v33 = vadd.f32 %v8970_v34, %v1995_v48  ;;  %v1997_v15 = vpop.f32.mrb[123].mxu1  ;;  %2259 = vmatmul.mubr.f32.gmra.mrb[228].mxu1 %v1486_v60  ;;  %v9217_v12 = vpop.f32.mrb[186].mxu0  ;;  %v1496_v48 = vld [vmem:[%s10527_s3 + $0xb00] sm:$0xff] }
 0x357   : > { %2263 = vmatprep.mubr.f32.mxu1 %v1490_v59  ;;  %v9222_v61 = vpop.f32.mrb[187].mxu0  ;;  %v1492_v59 = vld [vmem:[%s10527_s3 + $0xae0] sm:$0xff] }
 0x358   : > { %10586 = vst [vmem:[#allocation44_spill] sm:$0xff] %v9215_v33 }
 0x359   : > { %v2000_v39 = vpop.f32.mrb[124].mxu1 }
 0x35a   : > { %v9228_v34 = vadd.f32 %v9009_v58, %v2000_v39  ;;  %v2002_v15 = vpop.f32.mrb[125].mxu1  ;;  %2264 = vmatmul.mubr.f32.gmra.mrb[230].mxu1 %v1489_v17  ;;  %v9230_v60 = vpop.f32.mrb[188].mxu0 }
 0x35b   : > { %2268 = vmatprep.mubr.f32.mxu1 %v1493_v51  ;;  %v9235_v49 = vpop.f32.mrb[189].mxu0  ;;  %v1495_v51 = vld [vmem:[%s10527_s3 + $0xaf8] sm:$0xff] }
 0x35c   : > { %10587 = vst [vmem:[#allocation45_spill] sm:$0xff] %v9228_v34  ;;  %v1499_v15 = vld [vmem:[%s10527_s3 + $0xb18] sm:$0xff] }
 0x35d   : > { %v2005_v33 = vpop.f32.mrb[126].mxu1 }
 0x35e   : > { %v9241_v45 = vadd.f32 %v9001_v18, %v2005_v33  ;;  %v2007_v58 = vpop.f32.mrb[127].mxu1  ;;  %2269 = vmatmul.mubr.f32.gmra.mrb[232].mxu1 %v1492_v59  ;;  %v9243_v17 = vpop.f32.mrb[190].mxu0  ;;  %v1498_v59 = vld [vmem:[%s10527_s3 + $0xb10] sm:$0xff] }
 0x35f   : > { %2273 = vmatprep.mubr.f32.mxu1 %v1496_v48  ;;  %v9248_v39 = vpop.f32.mrb[191].mxu0  ;;  %v1502_v58 = vld [vmem:[%s10527_s3 + $0xb30] sm:$0xff] }
 0x360   : > { %10588 = vst [vmem:[#allocation46_spill] sm:$0xff] %v9241_v45 }
 0x361   : > { %v2010_v34 = vpop.f32.mrb[128].mxu1 }
 0x362   : > { %v9254_v5 = vadd.f32 %v9040_v41, %v2010_v34  ;;  %v2012_v18 = vpop.f32.mrb[129].mxu1  ;;  %2274 = vmatmul.mubr.f32.gmra.mrb[234].mxu1 %v1495_v51  ;;  %v9256_v33 = vpop.f32.mrb[192].mxu0  ;;  %v1501_v34 = vld [vmem:[%s10527_s3 + $0xb28] sm:$0xff] }
 0x363   : > { %2278 = vmatprep.mubr.f32.mxu1 %v1499_v15  ;;  %v9261_v48 = vpop.f32.mrb[193].mxu0  ;;  %v1505_v15 = vld [vmem:[%s10527_s3 + $0xb48] sm:$0xff] }
 0x364   : > { %10589 = vst [vmem:[#allocation47_spill] sm:$0xff] %v9254_v5 }
 0x365   : > { %v2015_v45 = vpop.f32.mrb[130].mxu1 }
 0x366   : > { %v9267_v57 = vadd.f32 %v9032_v50, %v2015_v45  ;;  %v2017_v41 = vpop.f32.mrb[131].mxu1  ;;  %2279 = vmatmul.mubr.f32.gmra.mrb[236].mxu1 %v1498_v59  ;;  %v9272_v51 = vpop.f32.mrb[194].mxu0  ;;  %v1504_v50 = vld [vmem:[%s10527_s3 + $0xb40] sm:$0xff] }
 0x367   : > { %2283 = vmatprep.mubr.f32.mxu1 %v1502_v58  ;;  %v9277_v18 = vpop.f32.mrb[195].mxu0  ;;  %v1508_v59 = vld [vmem:[%s10527_s3 + $0xb60] sm:$0xff] }
 0x368   : > { %10590 = vst [vmem:[#allocation48_spill] sm:$0xff] %v9267_v57 }
 0x369   : > { %v2020_v5 = vpop.f32.mrb[132].mxu1 }
 0x36a   : > { %v9280_v29 = vadd.f32 %v9059_v56, %v2020_v5  ;;  %v2022_v45 = vpop.f32.mrb[133].mxu1  ;;  %2284 = vmatmul.mubr.f32.gmra.mrb[238].mxu1 %v1501_v34  ;;  %v1507_v5 = vld [vmem:[%s10527_s3 + $0xb58] sm:$0xff]  ;;  %v9294_v56 = vpop.f32.mrb[196].mxu0 }
 0x36b   : > { %2288 = vmatprep.mubr.f32.mxu1 %v1505_v15  ;;  %v1511_v34 = vld [vmem:[%s10527_s3 + $0xb78] sm:$0xff]  ;;  %v9299_v15 = vpop.f32.mrb[197].mxu0 }
 0x36c   : > { %10591 = vst [vmem:[#allocation49_spill] sm:$0xff] %v9280_v29 }
 0x36d   : > { %v2025_v58 = vpop.f32.mrb[134].mxu1 }
 0x36e   : > { %v9289_v41 = vadd.f32 %v9051_v55, %v2025_v58  ;;  %v2027_v57 = vpop.f32.mrb[135].mxu1  ;;  %2289 = vmatmul.mubr.f32.gmra.mrb[240].mxu1 %v1504_v50  ;;  %v1514_v50 = vld [vmem:[%s10527_s3 + $0xb90] sm:$0xff] }
 0x36f   : > { %2293 = vmatprep.mubr.f32.mxu1 %v1508_v59  ;;  %v1510_v57 = vld [vmem:[%s10527_s3 + $0xb70] sm:$0xff] }
 0x370   : > { %10592 = vst [vmem:[#allocation50_spill] sm:$0xff] %v9289_v41 }
 0x371   : > { %v2030_v45 = vpop.f32.mrb[136].mxu1 }
 0x372   : > { %v9302_v29 = vadd.f32 %v9073_v2, %v2030_v45  ;;  %v2032_v55 = vpop.f32.mrb[137].mxu1  ;;  %2294 = vmatmul.mubr.f32.gmra.mrb[242].mxu1 %v1507_v5  ;;  %v1513_v2 = vld [vmem:[%s10527_s3 + $0xb88] sm:$0xff]  ;;  %v9316_v5 = vpop.f32.mrb[198].mxu0 }
 0x373   : > { %2298 = vmatprep.mubr.f32.mxu1 %v1511_v34  ;;  %v1517_v34 = vld [vmem:[%s10527_s3 + $0xba8] sm:$0xff]  ;;  %v9321_v45 = vpop.f32.mrb[199].mxu0 }
 0x374   : > { %10593 = vst [vmem:[#allocation51_spill] sm:$0xff] %v9302_v29 }
 0x375   : > { %v2035_v59 = vpop.f32.mrb[138].mxu1 }
 0x376   : > { %v9311_v58 = vadd.f32 %v9068_v3, %v2035_v59  ;;  %v2037_v41 = vpop.f32.mrb[139].mxu1  ;;  %2299 = vmatmul.mubr.f32.gmra.mrb[244].mxu1 %v1510_v57  ;;  %v1520_v57 = vld [vmem:[%s10527_s3 + $0xbc0] sm:$0xff] }
 0x377   : > { %2303 = vmatprep.mubr.f32.mxu1 %v1514_v50  ;;  %v1516_v41 = vld [vmem:[%s10527_s3 + $0xba0] sm:$0xff] }
 0x378   : > { %10594 = vst [vmem:[#allocation52_spill] sm:$0xff] %v9311_v58 }
 0x379   : > { %v2040_v55 = vpop.f32.mrb[140].mxu1 }
 0x37a   : > { %v9324_v29 = vadd.f32 %v9086_v40, %v2040_v55  ;;  %v2042_v3 = vpop.f32.mrb[141].mxu1  ;;  %2304 = vmatmul.mubr.f32.gmra.mrb[246].mxu1 %v1513_v2  ;;  %v1519_v40 = vld [vmem:[%s10527_s3 + $0xbb8] sm:$0xff] }
 0x37b   : > { %2308 = vmatprep.mubr.f32.mxu1 %v1517_v34  ;;  %v1523_v34 = vld [vmem:[%s10527_s3 + $0xbd8] sm:$0xff] }
 0x37c   : > { %10595 = vst [vmem:[#allocation53_spill] sm:$0xff] %v9324_v29  ;;  %v9338_v2 = vpop.f32.mrb[200].mxu0 }
 0x37d   : > { %v2045_v50 = vpop.f32.mrb[142].mxu1  ;;  %v9343_v55 = vpop.f32.mrb[201].mxu0 }
 0x37e   : > { %v9333_v59 = vadd.f32 %v9081_v63, %v2045_v50  ;;  %v2047_v58 = vpop.f32.mrb[143].mxu1  ;;  %2309 = vmatmul.mubr.f32.gmra.mrb[248].mxu1 %v1516_v41  ;;  %v1526_v41 = vld [vmem:[%s10527_s3 + $0xbf0] sm:$0xff] }
 0x37f   : > { %2313 = vmatprep.mubr.f32.mxu1 %v1520_v57  ;;  %v1522_v58 = vld [vmem:[%s10527_s3 + $0xbd0] sm:$0xff] }
 0x380   : > { %10596 = vst [vmem:[#allocation54_spill] sm:$0xff] %v9333_v59 }
 0x381   : > { %v2050_v3 = vpop.f32.mrb[144].mxu1 }
 0x382   : > { %v9346_v29 = vadd.f32 %v9099_v23, %v2050_v3  ;;  %v2052_v63 = vpop.f32.mrb[145].mxu1  ;;  %2314 = vmatmul.mubr.f32.gmra.mrb[250].mxu1 %v1519_v40  ;;  %v1525_v23 = vld [vmem:[%s10527_s3 + $0xbe8] sm:$0xff] }
 0x383   : > { %2318 = vmatprep.mubr.f32.mxu1 %v1523_v34  ;;  %v1529_v34 = vld [vmem:[%s10527_s3 + $0xc08] sm:$0xff] }
 0x384   : > { %10597 = vst [vmem:[#allocation55_spill] sm:$0xff] %v9346_v29  ;;  %v9360_v40 = vpop.f32.mrb[202].mxu0 }
 0x385   : > { %v2055_v57 = vpop.f32.mrb[146].mxu1  ;;  %v9365_v3 = vpop.f32.mrb[203].mxu0 }
 0x386   : > { %v9355_v50 = vadd.f32 %v9094_v42, %v2055_v57  ;;  %v2057_v59 = vpop.f32.mrb[147].mxu1  ;;  %2319 = vmatmul.mubr.f32.gmra.mrb[252].mxu1 %v1522_v58  ;;  %v1532_v58 = vld [vmem:[%s10527_s3 + $0xc20] sm:$0xff] }
 0x387   : > { %2323 = vmatprep.mubr.f32.mxu1 %v1526_v41  ;;  %v1528_v59 = vld [vmem:[%s10527_s3 + $0xc00] sm:$0xff] }
 0x388   : > { %10598 = vst [vmem:[#allocation56_spill] sm:$0xff] %v9355_v50 }
 0x389   : > { %v2060_v63 = vpop.f32.mrb[148].mxu1 }
 0x38a   : > { %v9368_v29 = vadd.f32 %v9112_v13, %v2060_v63  ;;  %v2062_v42 = vpop.f32.mrb[149].mxu1  ;;  %2324 = vmatmul.mubr.f32.gmra.mrb[254].mxu1 %v1525_v23  ;;  %v1531_v13 = vld [vmem:[%s10527_s3 + $0xc18] sm:$0xff] }
 0x38b   : > { %2328 = vmatprep.mubr.f32.mxu1 %v1529_v34  ;;  %v1535_v34 = vld [vmem:[%s10527_s3 + $0xc38] sm:$0xff] }
 0x38c   : > { %10599 = vst [vmem:[#allocation57_spill] sm:$0xff] %v9368_v29  ;;  %v9382_v23 = vpop.f32.mrb[204].mxu0 }
 0x38d   : > { %v2065_v41 = vpop.f32.mrb[150].mxu1  ;;  %10601 = vst [vmem:[#allocation59_spill] sm:$0xff] %v9382_v23  ;;  %v9387_v63 = vpop.f32.mrb[205].mxu0 }
 0x38e   : > { %v9377_v57 = vadd.f32 %v9107_v25, %v2065_v41  ;;  %v2067_v50 = vpop.f32.mrb[151].mxu1  ;;  %2329 = vmatmul.mubr.f32.gmra.mrb[0].mxu1 %v1528_v59  ;;  %v1538_v59 = vld [vmem:[%s10527_s3 + $0xc50] sm:$0xff] }
 0x38f   : > { %2333 = vmatprep.mubr.f32.mxu1 %v1532_v58  ;;  %v1534_v50 = vld [vmem:[%s10527_s3 + $0xc30] sm:$0xff] }
 0x390   : > { %10600 = vst [vmem:[#allocation58_spill] sm:$0xff] %v9377_v57 }
 0x391   : > { %v2070_v42 = vpop.f32.mrb[152].mxu1 }
 0x392   : > { %v9390_v29 = vadd.f32 %v9125_v0, %v2070_v42  ;;  %v2072_v25 = vpop.f32.mrb[153].mxu1  ;;  %2334 = vmatmul.mubr.f32.gmra.mrb[2].mxu1 %v1531_v13  ;;  %v1537_v0 = vld [vmem:[%s10527_s3 + $0xc48] sm:$0xff] }
 0x393   : > { %2338 = vmatprep.mubr.f32.mxu1 %v1535_v34  ;;  %v1541_v34 = vld [vmem:[%s10527_s3 + $0xc68] sm:$0xff] }
 0x394   : > { %10602 = vst [vmem:[#allocation60_spill] sm:$0xff] %v9390_v29  ;;  %v9401_v23 = vpop.f32.mrb[206].mxu0 }
 0x395   : > { %v2075_v58 = vpop.f32.mrb[154].mxu1  ;;  %10604 = vst [vmem:[#allocation62_spill] sm:$0xff] %v9401_v23  ;;  %v9406_v13 = vpop.f32.mrb[207].mxu0 }
 0x396   : > { %v9399_v41 = vadd.f32 %v9120_v6, %v2075_v58  ;;  %v2077_v57 = vpop.f32.mrb[155].mxu1  ;;  %2339 = vmatmul.mubr.f32.gmra.mrb[4].mxu1 %v1534_v50  ;;  %10605 = vst [vmem:[#allocation63_spill] sm:$0xff] %v9406_v13  ;;  %v1540_v50 = vld [vmem:[%s10527_s3 + $0xc60] sm:$0xff]  ;;  %v5750_v13 = vld [vmem:[%s10528_s4 + $0xb0] sm:$0xff] }
 0x397   : > { %2343 = vmatprep.mubr.f32.mxu1 %v1538_v59  ;;  %v1544_v58 = vld [vmem:[%s10527_s3 + $0xc80] sm:$0xff] }
 0x398   : > { %10603 = vst [vmem:[#allocation61_spill] sm:$0xff] %v9399_v41  ;;  %v9414_v57 = vpop.f32.mrb[208].mxu0 }
 0x399   : > { %v2080_v42 = vpop.f32.mrb[156].mxu1  ;;  %10607 = vst [vmem:[#allocation65_spill] sm:$0xff] %v9414_v57  ;;  %v9419_v59 = vpop.f32.mrb[209].mxu0 }
 0x39a   : > { %v9412_v25 = vadd.f32 %v9138_v36, %v2080_v42  ;;  %v2082_v6 = vpop.f32.mrb[157].mxu1  ;;  %2344 = vmatmul.mubr.f32.gmra.mrb[6].mxu1 %v1537_v0  ;;  %10608 = vst [vmem:[#allocation66_spill] sm:$0xff] %v9419_v59 }
 0x39b   : > { %2348 = vmatprep.mubr.f32.mxu1 %v1541_v34  ;;  %v1543_v34 = vld [vmem:[%s10527_s3 + $0xc78] sm:$0xff] }
 0x39c   : > { %10606 = vst [vmem:[#allocation64_spill] sm:$0xff] %v9412_v25  ;;  %v9427_v0 = vpop.f32.mrb[210].mxu0  ;;  %v1547_v6 = vld [vmem:[%s10527_s3 + $0xc98] sm:$0xff] }
 0x39d   : > { %v2085_v41 = vpop.f32.mrb[158].mxu1  ;;  %10610 = vst [vmem:[#allocation68_spill] sm:$0xff] %v9427_v0  ;;  %v9432_v42 = vpop.f32.mrb[211].mxu0 }
 0x39e   : > { %v9425_v29 = vadd.f32 %v9133_v28, %v2085_v41  ;;  %v2087_v36 = vpop.f32.mrb[159].mxu1  ;;  %2349 = vmatmul.mubr.f32.gmra.mrb[8].mxu1 %v1540_v50  ;;  %10611 = vst [vmem:[#allocation69_spill] sm:$0xff] %v9432_v42  ;;  %v5746_v41 = vld [vmem:[%s10528_s4 + $0x90] sm:$0xff]  ;;  %v5748_v50 = vld [vmem:[%s10528_s4 + $0xa0] sm:$0xff] }
 0x39f   : > { %2353 = vmatprep.mubr.f32.mxu1 %v1544_v58  ;;  %v1546_v36 = vld [vmem:[%s10527_s3 + $0xc90] sm:$0xff] }
 0x3a0   : > { %10609 = vst [vmem:[#allocation67_spill] sm:$0xff] %v9425_v29  ;;  %v9444_v58 = vpop.f32.mrb[212].mxu0 }
 0x3a1   : > { %v2090_v25 = vpop.f32.mrb[160].mxu1  ;;  %10612 = vst [vmem:[#allocation70_spill] sm:$0xff] %v9444_v58  ;;  %v6790_v58 = vpack.c.bf16 %v5748_v50, %v5746_v41  ;;  %v1549_v41 = vld [vmem:[%s10527_s3 + $0xca8] sm:$0xff] }
 0x3a2   : > { %v2956_v57 = vadd.f32 %v9151_v27, %v2090_v25  ;;  %v2092_v28 = vpop.f32.mrb[161].mxu1  ;;  %2354 = vmatmul.mubr.f32.gmra.mrb[10].mxu1 %v1543_v34  ;;  %v5751_v27 = vld [vmem:[%s10528_s4 + $0xb8] sm:$0xff]  ;;  %v5753_v25 = vld [vmem:[%s10528_s4 + $0xc8] sm:$0xff]  ;;  %v9455_v34 = vpop.f32.mrb[213].mxu0 }
 0x3a3   : > { %2358 = vmatprep.mubr.f32.mxu1 %v1547_v6  ;;  %10613 = vst [vmem:[#allocation71_spill] sm:$0xff] %v9455_v34  ;;  %v1550_v6 = vld [vmem:[%s10527_s3 + $0xcb0] sm:$0xff]  ;;  %v6792_v23 = vpack.c.bf16 %v5753_v25, %v5751_v27  ;;  %v10616_v25 = vmov 0.0  }
 0x3a4   : > { %v3354_v28 = vmax.f32 %v8450_v47, %v2956_v57  ;;  %v5752_v47 = vld [vmem:[%s10528_s4 + $0xc0] sm:$0xff]  ;;  %v9468_v57 = vpop.f32.mrb[214].mxu0 }
 0x3a5   : > { %v2095_v29 = vpop.f32.mrb[162].mxu1  ;;  %10614 = vst [vmem:[#allocation72_spill] sm:$0xff] %v9468_v57 }
 0x3a6   : > { %v3434_v0 = vmax.f32 %v3354_v28, 0.0  ;;  %v2961_v42 = vadd.f32 %v9146_v20, %v2095_v29  ;;  %v2097_v59 = vpop.f32.mrb[163].mxu1  ;;  %2359 = vmatmul.mubr.f32.gmra.mrb[12].mxu1 %v1546_v36  ;;  %v5755_v29 = vld [vmem:[%s10528_s4 + $0xd8] sm:$0xff]  ;;  %v5757_v20 = vld [vmem:[%s10528_s4 + $0xe8] sm:$0xff]  ;;  %v6794_v28 = vpack.c.bf16 %v5752_v47, %v5750_v13  ;;  %v1552_v13 = vld [vmem:[%s10527_s3 + $0xcc0] sm:$0xff] }
 0x3a7   : > { %2363 = vmatprep.mubr.f32.mxu1 %v1550_v6  ;;  %v9479_v59 = vpop.f32.mrb[215].mxu0  ;;  %v1553_v36 = vld [vmem:[%s10527_s3 + $0xcc8] sm:$0xff]  ;;  %v1556_v47 = vld [vmem:[%s10527_s3 + $0xce0] sm:$0xff] }
 0x3a8   : > { %10615 = vst [vmem:[#allocation73_spill] sm:$0xff] %v9479_v59  ;;  %v3355_v50 = vmax.f32 %v8444_v43, %v2961_v42  ;;  %5730 = vmatmul.mubr.msk.f32.vlgmr.msra.gmra.mrb[0].mxu0 %vm3533_vm4, %v3434_v0  ;;  %v6796_v59 = vpack.c.bf16 %v5757_v20, %v5755_v29  ;;  %v5754_v43 = vld [vmem:[%s10528_s4 + $0xd0] sm:$0xff]  ;;  %v5756_v0 = vld [vmem:[%s10528_s4 + $0xe0] sm:$0xff]  ;;  %v9494_v42 = vpop.f32.mrb[216].mxu0 }
 0x3a9   : > { %v2100_v27 = vpop.f32.mrb[164].mxu1  ;;  %3652 = vmatprep.mubr.f32.mxu0 %v10616_v25  ;;  %6791 = vmatpush1.bf16.msra.mxu0 %v6790_v58  ;;  %v9505_v58 = vpop.f32.mrb[217].mxu0  ;;  %v6798_v29 = vpack.c.bf16 %v5756_v0, %v5754_v43  ;;  %v1559_v43 = vld [vmem:[%s10527_s3 + $0xcf8] sm:$0xff] }
 0x3aa   : > { %v3435_v6 = vmax.f32 %v3355_v50, 0.0  ;;  %v2966_v57 = vadd.f32 %v9164_v31, %v2100_v27  ;;  %v2102_v34 = vpop.f32.mrb[165].mxu1  ;;  %2364 = vmatmul.mubr.f32.gmra.mrb[14].mxu1 %v1549_v41  ;;  %6793 = vmatprep.subr.bf16.mxu0 %v6792_v23  ;;  %v5759_v31 = vld [vmem:[%s10528_s4 + $0xf8] sm:$0xff]  ;;  %v5761_v23 = vld [vmem:[%s10528_s4 + $0x108] sm:$0xff] }
 0x3ab   : > { %2368 = vmatprep.mubr.f32.mxu1 %v1553_v36  ;;  %v6800_v27 = vpack.c.bf16 %v5761_v23, %v5759_v31 }
 0x3ac   : > { %v3356_v34 = vmax.f32 %v8464_v54, %v2966_v57  ;;  %5731 = vmatmul.mubr.msk.f32.gmra.mrb[2].mxu0 %vm3533_vm4, %v3435_v6  ;;  %v5758_v54 = vld [vmem:[%s10528_s4 + $0xf0] sm:$0xff]  ;;  %v5760_v57 = vld [vmem:[%s10528_s4 + $0x100] sm:$0xff]  ;;  %v9520_v6 = vpop.f32.mrb[218].mxu0 }
 0x3ad   : > { %v2105_v41 = vpop.f32.mrb[166].mxu1  ;;  %3658 = vmatprep.mubr.f32.mxu0 %v10616_v25  ;;  %6795 = vmatpush1.bf16.msra.mxu0 %v6794_v28  ;;  %v1555_v28 = vld [vmem:[%s10527_s3 + $0xcd8] sm:$0xff] }
 0x3ae   : > { %v3436_v20 = vmax.f32 %v3356_v34, 0.0  ;;  %v2971_v50 = vadd.f32 %v9159_v26, %v2105_v41  ;;  %v2107_v36 = vpop.f32.mrb[167].mxu1  ;;  %2369 = vmatmul.mubr.f32.gmra.mrb[16].mxu1 %v1552_v13  ;;  %6797 = vmatprep.subr.bf16.mxu0 %v6796_v59  ;;  %v9525_v26 = vpop.f32.mrb[219].mxu0  ;;  %v6802_v13 = vpack.c.bf16 %v5760_v57, %v5758_v54  ;;  %v5763_v41 = vld [vmem:[%s10528_s4 + $0x118] sm:$0xff] }
 0x3af   : > { %2373 = vmatprep.mubr.f32.mxu1 %v1556_v47  ;;  %v1562_v36 = vld [vmem:[%s10527_s3 + $0xd10] sm:$0xff] }
 0x3b0   : > { %v3357_v59 = vmax.f32 %v8458_v52, %v2971_v50  ;;  %5732 = vmatmul.mubr.msk.f32.gmra.mrb[4].mxu0 %vm3533_vm4, %v3436_v20  ;;  %v1558_v52 = vld [vmem:[%s10527_s3 + $0xcf0] sm:$0xff]  ;;  %v9537_v47 = vpop.f32.mrb[220].mxu0 }
 0x3b1   : > { %v2110_v0 = vpop.f32.mrb[168].mxu1  ;;  %3664 = vmatprep.mubr.f32.mxu0 %v10616_v25  ;;  %6799 = vmatpush1.bf16.msra.mxu0 %v6798_v29  ;;  %v5781_v29 = vld [vmem:[%s10528_s4 + $0x128] sm:$0xff]  ;;  %v9548_v20 = vpop.f32.mrb[221].mxu0 }
 0x3b2   : > { %v3437_v31 = vmax.f32 %v3357_v59, 0.0  ;;  %v2976_v23 = vadd.f32 %v9177_v24, %v2110_v0  ;;  %v2112_v34 = vpop.f32.mrb[169].mxu1  ;;  %2374 = vmatmul.mubr.f32.gmra.mrb[18].mxu1 %v1555_v28  ;;  %6801 = vmatprep.subr.bf16.mxu0 %v6800_v27  ;;  %v5783_v24 = vld [vmem:[%s10528_s4 + $0x138] sm:$0xff]  ;;  %v1561_v0 = vld [vmem:[%s10527_s3 + $0xd08] sm:$0xff] }
 0x3b3   : > { %2378 = vmatprep.mubr.f32.mxu1 %v1559_v43  ;;  %v6804_v59 = vpack.c.bf16 %v5783_v24, %v5781_v29 }
 0x3b4   : > { %v3358_v50 = vmax.f32 %v8484_v1, %v2976_v23  ;;  %5733 = vmatmul.mubr.msk.f32.gmra.mrb[6].mxu0 %vm3533_vm4, %v3437_v31  ;;  %v5762_v1 = vld [vmem:[%s10528_s4 + $0x110] sm:$0xff]  ;;  %v9560_v43 = vpop.f32.mrb[222].mxu0 }
 0x3b5   : > { %v2115_v27 = vpop.f32.mrb[170].mxu1  ;;  %3670 = vmatprep.mubr.f32.mxu0 %v10616_v25  ;;  %6803 = vmatpush1.bf16.msra.mxu0 %v6802_v13  ;;  %v9565_v31 = vpop.f32.mrb[223].mxu0 }
 0x3b6   : > { %v3438_v54 = vmax.f32 %v3358_v50, 0.0  ;;  %v2981_v57 = vadd.f32 %v9172_v19, %v2115_v27  ;;  %v2117_v28 = vpop.f32.mrb[171].mxu1  ;;  %2379 = vmatmul.mubr.f32.gmra.mrb[20].mxu1 %v1558_v52  ;;  %3869 = vmatprep.subr.mxu0 %v5763_v41  ;;  %v1565_v19 = vld [vmem:[%s10527_s3 + $0xd28] sm:$0xff] }
 0x3b7   : > { %2383 = vmatprep.mubr.f32.mxu1 %v1562_v36 }
 0x3b8   : > { %v3359_v13 = vmax.f32 %v8478_v11, %v2981_v57  ;;  %5734 = vmatmul.mubr.msk.f32.gmra.mrb[8].mxu0 %vm3533_vm4, %v3438_v54  ;;  %v9574_v29 = vpop.f32.mrb[224].mxu0  ;;  %v1564_v11 = vld [vmem:[%s10527_s3 + $0xd20] sm:$0xff] }
 0x3b9   : > { %v2120_v23 = vpop.f32.mrb[172].mxu1  ;;  %3676 = vmatprep.mubr.f32.mxu0 %v10616_v25  ;;  %3870 = vmatpush1.msra.mxu0 %v5762_v1  ;;  %v9579_v24 = vpop.f32.mrb[225].mxu0 }
 0x3ba   : > { %v3439_v34 = vmax.f32 %v3359_v13, 0.0  ;;  %v2986_v52 = vadd.f32 %v9190_v14, %v2120_v23  ;;  %v2122_v41 = vpop.f32.mrb[173].mxu1  ;;  %2384 = vmatmul.mubr.f32.gmra.mrb[22].mxu1 %v1561_v0  ;;  %6805 = vmatprep.subr.bf16.mxu0 %v6804_v59  ;;  %v1568_v14 = vld [vmem:[%s10527_s3 + $0xd40] sm:$0xff]  ;;  %v1571_v0 = vld [vmem:[%s10527_s3 + $0xd58] sm:$0xff] }
 0x3bb   : > { %2388 = vmatprep.mubr.f32.mxu1 %v1565_v19 }
 0x3bc   : > { %v3360_v50 = vmax.f32 %v8498_v9, %v2986_v52  ;;  %5735 = vmatmul.mubr.msk.f32.gmra.mrb[10].mxu0 %vm3533_vm4, %v3439_v34  ;;  %v9588_v28 = vpop.f32.mrb[226].mxu0  ;;  %v1567_v9 = vld [vmem:[%s10527_s3 + $0xd38] sm:$0xff] }
 0x3bd   : > { %v2125_v36 = vpop.f32.mrb[174].mxu1  ;;  %3682 = vmatprep.mubr.f32.mxu0 %v10616_v25  ;;  %v9593_v1 = vpop.f32.mrb[227].mxu0 }
 0x3be   : > { %v3440_v27 = vmax.f32 %v3360_v50, 0.0  ;;  %v2991_v54 = vadd.f32 %v9185_v30, %v2125_v36  ;;  %v2127_v57 = vpop.f32.mrb[175].mxu1  ;;  %2389 = vmatmul.mubr.f32.gmra.mrb[24].mxu1 %v1564_v11  ;;  %v1574_v11 = vld [vmem:[%s10527_s3 + $0xd70] sm:$0xff] }
 0x3bf   : > { %2393 = vmatprep.mubr.f32.mxu1 %v1568_v14 }
 0x3c0   : > { %v3361_v59 = vmax.f32 %v8492_v7, %v2991_v54  ;;  %5736 = vmatmul.mubr.msk.f32.gmra.mrb[12].mxu0 %vm3533_vm4, %v3440_v27  ;;  %v9602_v34 = vpop.f32.mrb[228].mxu0  ;;  %v1570_v7 = vld [vmem:[%s10527_s3 + $0xd50] sm:$0xff] }
 0x3c1   : > { %v2130_v30 = vpop.f32.mrb[176].mxu1  ;;  %3688 = vmatprep.mubr.f32.mxu0 %v10616_v25  ;;  %v9607_v52 = vpop.f32.mrb[229].mxu0 }
 0x3c2   : > { %v3441_v13 = vmax.f32 %v3361_v59, 0.0  ;;  %v2996_v19 = vadd.f32 %v9203_v8, %v2130_v30  ;;  %v2132_v23 = vpop.f32.mrb[177].mxu1  ;;  %2394 = vmatmul.mubr.f32.gmra.mrb[26].mxu1 %v1567_v9  ;;  %v1577_v9 = vld [vmem:[%s10527_s3 + $0xd88] sm:$0xff] }
 0x3c3   : > { %2398 = vmatprep.mubr.f32.mxu1 %v1571_v0 }
 0x3c4   : > { %v3362_v41 = vmax.f32 %v8518_v21, %v2996_v19  ;;  %5737 = vmatmul.mubr.msk.f32.gmra.mrb[14].mxu0 %vm3533_vm4, %v3441_v13  ;;  %v9616_v27 = vpop.f32.mrb[230].mxu0  ;;  %v1573_v21 = vld [vmem:[%s10527_s3 + $0xd68] sm:$0xff] }
 0x3c5   : > { %v2135_v8 = vpop.f32.mrb[178].mxu1  ;;  %3694 = vmatprep.mubr.f32.mxu0 %v10616_v25  ;;  %v9621_v54 = vpop.f32.mrb[231].mxu0 }
 0x3c6   : > { %v3442_v50 = vmax.f32 %v3362_v41, 0.0  ;;  %v3001_v14 = vadd.f32 %v9198_v44, %v2135_v8  ;;  %v2137_v36 = vpop.f32.mrb[179].mxu1  ;;  %2399 = vmatmul.mubr.f32.gmra.mrb[28].mxu1 %v1570_v7  ;;  %v1580_v7 = vld [vmem:[%s10527_s3 + $0xda0] sm:$0xff] }
 0x3c7   : > { %2403 = vmatprep.mubr.f32.mxu1 %v1574_v11 }
 0x3c8   : > { %v3363_v57 = vmax.f32 %v8512_v38, %v3001_v14  ;;  %5738 = vmatmul.mubr.msk.f32.gmra.mrb[16].mxu0 %vm3533_vm4, %v3442_v50  ;;  %v9630_v13 = vpop.f32.mrb[232].mxu0  ;;  %v1576_v38 = vld [vmem:[%s10527_s3 + $0xd80] sm:$0xff] }
 0x3c9   : > { %v2140_v44 = vpop.f32.mrb[180].mxu1  ;;  %3700 = vmatprep.mubr.f32.mxu0 %v10616_v25  ;;  %v9635_v19 = vpop.f32.mrb[233].mxu0 }
 0x3ca   : > { %v3443_v59 = vmax.f32 %v3363_v57, 0.0  ;;  %v3006_v0 = vadd.f32 %v9222_v61, %v2140_v44  ;;  %v2142_v30 = vpop.f32.mrb[181].mxu1  ;;  %2404 = vmatmul.mubr.f32.gmra.mrb[30].mxu1 %v1573_v21  ;;  %v1583_v21 = vld [vmem:[%s10527_s3 + $0xdb8] sm:$0xff] }
 0x3cb   : > { %2408 = vmatprep.mubr.f32.mxu1 %v1577_v9 }
 0x3cc   : > { %v3364_v23 = vmax.f32 %v8532_v35, %v3006_v0  ;;  %5739 = vmatmul.mubr.msk.f32.gmra.mrb[18].mxu0 %vm3533_vm4, %v3443_v59  ;;  %v9644_v50 = vpop.f32.mrb[234].mxu0  ;;  %v1579_v35 = vld [vmem:[%s10527_s3 + $0xd98] sm:$0xff] }
 0x3cd   : > { %v2145_v61 = vpop.f32.mrb[182].mxu1  ;;  %3706 = vmatprep.mubr.f32.mxu0 %v10616_v25  ;;  %v9649_v14 = vpop.f32.mrb[235].mxu0 }
 0x3ce   : > { %v3444_v41 = vmax.f32 %v3364_v23, 0.0  ;;  %v3011_v11 = vadd.f32 %v9217_v12, %v2145_v61  ;;  %v2147_v8 = vpop.f32.mrb[183].mxu1  ;;  %2409 = vmatmul.mubr.f32.gmra.mrb[32].mxu1 %v1576_v38  ;;  %v1586_v38 = vld [vmem:[%s10527_s3 + $0xdd0] sm:$0xff] }
 0x3cf   : > { %2413 = vmatprep.mubr.f32.mxu1 %v1580_v7 }
 0x3d0   : > { %v3365_v36 = vmax.f32 %v8526_v32, %v3011_v11  ;;  %5740 = vmatmul.mubr.msk.f32.gmra.mrb[20].mxu0 %vm3533_vm4, %v3444_v41  ;;  %v9658_v59 = vpop.f32.mrb[236].mxu0  ;;  %v1582_v32 = vld [vmem:[%s10527_s3 + $0xdb0] sm:$0xff] }
 0x3d1   : > { %v2150_v12 = vpop.f32.mrb[184].mxu1  ;;  %3712 = vmatprep.mubr.f32.mxu0 %v10616_v25  ;;  %v9663_v0 = vpop.f32.mrb[237].mxu0 }
 0x3d2   : > { %v3445_v57 = vmax.f32 %v3365_v36, 0.0  ;;  %v3016_v9 = vadd.f32 %v9235_v49, %v2150_v12  ;;  %v2152_v44 = vpop.f32.mrb[185].mxu1  ;;  %2414 = vmatmul.mubr.f32.gmra.mrb[34].mxu1 %v1579_v35  ;;  %v1589_v35 = vld [vmem:[%s10527_s3 + $0xde8] sm:$0xff] }
 0x3d3   : > { %2418 = vmatprep.mubr.f32.mxu1 %v1583_v21 }
 0x3d4   : > { %v3366_v30 = vmax.f32 %v8552_v46, %v3016_v9  ;;  %5741 = vmatmul.mubr.msk.f32.gmra.mrb[22].mxu0 %vm3533_vm4, %v3445_v57  ;;  %v9672_v41 = vpop.f32.mrb[238].mxu0  ;;  %v1585_v46 = vld [vmem:[%s10527_s3 + $0xdc8] sm:$0xff] }
 0x3d5   : > { %v2155_v49 = vpop.f32.mrb[186].mxu1  ;;  %3718 = vmatprep.mubr.f32.mxu0 %v10616_v25  ;;  %v9677_v11 = vpop.f32.mrb[239].mxu0 }
 0x3d6   : > { %v3446_v23 = vmax.f32 %v3366_v30, 0.0  ;;  %v3021_v7 = vadd.f32 %v9230_v60, %v2155_v49  ;;  %v2157_v61 = vpop.f32.mrb[187].mxu1  ;;  %2419 = vmatmul.mubr.f32.gmra.mrb[36].mxu1 %v1582_v32  ;;  %v1592_v32 = vld [vmem:[%s10527_s3 + $0xe00] sm:$0xff] }
 0x3d7   : > { %2423 = vmatprep.mubr.f32.mxu1 %v1586_v38 }
 0x3d8   : > { %v3367_v8 = vmax.f32 %v8546_v62, %v3021_v7  ;;  %5742 = vmatmul.mubr.msk.f32.gmra.mrb[24].mxu0 %vm3533_vm4, %v3446_v23  ;;  %v9686_v57 = vpop.f32.mrb[240].mxu0  ;;  %v1588_v62 = vld [vmem:[%s10527_s3 + $0xde0] sm:$0xff] }
 0x3d9   : > { %v2160_v60 = vpop.f32.mrb[188].mxu1  ;;  %3724 = vmatprep.mubr.f32.mxu0 %v10616_v25  ;;  %v9691_v9 = vpop.f32.mrb[241].mxu0 }
 0x3da   : > { %v3447_v36 = vmax.f32 %v3367_v8, 0.0  ;;  %v3026_v21 = vadd.f32 %v9248_v39, %v2160_v60  ;;  %v2162_v12 = vpop.f32.mrb[189].mxu1  ;;  %2424 = vmatmul.mubr.f32.gmra.mrb[38].mxu1 %v1585_v46  ;;  %v1595_v46 = vld [vmem:[%s10527_s3 + $0xe18] sm:$0xff] }
 0x3db   : > { %2428 = vmatprep.mubr.f32.mxu1 %v1589_v35  ;;  %v1594_v12 = vld [vmem:[%s10527_s3 + $0xe10] sm:$0xff] }
 0x3dc   : > { %v3368_v44 = vmax.f32 %v8564_v10, %v3026_v21  ;;  %5743 = vmatmul.mubr.msk.f32.gmra.mrb[26].mxu0 %vm3533_vm4, %v3447_v36  ;;  %v9700_v23 = vpop.f32.mrb[242].mxu0  ;;  %v1591_v10 = vld [vmem:[%s10527_s3 + $0xdf8] sm:$0xff]  ;;  %v5780_v36 = vld [vmem:[%s10528_s4 + $0x120] sm:$0xff] }
 0x3dd   : > { %v2165_v39 = vpop.f32.mrb[190].mxu1  ;;  %3730 = vmatprep.mubr.f32.mxu0 %v10616_v25  ;;  %v9705_v7 = vpop.f32.mrb[243].mxu0 }
 0x3de   : > { %v3448_v30 = vmax.f32 %v3368_v44, 0.0  ;;  %v3031_v38 = vadd.f32 %v9243_v17, %v2165_v39  ;;  %v2167_v49 = vpop.f32.mrb[191].mxu1  ;;  %2429 = vmatmul.mubr.f32.gmra.mrb[40].mxu1 %v1588_v62  ;;  %v5787_v62 = vld [vmem:[%s10528_s4 + $0x158] sm:$0xff]  ;;  %v1598_v39 = vld [vmem:[%s10527_s3 + $0xe30] sm:$0xff] }
 0x3df   : > { %2433 = vmatprep.mubr.f32.mxu1 %v1592_v32 }
 0x3e0   : > { %v3369_v61 = vmax.f32 %v8558_v53, %v3031_v38  ;;  %5744 = vmatmul.mubr.msk.f32.gmra.mrb[28].mxu0 %vm3533_vm4, %v3448_v30  ;;  %v5782_v53 = vld [vmem:[%s10528_s4 + $0x130] sm:$0xff]  ;;  %v9720_v21 = vpop.f32.mrb[244].mxu0 }
 0x3e1   : > { %v2170_v17 = vpop.f32.mrb[192].mxu1  ;;  %3736 = vmatprep.mubr.f32.mxu0 %v10616_v25  ;;  %v9731_v44 = vpop.f32.mrb[245].mxu0  ;;  %v6806_v38 = vpack.c.bf16 %v5782_v53, %v5780_v36 }
 0x3e2   : > { %v3449_v8 = vmax.f32 %v3369_v61, 0.0  ;;  %v3036_v35 = vadd.f32 %v9261_v48, %v2170_v17  ;;  %v2172_v60 = vpop.f32.mrb[193].mxu1  ;;  %2434 = vmatmul.mubr.f32.gmra.mrb[42].mxu1 %v1591_v10  ;;  %v5785_v48 = vld [vmem:[%s10528_s4 + $0x148] sm:$0xff]  ;;  %v5786_v17 = vld [vmem:[%s10528_s4 + $0x150] sm:$0xff] }
 0x3e3   : > { %2438 = vmatprep.mubr.f32.mxu1 %v1595_v46  ;;  %v6808_v46 = vpack.c.bf16 %v5787_v62, %v5785_v48  ;;  %v5791_v60 = vld [vmem:[%s10528_s4 + $0x178] sm:$0xff] }
 0x3e4   : > { %v3370_v32 = vmax.f32 %v8584_v4, %v3036_v35  ;;  %5745 = vmatmul.mubr.msk.f32.gmra.mrb[30].mxu0 %vm3533_vm4, %v3449_v8  ;;  %v5784_v4 = vld [vmem:[%s10528_s4 + $0x140] sm:$0xff]  ;;  %v9746_v8 = vpop.f32.mrb[246].mxu0  ;;  %v1597_v35 = vld [vmem:[%s10527_s3 + $0xe28] sm:$0xff] }
 0x3e5   : > { %v2175_v30 = vpop.f32.mrb[194].mxu1  ;;  %3917 = vmatprep.mubr.f32.mxu0 %v10616_v25  ;;  %v9757_v36 = vpop.f32.mrb[247].mxu0  ;;  %v6810_v62 = vpack.c.bf16 %v5786_v17, %v5784_v4  ;;  %v1604_v17 = vld [vmem:[%s10527_s3 + $0xe60] sm:$0xff] }
 0x3e6   : > { %v3450_v49 = vmax.f32 %v3370_v32, 0.0  ;;  %v3041_v10 = vadd.f32 %v9256_v33, %v2175_v30  ;;  %v2177_v61 = vpop.f32.mrb[195].mxu1  ;;  %2439 = vmatmul.mubr.f32.gmra.mrb[44].mxu1 %v1594_v12  ;;  %v5789_v33 = vld [vmem:[%s10528_s4 + $0x168] sm:$0xff] }
 0x3e7   : > { %2443 = vmatprep.mubr.f32.mxu1 %v1598_v39  ;;  %v1601_v12 = vld [vmem:[%s10527_s3 + $0xe48] sm:$0xff]  ;;  %v6812_v61 = vpack.c.bf16 %v5791_v60, %v5789_v33 }
 0x3e8   : > { %v3371_v53 = vmax.f32 %v8578_v22, %v3041_v10  ;;  %5764 = vmatmul.mubr.msk.f32.vlgmr.msra.gmra.mrb[0].mxu0 %vm3533_vm4, %v3450_v49  ;;  %v5788_v22 = vld [vmem:[%s10528_s4 + $0x160] sm:$0xff]  ;;  %v5790_v49 = vld [vmem:[%s10528_s4 + $0x170] sm:$0xff]  ;;  %v5795_v10 = vld [vmem:[%s10528_s4 + $0x198] sm:$0xff] }
 0x3e9   : > { %v2180_v48 = vpop.f32.mrb[196].mxu1  ;;  %3923 = vmatprep.mubr.f32.mxu0 %v10616_v25  ;;  %6807 = vmatpush1.bf16.msra.mxu0 %v6806_v38  ;;  %v1600_v38 = vld [vmem:[%s10527_s3 + $0xe40] sm:$0xff]  ;;  %v6814_v60 = vpack.c.bf16 %v5790_v49, %v5788_v22 }
 0x3ea   : > { %v3451_v32 = vmax.f32 %v3371_v53, 0.0  ;;  %v3046_v39 = vadd.f32 %v9277_v18, %v2180_v48  ;;  %v2182_v30 = vpop.f32.mrb[197].mxu1  ;;  %2444 = vmatmul.mubr.f32.gmra.mrb[46].mxu1 %v1597_v35  ;;  %6809 = vmatprep.subr.bf16.mxu0 %v6808_v46  ;;  %v5793_v18 = vld [vmem:[%s10528_s4 + $0x188] sm:$0xff]  ;;  %v9781_v46 = vpop.f32.mrb[248].mxu0 }
 0x3eb   : > { %2448 = vmatprep.mubr.f32.mxu1 %v1601_v12  ;;  %v9788_v35 = vpop.f32.mrb[249].mxu0 }
 0x3ec   : > { %v3372_v4 = vmax.f32 %v8602_v16, %v3046_v39  ;;  %5765 = vmatmul.mubr.msk.f32.gmra.mrb[2].mxu0 %vm3533_vm4, %v3451_v32  ;;  %v6816_v16 = vpack.c.bf16 %v5795_v10, %v5793_v18  ;;  %v5792_v32 = vld [vmem:[%s10528_s4 + $0x180] sm:$0xff]  ;;  %v5794_v39 = vld [vmem:[%s10528_s4 + $0x190] sm:$0xff] }
 0x3ed   : > { %v2185_v33 = vpop.f32.mrb[198].mxu1  ;;  %3929 = vmatprep.mubr.f32.mxu0 %v10616_v25  ;;  %6811 = vmatpush1.bf16.msra.mxu0 %v6810_v62  ;;  %v1603_v62 = vld [vmem:[%s10527_s3 + $0xe58] sm:$0xff] }
 0x3ee   : > { %v3452_v53 = vmax.f32 %v3372_v4, 0.0  ;;  %v3051_v12 = vadd.f32 %v9272_v51, %v2185_v33  ;;  %v2187_v48 = vpop.f32.mrb[199].mxu1  ;;  %2449 = vmatmul.mubr.f32.gmra.mrb[48].mxu1 %v1600_v38  ;;  %6813 = vmatprep.subr.bf16.mxu0 %v6812_v61  ;;  %v9801_v30 = vpop.f32.mrb[250].mxu0  ;;  %v1607_v61 = vld [vmem:[%s10527_s3 + $0xe78] sm:$0xff]  ;;  %v6818_v38 = vpack.c.bf16 %v5794_v39, %v5792_v32 }
 0x3ef   : > { %2453 = vmatprep.mubr.f32.mxu1 %v1604_v17  ;;  %v9808_v22 = vpop.f32.mrb[251].mxu0  ;;  %v5797_v17 = vld [vmem:[%s10528_s4 + $0x1a8] sm:$0xff]  ;;  %v5815_v33 = vld [vmem:[%s10528_s4 + $0x1b8] sm:$0xff]  ;;  %v1610_v48 = vld [vmem:[%s10527_s3 + $0xe90] sm:$0xff] }
 0x3f0   : > { %v3373_v51 = vmax.f32 %v8596_v37, %v3051_v12  ;;  %5766 = vmatmul.mubr.msk.f32.gmra.mrb[4].mxu0 %vm3533_vm4, %v3452_v53  ;;  %v1606_v37 = vld [vmem:[%s10527_s3 + $0xe70] sm:$0xff] }
 0x3f1   : > { %v2190_v49 = vpop.f32.mrb[200].mxu1  ;;  %3935 = vmatprep.mubr.f32.mxu0 %v10616_v25  ;;  %6815 = vmatpush1.bf16.msra.mxu0 %v6814_v60  ;;  %v10617_v53 = vld [vmem:[#allocation4_spill] sm:$0xff] }
 0x3f2   : > { %v3453_v18 = vmax.f32 %v3373_v51, 0.0  ;;  %v3056_v10 = vadd.f32 %v9299_v15, %v2190_v49  ;;  %v2192_v4 = vpop.f32.mrb[201].mxu1  ;;  %2454 = vmatmul.mubr.f32.gmra.mrb[50].mxu1 %v1603_v62  ;;  %6817 = vmatprep.subr.bf16.mxu0 %v6816_v16  ;;  %v5817_v15 = vld [vmem:[%s10528_s4 + $0x1c8] sm:$0xff]  ;;  %v9824_v60 = vpop.f32.mrb[252].mxu0 }
 0x3f3   : > { %2458 = vmatprep.mubr.f32.mxu1 %v1607_v61  ;;  %v9831_v16 = vpop.f32.mrb[253].mxu0  ;;  %v5796_v61 = vld [vmem:[%s10528_s4 + $0x1a0] sm:$0xff]  ;;  %v6820_v49 = vpack.c.bf16 %v5817_v15, %v5815_v33  ;;  %v10618_v4 = vld [vmem:[#allocation3_spill] sm:$0xff] }
 0x3f4   : > { %v3374_v12 = vmax.f32 %v10617_v53, %v3056_v10  ;;  %5767 = vmatmul.mubr.msk.f32.gmra.mrb[6].mxu0 %vm3533_vm4, %v3453_v18  ;;  %v1609_v18 = vld [vmem:[%s10527_s3 + $0xe88] sm:$0xff] }
 0x3f5   : > { %v2195_v32 = vpop.f32.mrb[202].mxu1  ;;  %3941 = vmatprep.mubr.f32.mxu0 %v10616_v25  ;;  %6819 = vmatpush1.bf16.msra.mxu0 %v6818_v38 }
 0x3f6   : > { %v3454_v39 = vmax.f32 %v3374_v12, 0.0  ;;  %v3061_v62 = vadd.f32 %v9294_v56, %v2195_v32  ;;  %v2197_v51 = vpop.f32.mrb[203].mxu1  ;;  %2459 = vmatmul.mubr.f32.gmra.mrb[52].mxu1 %v1606_v37  ;;  %4129 = vmatprep.subr.mxu0 %v5797_v17  ;;  %v9841_v10 = vpop.f32.mrb[254].mxu0  ;;  %v1613_v56 = vld [vmem:[%s10527_s3 + $0xea8] sm:$0xff]  ;;  %v1612_v12 = vld [vmem:[%s10527_s3 + $0xea0] sm:$0xff] }
 0x3f7   : > { %2463 = vmatprep.mubr.f32.mxu1 %v1610_v48  ;;  %v9848_v37 = vpop.f32.mrb[255].mxu0  ;;  %v10619_v48 = vld [vmem:[#allocation6_spill] sm:$0xff] }
 0x3f8   : > { %v3375_v38 = vmax.f32 %v10618_v4, %v3061_v62  ;;  %5768 = vmatmul.mubr.msk.f32.gmra.mrb[8].mxu0 %vm3533_vm4, %v3454_v39  ;;  %v1616_v39 = vld [vmem:[%s10527_s3 + $0xec0] sm:$0xff] }
 0x3f9   : > { %v2200_v17 = vpop.f32.mrb[204].mxu1  ;;  %3947 = vmatprep.mubr.f32.mxu0 %v10616_v25  ;;  %4130 = vmatpush1.msra.mxu0 %v5796_v61 }
 0x3fa   : > { %v3455_v33 = vmax.f32 %v3375_v38, 0.0  ;;  %v3066_v15 = vadd.f32 %v9321_v45, %v2200_v17  ;;  %v2202_v53 = vpop.f32.mrb[205].mxu1  ;;  %2464 = vmatmul.mubr.f32.gmra.mrb[54].mxu1 %v1609_v18  ;;  %6821 = vmatprep.subr.bf16.mxu0 %v6820_v49  ;;  %v1615_v49 = vld [vmem:[%s10527_s3 + $0xeb8] sm:$0xff] }
 0x3fb   : > { %2468 = vmatprep.mubr.f32.mxu1 %v1613_v56  ;;  %v10620_v18 = vld [vmem:[#allocation5_spill] sm:$0xff]  ;;  %v10621_v53 = vld [vmem:[#allocation8_spill] sm:$0xff] }
 0x3fc   : > { %v3376_v32 = vmax.f32 %v10619_v48, %v3066_v15  ;;  %5769 = vmatmul.mubr.msk.f32.gmra.mrb[10].mxu0 %vm3533_vm4, %v3455_v33  ;;  %v1619_v38 = vld [vmem:[%s10527_s3 + $0xed8] sm:$0xff]  ;;  %v1618_v15 = vld [vmem:[%s10527_s3 + $0xed0] sm:$0xff] }
 0x3fd   : > { %v2205_v62 = vpop.f32.mrb[206].mxu1  ;;  %3953 = vmatprep.mubr.f32.mxu0 %v10616_v25  ;;  %v1622_v48 = vld [vmem:[%s10527_s3 + $0xef0] sm:$0xff] }
 0x3fe   : > { %v3456_v45 = vmax.f32 %v3376_v32, 0.0  ;;  %v3071_v51 = vadd.f32 %v9316_v5, %v2205_v62  ;;  %v2207_v61 = vpop.f32.mrb[207].mxu1  ;;  %2469 = vmatmul.mubr.f32.gmra.mrb[56].mxu1 %v1612_v12 }
 0x3ff   : > { %2473 = vmatprep.mubr.f32.mxu1 %v1616_v39 }
 0x400   : > { %v3377_v4 = vmax.f32 %v10620_v18, %v3071_v51  ;;  %5770 = vmatmul.mubr.msk.f32.gmra.mrb[12].mxu0 %vm3533_vm4, %v3456_v45  ;;  %v1621_v45 = vld [vmem:[%s10527_s3 + $0xee8] sm:$0xff] }
 0x401   : > { %v2210_v56 = vpop.f32.mrb[208].mxu1  ;;  %3959 = vmatprep.mubr.f32.mxu0 %v10616_v25  ;;  %v10622_v51 = vld [vmem:[#allocation7_spill] sm:$0xff] }
 0x402   : > { %v3457_v17 = vmax.f32 %v3377_v4, 0.0  ;;  %v3076_v5 = vadd.f32 %v9343_v55, %v2210_v56  ;;  %v2212_v33 = vpop.f32.mrb[209].mxu1  ;;  %2474 = vmatmul.mubr.f32.gmra.mrb[58].mxu1 %v1615_v49 }
 0x403   : > { %2478 = vmatprep.mubr.f32.mxu1 %v1619_v38 }
 0x404   : > { %v3378_v12 = vmax.f32 %v10621_v53, %v3076_v5  ;;  %5771 = vmatmul.mubr.msk.f32.gmra.mrb[14].mxu0 %vm3533_vm4, %v3457_v17  ;;  %v10624_v53 = vld [vmem:[#allocation9_spill] sm:$0xff] }
 0x405   : > { %v2215_v32 = vpop.f32.mrb[210].mxu1  ;;  %3965 = vmatprep.mubr.f32.mxu0 %v10616_v25 }
 0x406   : > { %v3458_v39 = vmax.f32 %v3378_v12, 0.0  ;;  %v3081_v55 = vadd.f32 %v9338_v2, %v2215_v32  ;;  %v2217_v62 = vpop.f32.mrb[211].mxu1  ;;  %2479 = vmatmul.mubr.f32.gmra.mrb[60].mxu1 %v1618_v15  ;;  %v10623_v2 = vld [vmem:[#allocation10_spill] sm:$0xff] }
 0x407   : > { %2483 = vmatprep.mubr.f32.mxu1 %v1622_v48 }
 0x408   : > { %v3379_v61 = vmax.f32 %v10622_v51, %v3081_v55  ;;  %5772 = vmatmul.mubr.msk.f32.gmra.mrb[16].mxu0 %vm3533_vm4, %v3458_v39  ;;  %v10625_v55 = vld [vmem:[#allocation12_spill] sm:$0xff]  ;;  %v10626_v51 = vld [vmem:[#allocation59_spill] sm:$0xff] }
 0x409   : > { %v2220_v49 = vpop.f32.mrb[212].mxu1  ;;  %3971 = vmatprep.mubr.f32.mxu0 %v10616_v25 }
 0x40a   : > { %v3459_v18 = vmax.f32 %v3379_v61, 0.0  ;;  %v3086_v4 = vadd.f32 %v9365_v3, %v2220_v49  ;;  %v2222_v38 = vpop.f32.mrb[213].mxu1  ;;  %2484 = vmatmul.mubr.f32.gmra.mrb[62].mxu1 %v1621_v45 }
 0x40c   : > { %v3380_v56 = vmax.f32 %v10623_v2, %v3086_v4  ;;  %5773 = vmatmul.mubr.msk.f32.gmra.mrb[18].mxu0 %vm3533_vm4, %v3459_v18  ;;  %v10627_v18 = vld [vmem:[#allocation11_spill] sm:$0xff] }
 0x40d   : > { %v2225_v17 = vpop.f32.mrb[214].mxu1  ;;  %3977 = vmatprep.mubr.f32.mxu0 %v10616_v25  ;;  %v10628_v2 = vld [vmem:[#allocation63_spill] sm:$0xff] }
 0x40e   : > { %v3460_v5 = vmax.f32 %v3380_v56, 0.0  ;;  %v3091_v33 = vadd.f32 %v9360_v40, %v2225_v17  ;;  %v2227_v15 = vpop.f32.mrb[215].mxu1 }
 0x410   : > { %v3381_v12 = vmax.f32 %v10624_v53, %v3091_v33  ;;  %5774 = vmatmul.mubr.msk.f32.gmra.mrb[20].mxu0 %vm3533_vm4, %v3460_v5  ;;  %v10629_v5 = vld [vmem:[#allocation14_spill] sm:$0xff] }
 0x411   : > { %v2230_v48 = vpop.f32.mrb[216].mxu1  ;;  %3983 = vmatprep.mubr.f32.mxu0 %v10616_v25 }
 0x412   : > { %v3461_v3 = vmax.f32 %v3381_v12, 0.0  ;;  %v3096_v32 = vadd.f32 %v9387_v63, %v2230_v48  ;;  %v2232_v39 = vpop.f32.mrb[217].mxu1  ;;  %v10630_v12 = vld [vmem:[#allocation62_spill] sm:$0xff] }
 0x414   : > { %v3382_v62 = vmax.f32 %v10625_v55, %v3096_v32  ;;  %5775 = vmatmul.mubr.msk.f32.gmra.mrb[22].mxu0 %vm3533_vm4, %v3461_v3  ;;  %v10631_v32 = vld [vmem:[#allocation13_spill] sm:$0xff] }
 0x415   : > { %v2235_v45 = vpop.f32.mrb[218].mxu1  ;;  %3989 = vmatprep.mubr.f32.mxu0 %v10616_v25 }
 0x416   : > { %v3462_v40 = vmax.f32 %v3382_v62, 0.0  ;;  %v3101_v61 = vadd.f32 %v10626_v51, %v2235_v45  ;;  %v2237_v49 = vpop.f32.mrb[219].mxu1  ;;  %v10632_v45 = vld [vmem:[#allocation66_spill] sm:$0xff] }
 0x417   : > { %v5816_v49 = vld [vmem:[%s10528_s4 + $0x1c0] sm:$0xff] }
 0x418   : > { %v3383_v4 = vmax.f32 %v10627_v18, %v3101_v61  ;;  %5776 = vmatmul.mubr.msk.f32.gmra.mrb[24].mxu0 %vm3533_vm4, %v3462_v40  ;;  %v5814_v61 = vld [vmem:[%s10528_s4 + $0x1b0] sm:$0xff]  ;;  %v5819_v18 = vld [vmem:[%s10528_s4 + $0x1d8] sm:$0xff] }
 0x419   : > { %v2240_v38 = vpop.f32.mrb[220].mxu1  ;;  %3995 = vmatprep.mubr.f32.mxu0 %v10616_v25 }
 0x41a   : > { %v3463_v63 = vmax.f32 %v3383_v4, 0.0  ;;  %v3106_v56 = vadd.f32 %v10628_v2, %v2240_v38  ;;  %v2242_v17 = vpop.f32.mrb[221].mxu1  ;;  %v5821_v4 = vld [vmem:[%s10528_s4 + $0x1e8] sm:$0xff] }
 0x41b   : > { %v10633_v38 = vld [vmem:[#allocation15_spill] sm:$0xff] }
 0x41c   : > { %v3384_v33 = vmax.f32 %v10629_v5, %v3106_v56  ;;  %5777 = vmatmul.mubr.msk.f32.gmra.mrb[26].mxu0 %vm3533_vm4, %v3463_v63  ;;  %v6822_v56 = vpack.c.bf16 %v5816_v49, %v5814_v61  ;;  %v10634_v5 = vld [vmem:[#allocation65_spill] sm:$0xff] }
 0x41d   : > { %v2245_v15 = vpop.f32.mrb[222].mxu1  ;;  %4001 = vmatprep.mubr.f32.mxu0 %v10616_v25 }
 0x41e   : > { %v3464_v53 = vmax.f32 %v3384_v33, 0.0  ;;  %v3111_v48 = vadd.f32 %v10630_v12, %v2245_v15  ;;  %v2247_v3 = vpop.f32.mrb[223].mxu1  ;;  %v5818_v12 = vld [vmem:[%s10528_s4 + $0x1d0] sm:$0xff] }
 0x41f   : > { %v5823_v3 = vld [vmem:[%s10528_s4 + $0x1f8] sm:$0xff] }
 0x420   : > { %v3385_v39 = vmax.f32 %v10631_v32, %v3111_v48  ;;  %5778 = vmatmul.mubr.msk.f32.gmra.mrb[28].mxu0 %vm3533_vm4, %v3464_v53  ;;  %v6824_v53 = vpack.c.bf16 %v5821_v4, %v5819_v18  ;;  %v5820_v48 = vld [vmem:[%s10528_s4 + $0x1e0] sm:$0xff]  ;;  %v5825_v32 = vld [vmem:[%s10528_s4 + $0x208] sm:$0xff]  ;;  %v5822_v4 = vld [vmem:[%s10528_s4 + $0x1f0] sm:$0xff] }
 0x421   : > { %v2250_v55 = vpop.f32.mrb[224].mxu1  ;;  %4007 = vmatprep.mubr.f32.mxu0 %v10616_v25  ;;  %v6828_v18 = vpack.c.bf16 %v5825_v32, %v5823_v3  ;;  %v5826_v32 = vld [vmem:[%s10528_s4 + $0x210] sm:$0xff] }
 0x422   : > { %v3465_v62 = vmax.f32 %v3385_v39, 0.0  ;;  %v3116_v40 = vadd.f32 %v10632_v45, %v2250_v55  ;;  %v2252_v51 = vpop.f32.mrb[225].mxu1  ;;  %v10635_v39 = vld [vmem:[#allocation16_spill] sm:$0xff]  ;;  %v6826_v45 = vpack.c.bf16 %v5820_v48, %v5818_v12 }
 0x423   : > { %v10636_v51 = vld [vmem:[#allocation69_spill] sm:$0xff] }
 0x424   : > { %v3386_v63 = vmax.f32 %v10633_v38, %v3116_v40  ;;  %5779 = vmatmul.mubr.msk.f32.gmra.mrb[30].mxu0 %vm3533_vm4, %v3465_v62  ;;  %v5824_v38 = vld [vmem:[%s10528_s4 + $0x200] sm:$0xff] }
 0x425   : > { %v2255_v2 = vpop.f32.mrb[226].mxu1  ;;  %4177 = vmatprep.mubr.f32.mxu0 %v10616_v25 }
 0x426   : > { %v3466_v17 = vmax.f32 %v3386_v63, 0.0  ;;  %v3121_v33 = vadd.f32 %v10634_v5, %v2255_v2  ;;  %v2257_v15 = vpop.f32.mrb[227].mxu1  ;;  %v5827_v63 = vld [vmem:[%s10528_s4 + $0x218] sm:$0xff]  ;;  %v5829_v2 = vld [vmem:[%s10528_s4 + $0x228] sm:$0xff] }
 0x427   : > { %v6832_v3 = vpack.c.bf16 %v5829_v2, %v5827_v63  ;;  %v5851_v63 = vld [vmem:[%s10528_s4 + $0x258] sm:$0xff]  ;;  %v10641_v2 = vld [vmem:[#allocation19_spill] sm:$0xff] }
 0x428   : > { %v3387_v55 = vmax.f32 %v10635_v39, %v3121_v33  ;;  %5798 = vmatmul.mubr.msk.f32.vlgmr.msra.gmra.mrb[0].mxu0 %vm3533_vm4, %v3466_v17  ;;  %v6830_v33 = vpack.c.bf16 %v5824_v38, %v5822_v4  ;;  %v5828_v39 = vld [vmem:[%s10528_s4 + $0x220] sm:$0xff]  ;;  %v5831_v4 = vld [vmem:[%s10528_s4 + $0x238] sm:$0xff]  ;;  %v5849_v38 = vld [vmem:[%s10528_s4 + $0x248] sm:$0xff] }
 0x429   : > { %v2260_v62 = vpop.f32.mrb[228].mxu1  ;;  %4183 = vmatprep.mubr.f32.mxu0 %v10616_v25  ;;  %6823 = vmatpush1.bf16.msra.mxu0 %v6822_v56  ;;  %v10637_v56 = vld [vmem:[#allocation17_spill] sm:$0xff] }
 0x42a   : > { %v3467_v40 = vmax.f32 %v3387_v55, 0.0  ;;  %v3126_v61 = vadd.f32 %v10636_v51, %v2260_v62  ;;  %v2262_v49 = vpop.f32.mrb[229].mxu1  ;;  %6825 = vmatprep.subr.bf16.mxu0 %v6824_v53  ;;  %v10638_v53 = vld [vmem:[#allocation68_spill] sm:$0xff]  ;;  %v10639_v55 = vld [vmem:[#allocation18_spill] sm:$0xff] }
 0x42c   : > { %v3388_v17 = vmax.f32 %v10637_v56, %v3126_v61  ;;  %5799 = vmatmul.mubr.msk.f32.gmra.mrb[2].mxu0 %vm3533_vm4, %v3467_v40  ;;  %v6834_v40 = vpack.c.bf16 %v5828_v39, %v5826_v32  ;;  %v10640_v61 = vld [vmem:[#allocation71_spill] sm:$0xff] }
 0x42d   : > { %v2265_v5 = vpop.f32.mrb[230].mxu1  ;;  %4189 = vmatprep.mubr.f32.mxu0 %v10616_v25  ;;  %6827 = vmatpush1.bf16.msra.mxu0 %v6826_v45 }
 0x42e   : > { %v3468_v15 = vmax.f32 %v3388_v17, 0.0  ;;  %v3131_v12 = vadd.f32 %v10638_v53, %v2265_v5  ;;  %v2267_v48 = vpop.f32.mrb[231].mxu1  ;;  %6829 = vmatprep.subr.bf16.mxu0 %v6828_v18 }
 0x42f   : > { %v6836_v48 = vpack.c.bf16 %v5851_v63, %v5849_v38 }
 0x430   : > { %v3389_v62 = vmax.f32 %v10639_v55, %v3131_v12  ;;  %5800 = vmatmul.mubr.msk.f32.gmra.mrb[4].mxu0 %vm3533_vm4, %v3468_v15  ;;  %v5830_v12 = vld [vmem:[%s10528_s4 + $0x230] sm:$0xff] }
 0x431   : > { %v2270_v45 = vpop.f32.mrb[232].mxu1  ;;  %4195 = vmatprep.mubr.f32.mxu0 %v10616_v25  ;;  %6831 = vmatpush1.bf16.msra.mxu0 %v6830_v33  ;;  %v10642_v33 = vld [vmem:[#allocation70_spill] sm:$0xff] }
 0x432   : > { %v3469_v51 = vmax.f32 %v3389_v62, 0.0  ;;  %v3136_v49 = vadd.f32 %v10640_v61, %v2270_v45  ;;  %v2272_v18 = vpop.f32.mrb[233].mxu1  ;;  %6833 = vmatprep.subr.bf16.mxu0 %v6832_v3  ;;  %v10643_v3 = vld [vmem:[#allocation20_spill] sm:$0xff]  ;;  %v10644_v62 = vld [vmem:[#allocation73_spill] sm:$0xff] }
 0x434   : > { %v3390_v56 = vmax.f32 %v10641_v2, %v3136_v49  ;;  %5801 = vmatmul.mubr.msk.f32.gmra.mrb[6].mxu0 %vm3533_vm4, %v3469_v51  ;;  %v10645_v51 = vld [vmem:[#allocation21_spill] sm:$0xff]  ;;  %v10647_v2 = vld [vmem:[#allocation22_spill] sm:$0xff] }
 0x435   : > { %v2275_v17 = vpop.f32.mrb[234].mxu1  ;;  %4201 = vmatprep.mubr.f32.mxu0 %v10616_v25  ;;  %6835 = vmatpush1.bf16.msra.mxu0 %v6834_v40 }
 0x436   : > { %v3470_v5 = vmax.f32 %v3390_v56, 0.0  ;;  %v3141_v15 = vadd.f32 %v10642_v33, %v2275_v17  ;;  %v2277_v53 = vpop.f32.mrb[235].mxu1  ;;  %4389 = vmatprep.subr.mxu0 %v5831_v4  ;;  %v10646_v4 = vld [vmem:[#allocation72_spill] sm:$0xff] }
 0x437   : > { %v10648_v53 = vld [vmem:[#allocation23_spill] sm:$0xff] }
 0x438   : > { %v3391_v32 = vmax.f32 %v10643_v3, %v3141_v15  ;;  %5802 = vmatmul.mubr.msk.f32.gmra.mrb[8].mxu0 %vm3533_vm4, %v3470_v5 }
 0x439   : > { %v2280_v39 = vpop.f32.mrb[236].mxu1  ;;  %4207 = vmatprep.mubr.f32.mxu0 %v10616_v25  ;;  %4390 = vmatpush1.msra.mxu0 %v5830_v12 }
 0x43a   : > { %v3471_v55 = vmax.f32 %v3391_v32, 0.0  ;;  %v3146_v45 = vadd.f32 %v10644_v62, %v2280_v39  ;;  %v2282_v40 = vpop.f32.mrb[237].mxu1  ;;  %6837 = vmatprep.subr.bf16.mxu0 %v6836_v48 }
 0x43c   : > { %v3392_v61 = vmax.f32 %v10645_v51, %v3146_v45  ;;  %5803 = vmatmul.mubr.msk.f32.gmra.mrb[10].mxu0 %vm3533_vm4, %v3471_v55  ;;  %v10649_v55 = vld [vmem:[#allocation24_spill] sm:$0xff] }
 0x43d   : > { %v2285_v49 = vpop.f32.mrb[238].mxu1  ;;  %4213 = vmatprep.mubr.f32.mxu0 %v10616_v25 }
 0x43e   : > { %v3472_v18 = vmax.f32 %v3392_v61, 0.0  ;;  %v3151_v38 = vadd.f32 %v10646_v4, %v2285_v49  ;;  %v2287_v63 = vpop.f32.mrb[239].mxu1  ;;  %v10650_v61 = vld [vmem:[#allocation25_spill] sm:$0xff] }
 0x43f   : > { %v10651_v63 = vld [vmem:[#allocation26_spill] sm:$0xff] }
 0x440   : > { %v3393_v56 = vmax.f32 %v10647_v2, %v3151_v38  ;;  %5804 = vmatmul.mubr.msk.f32.gmra.mrb[12].mxu0 %vm3533_vm4, %v3472_v18 }
 0x441   : > { %v2290_v17 = vpop.f32.mrb[240].mxu1  ;;  %4219 = vmatprep.mubr.f32.mxu0 %v10616_v25 }
 0x442   : > { %v3473_v5 = vmax.f32 %v3393_v56, 0.0  ;;  %v3156_v33 = vadd.f32 %v9505_v58, %v2290_v17  ;;  %v2292_v15 = vpop.f32.mrb[241].mxu1 }
 0x444   : > { %v3394_v12 = vmax.f32 %v10648_v53, %v3156_v33  ;;  %5805 = vmatmul.mubr.msk.f32.gmra.mrb[14].mxu0 %vm3533_vm4, %v3473_v5  ;;  %v10652_v33 = vld [vmem:[#allocation27_spill] sm:$0xff] }
 0x445   : > { %v2295_v48 = vpop.f32.mrb[242].mxu1  ;;  %4225 = vmatprep.mubr.f32.mxu0 %v10616_v25 }
 0x446   : > { %v3474_v3 = vmax.f32 %v3394_v12, 0.0  ;;  %v3161_v32 = vadd.f32 %v9494_v42, %v2295_v48  ;;  %v2297_v39 = vpop.f32.mrb[243].mxu1 }
 0x448   : > { %v3395_v62 = vmax.f32 %v10649_v55, %v3161_v32  ;;  %5806 = vmatmul.mubr.msk.f32.gmra.mrb[16].mxu0 %vm3533_vm4, %v3474_v3  ;;  %v10653_v3 = vld [vmem:[#allocation28_spill] sm:$0xff] }
 0x449   : > { %v2300_v45 = vpop.f32.mrb[244].mxu1  ;;  %4231 = vmatprep.mubr.f32.mxu0 %v10616_v25 }
 0x44a   : > { %v3475_v58 = vmax.f32 %v3395_v62, 0.0  ;;  %v3166_v40 = vadd.f32 %v9525_v26, %v2300_v45  ;;  %v2302_v51 = vpop.f32.mrb[245].mxu1  ;;  %v10654_v45 = vld [vmem:[#allocation29_spill] sm:$0xff] }
 0x44c   : > { %v3396_v49 = vmax.f32 %v10650_v61, %v3166_v40  ;;  %5807 = vmatmul.mubr.msk.f32.gmra.mrb[18].mxu0 %vm3533_vm4, %v3475_v58 }
 0x44d   : > { %v2305_v18 = vpop.f32.mrb[246].mxu1  ;;  %4237 = vmatprep.mubr.f32.mxu0 %v10616_v25 }
 0x44e   : > { %v3476_v42 = vmax.f32 %v3396_v49, 0.0  ;;  %v3171_v4 = vadd.f32 %v9520_v6, %v2305_v18  ;;  %v2307_v38 = vpop.f32.mrb[247].mxu1  ;;  %v10655_v49 = vld [vmem:[#allocation30_spill] sm:$0xff] }
 0x450   : > { %v3397_v2 = vmax.f32 %v10651_v63, %v3171_v4  ;;  %5808 = vmatmul.mubr.msk.f32.gmra.mrb[20].mxu0 %vm3533_vm4, %v3476_v42  ;;  %v5848_v63 = vld [vmem:[%s10528_s4 + $0x240] sm:$0xff] }
 0x451   : > { %v2310_v56 = vpop.f32.mrb[248].mxu1  ;;  %4243 = vmatprep.mubr.f32.mxu0 %v10616_v25 }
 0x452   : > { %v3477_v26 = vmax.f32 %v3397_v2, 0.0  ;;  %v3176_v17 = vadd.f32 %v9548_v20, %v2310_v56  ;;  %v2312_v5 = vpop.f32.mrb[249].mxu1  ;;  %v5853_v2 = vld [vmem:[%s10528_s4 + $0x268] sm:$0xff]  ;;  %v5855_v56 = vld [vmem:[%s10528_s4 + $0x278] sm:$0xff] }
 0x454   : > { %v3398_v15 = vmax.f32 %v10652_v33, %v3176_v17  ;;  %5809 = vmatmul.mubr.msk.f32.gmra.mrb[22].mxu0 %vm3533_vm4, %v3477_v26  ;;  %v10656_v26 = vld [vmem:[#allocation31_spill] sm:$0xff] }
 0x455   : > { %v2315_v53 = vpop.f32.mrb[250].mxu1  ;;  %4249 = vmatprep.mubr.f32.mxu0 %v10616_v25 }
 0x456   : > { %v3478_v6 = vmax.f32 %v3398_v15, 0.0  ;;  %v3181_v12 = vadd.f32 %v9537_v47, %v2315_v53  ;;  %v2317_v48 = vpop.f32.mrb[251].mxu1 }
 0x457   : > { %v5854_v48 = vld [vmem:[%s10528_s4 + $0x270] sm:$0xff] }
 0x458   : > { %v3399_v32 = vmax.f32 %v10653_v3, %v3181_v12  ;;  %5810 = vmatmul.mubr.msk.f32.gmra.mrb[24].mxu0 %vm3533_vm4, %v3478_v6  ;;  %v6840_v6 = vpack.c.bf16 %v5855_v56, %v5853_v2  ;;  %v5852_v12 = vld [vmem:[%s10528_s4 + $0x260] sm:$0xff]  ;;  %v5857_v3 = vld [vmem:[%s10528_s4 + $0x288] sm:$0xff]  ;;  %v5862_v56 = vld [vmem:[%s10528_s4 + $0x2b0] sm:$0xff] }
 0x459   : > { %v2320_v39 = vpop.f32.mrb[252].mxu1  ;;  %4255 = vmatprep.mubr.f32.mxu0 %v10616_v25  ;;  %v5860_v2 = vld [vmem:[%s10528_s4 + $0x2a0] sm:$0xff] }
 0x45a   : > { %v3479_v20 = vmax.f32 %v3399_v32, 0.0  ;;  %v3186_v55 = vadd.f32 %v9565_v31, %v2320_v39  ;;  %v2322_v62 = vpop.f32.mrb[253].mxu1  ;;  %v5859_v32 = vld [vmem:[%s10528_s4 + $0x298] sm:$0xff]  ;;  %v10657_v39 = vld [vmem:[#allocation32_spill] sm:$0xff] }
 0x45c   : > { %v3400_v58 = vmax.f32 %v10654_v45, %v3186_v55  ;;  %5811 = vmatmul.mubr.msk.f32.gmra.mrb[26].mxu0 %vm3533_vm4, %v3479_v20  ;;  %v6842_v55 = vpack.c.bf16 %v5854_v48, %v5852_v12 }
 0x45d   : > { %v2325_v40 = vpop.f32.mrb[254].mxu1  ;;  %4261 = vmatprep.mubr.f32.mxu0 %v10616_v25 }
 0x45e   : > { %v3480_v47 = vmax.f32 %v3400_v58, 0.0  ;;  %v3191_v51 = vadd.f32 %v9560_v43, %v2325_v40  ;;  %v2327_v61 = vpop.f32.mrb[255].mxu1  ;;  %v5850_v43 = vld [vmem:[%s10528_s4 + $0x250] sm:$0xff]  ;;  %v6844_v40 = vpack.c.bf16 %v5859_v32, %v5857_v3 }
 0x45f   : > { %v6838_v5 = vpack.c.bf16 %v5850_v43, %v5848_v63  ;;  %v5861_v61 = vld [vmem:[%s10528_s4 + $0x2a8] sm:$0xff] }
 0x460   : > { %v3401_v18 = vmax.f32 %v10655_v49, %v3191_v51  ;;  %5812 = vmatmul.mubr.msk.f32.gmra.mrb[28].mxu0 %vm3533_vm4, %v3480_v47  ;;  %v5856_v47 = vld [vmem:[%s10528_s4 + $0x280] sm:$0xff]  ;;  %v5858_v51 = vld [vmem:[%s10528_s4 + $0x290] sm:$0xff]  ;;  %v5863_v49 = vld [vmem:[%s10528_s4 + $0x2b8] sm:$0xff] }
 0x461   : > { %v2330_v42 = vpop.f32.mrb[0].mxu1  ;;  %4267 = vmatprep.mubr.f32.mxu0 %v10616_v25  ;;  %v6848_v43 = vpack.c.bf16 %v5863_v49, %v5861_v61 }
 0x462   : > { %v3481_v31 = vmax.f32 %v3401_v18, 0.0  ;;  %v3196_v4 = vadd.f32 %v9579_v24, %v2330_v42  ;;  %v2332_v38 = vpop.f32.mrb[1].mxu1 }
 0x464   : > { %v3402_v17 = vmax.f32 %v10656_v26, %v3196_v4  ;;  %5813 = vmatmul.mubr.msk.f32.gmra.mrb[30].mxu0 %vm3533_vm4, %v3481_v31  ;;  %v6846_v31 = vpack.c.bf16 %v5858_v51, %v5856_v47  ;;  %v10659_v26 = vld [vmem:[#allocation34_spill] sm:$0xff] }
 0x465   : > { %v2335_v24 = vpop.f32.mrb[2].mxu1  ;;  %4437 = vmatprep.mubr.f32.mxu0 %v10616_v25 }
 0x466   : > { %v3482_v33 = vmax.f32 %v3402_v17, 0.0  ;;  %v3201_v15 = vadd.f32 %v9574_v29, %v2335_v24  ;;  %v2337_v53 = vpop.f32.mrb[3].mxu1 }
 0x467   : > { %v5865_v53 = vld [vmem:[%s10528_s4 + $0x2c8] sm:$0xff] }
 0x468   : > { %v3403_v29 = vmax.f32 %v10657_v39, %v3201_v15  ;;  %5832 = vmatmul.mubr.msk.f32.vlgmr.msra.gmra.mrb[0].mxu0 %vm3533_vm4, %v3482_v33 }
 0x469   : > { %v2340_v20 = vpop.f32.mrb[4].mxu1  ;;  %4443 = vmatprep.mubr.f32.mxu0 %v10616_v25  ;;  %6839 = vmatpush1.bf16.msra.mxu0 %v6838_v5 }
 0x46a   : > { %v3483_v62 = vmax.f32 %v3403_v29, 0.0  ;;  %v3206_v45 = vadd.f32 %v9593_v1, %v2340_v20  ;;  %v2342_v58 = vpop.f32.mrb[5].mxu1  ;;  %6841 = vmatprep.subr.bf16.mxu0 %v6840_v6  ;;  %v10658_v1 = vld [vmem:[#allocation33_spill] sm:$0xff]  ;;  %v10660_v6 = vld [vmem:[#allocation35_spill] sm:$0xff]  ;;  %v10661_v29 = vld [vmem:[#allocation36_spill] sm:$0xff] }
 0x46c   : > { %v3404_v18 = vmax.f32 %v10658_v1, %v3206_v45  ;;  %5833 = vmatmul.mubr.msk.f32.gmra.mrb[2].mxu0 %vm3533_vm4, %v3483_v62  ;;  %v10663_v1 = vld [vmem:[#allocation38_spill] sm:$0xff] }
 0x46d   : > { %v2345_v42 = vpop.f32.mrb[6].mxu1  ;;  %4449 = vmatprep.mubr.f32.mxu0 %v10616_v25  ;;  %6843 = vmatpush1.bf16.msra.mxu0 %v6842_v55 }
 0x46e   : > { %v3484_v4 = vmax.f32 %v3404_v18, 0.0  ;;  %v3211_v38 = vadd.f32 %v9588_v28, %v2345_v42  ;;  %v2347_v63 = vpop.f32.mrb[7].mxu1  ;;  %6845 = vmatprep.subr.bf16.mxu0 %v6844_v40  ;;  %v6850_v28 = vpack.c.bf16 %v5862_v56, %v5860_v2  ;;  %v10662_v40 = vld [vmem:[#allocation37_spill] sm:$0xff] }
 0x470   : > { %v3405_v17 = vmax.f32 %v10659_v26, %v3211_v38  ;;  %5834 = vmatmul.mubr.msk.f32.gmra.mrb[4].mxu0 %vm3533_vm4, %v3484_v4  ;;  %v10664_v38 = vld [vmem:[#allocation39_spill] sm:$0xff]  ;;  %v10665_v26 = vld [vmem:[#allocation40_spill] sm:$0xff] }
 0x471   : > { %v2350_v24 = vpop.f32.mrb[8].mxu1  ;;  %4455 = vmatprep.mubr.f32.mxu0 %v10616_v25  ;;  %6847 = vmatpush1.bf16.msra.mxu0 %v6846_v31 }
 0x472   : > { %v3485_v5 = vmax.f32 %v3405_v17, 0.0  ;;  %v3216_v33 = vadd.f32 %v9607_v52, %v2350_v24  ;;  %v2352_v15 = vpop.f32.mrb[9].mxu1  ;;  %6849 = vmatprep.subr.bf16.mxu0 %v6848_v43  ;;  %v5864_v52 = vld [vmem:[%s10528_s4 + $0x2c0] sm:$0xff] }
 0x474   : > { %v3406_v12 = vmax.f32 %v10660_v6, %v3216_v33  ;;  %5835 = vmatmul.mubr.msk.f32.gmra.mrb[6].mxu0 %vm3533_vm4, %v3485_v5  ;;  %v10666_v33 = vld [vmem:[#allocation41_spill] sm:$0xff] }
 0x475   : > { %v2355_v48 = vpop.f32.mrb[10].mxu1  ;;  %4461 = vmatprep.mubr.f32.mxu0 %v10616_v25  ;;  %6851 = vmatpush1.bf16.msra.mxu0 %v6850_v28 }
 0x476   : > { %v3486_v3 = vmax.f32 %v3406_v12, 0.0  ;;  %v3221_v32 = vadd.f32 %v9602_v34, %v2355_v48  ;;  %v2357_v39 = vpop.f32.mrb[11].mxu1  ;;  %4649 = vmatprep.subr.mxu0 %v5865_v53  ;;  %v10667_v48 = vld [vmem:[#allocation42_spill] sm:$0xff] }
 0x478   : > { %v3407_v20 = vmax.f32 %v10661_v29, %v3221_v32  ;;  %5836 = vmatmul.mubr.msk.f32.gmra.mrb[8].mxu0 %vm3533_vm4, %v3486_v3  ;;  %v10668_v29 = vld [vmem:[#allocation43_spill] sm:$0xff] }
 0x479   : > { %v2360_v55 = vpop.f32.mrb[12].mxu1  ;;  %4467 = vmatprep.mubr.f32.mxu0 %v10616_v25  ;;  %4650 = vmatpush1.msra.mxu0 %v5864_v52 }
 0x47a   : > { %v3487_v62 = vmax.f32 %v3407_v20, 0.0  ;;  %v3226_v45 = vadd.f32 %v9621_v54, %v2360_v55  ;;  %v2362_v58 = vpop.f32.mrb[13].mxu1 }
 0x47b   : > { %v10669_v58 = vld [vmem:[#allocation44_spill] sm:$0xff] }
 0x47c   : > { %v3408_v34 = vmax.f32 %v10662_v40, %v3226_v45  ;;  %5837 = vmatmul.mubr.msk.f32.gmra.mrb[10].mxu0 %vm3533_vm4, %v3487_v62 }
 0x47d   : > { %v2365_v47 = vpop.f32.mrb[14].mxu1  ;;  %4473 = vmatprep.mubr.f32.mxu0 %v10616_v25 }
 0x47e   : > { %v3488_v51 = vmax.f32 %v3408_v34, 0.0  ;;  %v3231_v61 = vadd.f32 %v9616_v27, %v2365_v47  ;;  %v2367_v49 = vpop.f32.mrb[15].mxu1 }
 0x480   : > { %v3409_v18 = vmax.f32 %v10663_v1, %v3231_v61  ;;  %5838 = vmatmul.mubr.msk.f32.gmra.mrb[12].mxu0 %vm3533_vm4, %v3488_v51  ;;  %v10670_v61 = vld [vmem:[#allocation45_spill] sm:$0xff] }
 0x481   : > { %v2370_v42 = vpop.f32.mrb[16].mxu1  ;;  %4479 = vmatprep.mubr.f32.mxu0 %v10616_v25 }
 0x482   : > { %v3489_v54 = vmax.f32 %v3409_v18, 0.0  ;;  %v3236_v31 = vadd.f32 %v9635_v19, %v2370_v42  ;;  %v2372_v4 = vpop.f32.mrb[17].mxu1 }
 0x484   : > { %v3410_v63 = vmax.f32 %v10664_v38, %v3236_v31  ;;  %5839 = vmatmul.mubr.msk.f32.gmra.mrb[14].mxu0 %vm3533_vm4, %v3489_v54  ;;  %v10671_v54 = vld [vmem:[#allocation46_spill] sm:$0xff] }
 0x485   : > { %v2375_v43 = vpop.f32.mrb[18].mxu1  ;;  %4485 = vmatprep.mubr.f32.mxu0 %v10616_v25 }
 0x486   : > { %v3490_v27 = vmax.f32 %v3410_v63, 0.0  ;;  %v3241_v2 = vadd.f32 %v9630_v13, %v2375_v43  ;;  %v2377_v56 = vpop.f32.mrb[19].mxu1  ;;  %v10672_v43 = vld [vmem:[#allocation47_spill] sm:$0xff] }
 0x488   : > { %v3411_v17 = vmax.f32 %v10665_v26, %v3241_v2  ;;  %5840 = vmatmul.mubr.msk.f32.gmra.mrb[16].mxu0 %vm3533_vm4, %v3490_v27 }
 0x489   : > { %v2380_v24 = vpop.f32.mrb[20].mxu1  ;;  %4491 = vmatprep.mubr.f32.mxu0 %v10616_v25 }
 0x48a   : > { %v3491_v19 = vmax.f32 %v3411_v17, 0.0  ;;  %v3246_v28 = vadd.f32 %v9649_v14, %v2380_v24  ;;  %v2382_v5 = vpop.f32.mrb[21].mxu1  ;;  %v10673_v17 = vld [vmem:[#allocation48_spill] sm:$0xff] }
 0x48c   : > { %v3412_v15 = vmax.f32 %v10666_v33, %v3246_v28  ;;  %5841 = vmatmul.mubr.msk.f32.gmra.mrb[18].mxu0 %vm3533_vm4, %v3491_v19  ;;  %v10674_v33 = vld [vmem:[#allocation49_spill] sm:$0xff] }
 0x48d   : > { %v2385_v53 = vpop.f32.mrb[22].mxu1  ;;  %4497 = vmatprep.mubr.f32.mxu0 %v10616_v25 }
 0x48e   : > { %v3492_v13 = vmax.f32 %v3412_v15, 0.0  ;;  %v3251_v6 = vadd.f32 %v9644_v50, %v2385_v53  ;;  %v2387_v12 = vpop.f32.mrb[23].mxu1 }
 0x48f   : > { %v10675_v12 = vld [vmem:[#allocation50_spill] sm:$0xff] }
 0x490   : > { %v3413_v3 = vmax.f32 %v10667_v48, %v3251_v6  ;;  %5842 = vmatmul.mubr.msk.f32.gmra.mrb[20].mxu0 %vm3533_vm4, %v3492_v13 }
 0x491   : > { %v2390_v32 = vpop.f32.mrb[24].mxu1  ;;  %4503 = vmatprep.mubr.f32.mxu0 %v10616_v25 }
 0x492   : > { %v3493_v14 = vmax.f32 %v3413_v3, 0.0  ;;  %v3256_v39 = vadd.f32 %v9663_v0, %v2390_v32  ;;  %v2392_v52 = vpop.f32.mrb[25].mxu1 }
 0x494   : > { %v3414_v20 = vmax.f32 %v10668_v29, %v3256_v39  ;;  %5843 = vmatmul.mubr.msk.f32.gmra.mrb[22].mxu0 %vm3533_vm4, %v3493_v14  ;;  %v10676_v39 = vld [vmem:[#allocation51_spill] sm:$0xff] }
 0x495   : > { %v2395_v55 = vpop.f32.mrb[26].mxu1  ;;  %4509 = vmatprep.mubr.f32.mxu0 %v10616_v25 }
 0x496   : > { %v3494_v50 = vmax.f32 %v3414_v20, 0.0  ;;  %v3261_v62 = vadd.f32 %v9658_v59, %v2395_v55  ;;  %v2397_v45 = vpop.f32.mrb[27].mxu1 }
 0x498   : > { %v3415_v40 = vmax.f32 %v10669_v58, %v3261_v62  ;;  %5844 = vmatmul.mubr.msk.f32.gmra.mrb[24].mxu0 %vm3533_vm4, %v3494_v50  ;;  %v10677_v50 = vld [vmem:[#allocation52_spill] sm:$0xff] }
 0x499   : > { %v2400_v34 = vpop.f32.mrb[28].mxu1  ;;  %4515 = vmatprep.mubr.f32.mxu0 %v10616_v25 }
 0x49a   : > { %v3495_v0 = vmax.f32 %v3415_v40, 0.0  ;;  %v3266_v47 = vadd.f32 %v9677_v11, %v2400_v34  ;;  %v2402_v51 = vpop.f32.mrb[29].mxu1  ;;  %v10678_v34 = vld [vmem:[#allocation53_spill] sm:$0xff] }
 0x49c   : > { %v3416_v49 = vmax.f32 %v10670_v61, %v3266_v47  ;;  %5845 = vmatmul.mubr.msk.f32.gmra.mrb[26].mxu0 %vm3533_vm4, %v3495_v0 }
 0x49d   : > { %v2405_v1 = vpop.f32.mrb[30].mxu1  ;;  %4521 = vmatprep.mubr.f32.mxu0 %v10616_v25 }
 0x49e   : > { %v3496_v59 = vmax.f32 %v3416_v49, 0.0  ;;  %v3271_v18 = vadd.f32 %v9672_v41, %v2405_v1  ;;  %v2407_v42 = vpop.f32.mrb[31].mxu1  ;;  %v10679_v49 = vld [vmem:[#allocation54_spill] sm:$0xff] }
 0x4a0   : > { %v3417_v31 = vmax.f32 %v10671_v54, %v3271_v18  ;;  %5846 = vmatmul.mubr.msk.f32.gmra.mrb[28].mxu0 %vm3533_vm4, %v3496_v59  ;;  %v10680_v54 = vld [vmem:[#allocation55_spill] sm:$0xff] }
 0x4a1   : > { %v2410_v4 = vpop.f32.mrb[32].mxu1  ;;  %4527 = vmatprep.mubr.f32.mxu0 %v10616_v25 }
 0x4a2   : > { %v3497_v11 = vmax.f32 %v3417_v31, 0.0  ;;  %v3276_v38 = vadd.f32 %v9691_v9, %v2410_v4  ;;  %v2412_v63 = vpop.f32.mrb[33].mxu1 }
 0x4a3   : > { %v10681_v63 = vld [vmem:[#allocation56_spill] sm:$0xff] }
 0x4a4   : > { %v3418_v27 = vmax.f32 %v10672_v43, %v3276_v38  ;;  %5847 = vmatmul.mubr.msk.f32.gmra.mrb[30].mxu0 %vm3533_vm4, %v3497_v11 }
 0x4a5   : > { %v2415_v2 = vpop.f32.mrb[34].mxu1  ;;  %4697 = vmatprep.mubr.f32.mxu0 %v10616_v25 }
 0x4a6   : > { %v3498_v41 = vmax.f32 %v3418_v27, 0.0  ;;  %v3281_v56 = vadd.f32 %v9686_v57, %v2415_v2  ;;  %v2417_v26 = vpop.f32.mrb[35].mxu1 }
 0x4a8   : > { %v3419_v24 = vmax.f32 %v10673_v17, %v3281_v56  ;;  %5866 = vmatmul.mubr.msk.f32.vlgmr.msra.gmra.mrb[0].mxu0 %vm3533_vm4, %v3498_v41  ;;  %v10682_v56 = vld [vmem:[#allocation57_spill] sm:$0xff] }
 0x4a9   : > { %v2420_v19 = vpop.f32.mrb[36].mxu1  ;;  %4703 = vmatprep.mubr.f32.mxu0 %v10616_v25 }
 0x4aa   : > { %v3499_v9 = vmax.f32 %v3419_v24, 0.0  ;;  %v3286_v28 = vadd.f32 %v9705_v7, %v2420_v19  ;;  %v2422_v5 = vpop.f32.mrb[37].mxu1 }
 0x4ac   : > { %v3420_v15 = vmax.f32 %v10674_v33, %v3286_v28  ;;  %5867 = vmatmul.mubr.msk.f32.gmra.mrb[2].mxu0 %vm3533_vm4, %v3499_v9  ;;  %v10683_v9 = vld [vmem:[#allocation58_spill] sm:$0xff] }
 0x4ad   : > { %v2425_v53 = vpop.f32.mrb[38].mxu1  ;;  %4709 = vmatprep.mubr.f32.mxu0 %v10616_v25 }
 0x4ae   : > { %v3500_v57 = vmax.f32 %v3420_v15, 0.0  ;;  %v3291_v13 = vadd.f32 %v9700_v23, %v2425_v53  ;;  %v2427_v6 = vpop.f32.mrb[39].mxu1  ;;  %v10684_v53 = vld [vmem:[#allocation60_spill] sm:$0xff] }
 0x4b0   : > { %v3421_v48 = vmax.f32 %v10675_v12, %v3291_v13  ;;  %5868 = vmatmul.mubr.msk.f32.gmra.mrb[4].mxu0 %vm3533_vm4, %v3500_v57 }
 0x4b1   : > { %v2430_v3 = vpop.f32.mrb[40].mxu1  ;;  %4715 = vmatprep.mubr.f32.mxu0 %v10616_v25 }
 0x4b2   : > { %v3501_v7 = vmax.f32 %v3421_v48, 0.0  ;;  %v3296_v32 = vadd.f32 %v9731_v44, %v2430_v3  ;;  %v2432_v14 = vpop.f32.mrb[41].mxu1  ;;  %v10685_v48 = vld [vmem:[#allocation61_spill] sm:$0xff] }
 0x4b4   : > { %v3422_v52 = vmax.f32 %v10676_v39, %v3296_v32  ;;  %5869 = vmatmul.mubr.msk.f32.gmra.mrb[6].mxu0 %vm3533_vm4, %v3501_v7  ;;  %v10686_v39 = vld [vmem:[#allocation64_spill] sm:$0xff] }
 0x4b5   : > { %v2435_v29 = vpop.f32.mrb[42].mxu1  ;;  %4721 = vmatprep.mubr.f32.mxu0 %v10616_v25 }
 0x4b6   : > { %v3502_v23 = vmax.f32 %v3422_v52, 0.0  ;;  %v3301_v20 = vadd.f32 %v9720_v21, %v2435_v29  ;;  %v2437_v55 = vpop.f32.mrb[43].mxu1 }
 0x4b7   : > { %v10687_v55 = vld [vmem:[#allocation67_spill] sm:$0xff] }
 0x4b8   : > { %v3423_v62 = vmax.f32 %v10677_v50, %v3301_v20  ;;  %5870 = vmatmul.mubr.msk.f32.gmra.mrb[8].mxu0 %vm3533_vm4, %v3502_v23 }
 0x4b9   : > { %v2440_v45 = vpop.f32.mrb[44].mxu1  ;;  %4727 = vmatprep.mubr.f32.mxu0 %v10616_v25 }
 0x4ba   : > { %v3503_v44 = vmax.f32 %v3423_v62, 0.0  ;;  %v3306_v58 = vadd.f32 %v9757_v36, %v2440_v45  ;;  %v2442_v40 = vpop.f32.mrb[45].mxu1  ;;  %v3514_v45 = vld [vmem:[%s10529_s5] sm:$0x3] }
 0x4bc   : > { %v3424_v0 = vmax.f32 %v10678_v34, %v3306_v58  ;;  %5871 = vmatmul.mubr.msk.f32.gmra.mrb[10].mxu0 %vm3533_vm4, %v3503_v44 }
 0x4bd   : > { %v2445_v47 = vpop.f32.mrb[46].mxu1  ;;  %4733 = vmatprep.mubr.f32.mxu0 %v10616_v25 }
 0x4be   : > { %v3504_v21 = vmax.f32 %v3424_v0, 0.0  ;;  %v3311_v51 = vadd.f32 %v9746_v8, %v2445_v47  ;;  %v2447_v61 = vpop.f32.mrb[47].mxu1 }
 0x4c0   : > { %v3425_v1 = vmax.f32 %v10679_v49, %v3311_v51  ;;  %5872 = vmatmul.mubr.msk.f32.gmra.mrb[12].mxu0 %vm3533_vm4, %v3504_v21 }
 0x4c1   : > { %v2450_v59 = vpop.f32.mrb[48].mxu1  ;;  %4739 = vmatprep.mubr.f32.mxu0 %v10616_v25 }
 0x4c2   : > { %v3505_v36 = vmax.f32 %v3425_v1, 0.0  ;;  %v3316_v18 = vadd.f32 %v9788_v35, %v2450_v59  ;;  %v2452_v42 = vpop.f32.mrb[49].mxu1 }
 0x4c4   : > { %v3426_v31 = vmax.f32 %v10680_v54, %v3316_v18  ;;  %5873 = vmatmul.mubr.msk.f32.gmra.mrb[14].mxu0 %vm3533_vm4, %v3505_v36 }
 0x4c5   : > { %v2455_v4 = vpop.f32.mrb[50].mxu1  ;;  %4745 = vmatprep.mubr.f32.mxu0 %v10616_v25 }
 0x4c6   : > { %v3506_v8 = vmax.f32 %v3426_v31, 0.0  ;;  %v3321_v11 = vadd.f32 %v9781_v46, %v2455_v4  ;;  %v2457_v38 = vpop.f32.mrb[51].mxu1 }
 0x4c8   : > { %v3427_v43 = vmax.f32 %v10681_v63, %v3321_v11  ;;  %5874 = vmatmul.mubr.msk.f32.gmra.mrb[16].mxu0 %vm3533_vm4, %v3506_v8 }
 0x4c9   : > { %v2460_v27 = vpop.f32.mrb[52].mxu1  ;;  %4751 = vmatprep.mubr.f32.mxu0 %v10616_v25 }
 0x4ca   : > { %v3507_v35 = vmax.f32 %v3427_v43, 0.0  ;;  %v3326_v2 = vadd.f32 %v9808_v22, %v2460_v27  ;;  %v2462_v41 = vpop.f32.mrb[53].mxu1 }
 0x4cc   : > { %v3428_v26 = vmax.f32 %v10682_v56, %v3326_v2  ;;  %5875 = vmatmul.mubr.msk.f32.gmra.mrb[18].mxu0 %vm3533_vm4, %v3507_v35 }
 0x4cd   : > { %v2465_v17 = vpop.f32.mrb[54].mxu1  ;;  %4757 = vmatprep.mubr.f32.mxu0 %v10616_v25 }
 0x4ce   : > { %v3508_v46 = vmax.f32 %v3428_v26, 0.0  ;;  %v3331_v24 = vadd.f32 %v9801_v30, %v2465_v17  ;;  %v2467_v19 = vpop.f32.mrb[55].mxu1 }
 0x4d0   : > { %v3429_v28 = vmax.f32 %v10683_v9, %v3331_v24  ;;  %5876 = vmatmul.mubr.msk.f32.gmra.mrb[20].mxu0 %vm3533_vm4, %v3508_v46 }
 0x4d1   : > { %v2470_v5 = vpop.f32.mrb[56].mxu1  ;;  %4763 = vmatprep.mubr.f32.mxu0 %v10616_v25 }
 0x4d2   : > { %v3509_v22 = vmax.f32 %v3429_v28, 0.0  ;;  %v3336_v33 = vadd.f32 %v9831_v16, %v2470_v5  ;;  %v2472_v15 = vpop.f32.mrb[57].mxu1 }
 0x4d4   : > { %v3430_v57 = vmax.f32 %v10684_v53, %v3336_v33  ;;  %5877 = vmatmul.mubr.msk.f32.gmra.mrb[22].mxu0 %vm3533_vm4, %v3509_v22 }
 0x4d5   : > { %v2475_v13 = vpop.f32.mrb[58].mxu1  ;;  %4769 = vmatprep.mubr.f32.mxu0 %v10616_v25 }
 0x4d6   : > { %v3510_v30 = vmax.f32 %v3430_v57, 0.0  ;;  %v3341_v6 = vadd.f32 %v9824_v60, %v2475_v13  ;;  %v2477_v12 = vpop.f32.mrb[59].mxu1 }
 0x4d8   : > { %v3431_v3 = vmax.f32 %v10685_v48, %v3341_v6  ;;  %5878 = vmatmul.mubr.msk.f32.gmra.mrb[24].mxu0 %vm3533_vm4, %v3510_v30 }
 0x4d9   : > { %v2480_v7 = vpop.f32.mrb[60].mxu1  ;;  %4775 = vmatprep.mubr.f32.mxu0 %v10616_v25 }
 0x4da   : > { %v3511_v16 = vmax.f32 %v3431_v3, 0.0  ;;  %v3346_v32 = vadd.f32 %v9848_v37, %v2480_v7  ;;  %v2482_v14 = vpop.f32.mrb[61].mxu1  ;;  %v4842_v37 = vld [vmem:[%s10530_s6] sm:$0xff] }
 0x4db   : > { %6484 = vmatprep.mubr.f32.mxu1 %v4842_v37 }
 0x4dc   : > { %v3432_v52 = vmax.f32 %v10686_v39, %v3346_v32  ;;  %5879 = vmatmul.mubr.msk.f32.gmra.mrb[26].mxu0 %vm3533_vm4, %v3511_v16 }
 0x4dd   : > { %v2485_v29 = vpop.f32.mrb[62].mxu1  ;;  %4781 = vmatprep.mubr.f32.mxu0 %v10616_v25 }
 0x4de   : > { %v3512_v60 = vmax.f32 %v3432_v52, 0.0  ;;  %v3351_v23 = vadd.f32 %v9841_v10, %v2485_v29  ;;  %v2487_v20 = vpop.f32.mrb[63].mxu1  ;;  %v10688_v10 = vld [vmem:[#allocation2_spill] sm:$0xff] }
 0x4df   : > { %v10689_v44 = vsub.s32 0, %v10688_v10  ;;  %v10690_v40 = vsub.s32 1, %v10688_v10 }
 0x4e0   : > { %v3433_v50 = vmax.f32 %v10687_v55, %v3351_v23  ;;  %5880 = vmatmul.mubr.msk.f32.gmra.mrb[28].mxu0 %vm3533_vm4, %v3512_v60 }
 0x4e1   : > { %4787 = vmatprep.mubr.f32.mxu0 %v10616_v25  ;;  %v10215_v58 = vrot.slane %v3514_v45, %v10689_v44  ;;  %v10219_v34 = vrot.slane %v3514_v45, %v10690_v40 }
 0x4e2   : > { %v3513_v62 = vmax.f32 %v3433_v50, 0.0 }
 0x4e4   : > { %5881 = vmatmul.mubr.msk.f32.gmra.mrb[30].mxu0 %vm3533_vm4, %v3513_v62 }
 0x57b   : > { %v4699_v25 = vpop.f32.mrb[0].mxu0 }
 0x57c   : > { %v7012_v0 = vadd.f32 %v4699_v25, %v10215_v58  ;;  %v4701_v47 = vpop.f32.mrb[1].mxu0 }
 0x57d   : > { %v7013_v21 = vadd.f32 %v4701_v47, %v10219_v34 }
 0x57f   : > { %v4826_v51 = vmax.f32 %v7012_v0, %v7013_v21  ;;  %v4705_v61 = vpop.f32.mrb[2].mxu0 }
 0x580   : > { %v7014_v49 = vadd.f32 %v4705_v61, %v10215_v58  ;;  %v4707_v1 = vpop.f32.mrb[3].mxu0 }
 0x581   : > { %v7015_v59 = vadd.f32 %v4707_v1, %v10219_v34 }
 0x583   : > { %v4827_v36 = vmax.f32 %v7014_v49, %v7015_v59  ;;  %v4711_v18 = vpop.f32.mrb[4].mxu0 }
 0x584   : > { %v7016_v42 = vadd.f32 %v4711_v18, %v10215_v58  ;;  %v4713_v54 = vpop.f32.mrb[5].mxu0 }
 0x585   : > { %v7017_v31 = vadd.f32 %v4713_v54, %v10219_v34  ;;  %v6852_v4 = vpack.c.bf16 %v4827_v36, %v4826_v51 }
 0x587   : > { %v4828_v8 = vmax.f32 %v7016_v42, %v7017_v31  ;;  %v4717_v11 = vpop.f32.mrb[6].mxu0  ;;  %6853 = vmatprep.subr.bf16.mxu1 %v6852_v4 }
 0x588   : > { %v7018_v38 = vadd.f32 %v4717_v11, %v10215_v58  ;;  %v4719_v63 = vpop.f32.mrb[7].mxu0  ;;  %6855 = vmatpush3.bf16.msra.mxu1 %v6852_v4 }
 0x589   : > { %v7019_v43 = vadd.f32 %v4719_v63, %v10219_v34 }
 0x58b   : > { %v4829_v27 = vmax.f32 %v7018_v38, %v7019_v43  ;;  %v4723_v35 = vpop.f32.mrb[8].mxu0 }
 0x58c   : > { %v7020_v2 = vadd.f32 %v4723_v35, %v10215_v58  ;;  %v4725_v41 = vpop.f32.mrb[9].mxu0 }
 0x58d   : > { %v7021_v56 = vadd.f32 %v4725_v41, %v10219_v34  ;;  %v6856_v26 = vpack.c.bf16 %v4829_v27, %v4828_v8 }
 0x58f   : > { %v4830_v17 = vmax.f32 %v7020_v2, %v7021_v56  ;;  %v4729_v46 = vpop.f32.mrb[10].mxu0  ;;  %6857 = vmatprep.subr.bf16.mxu1 %v6856_v26  ;;  %v5019_v56 = vld [vmem:[%s10531_s7] sm:$0xff] }
 0x590   : > { %v7022_v24 = vadd.f32 %v4729_v46, %v10215_v58  ;;  %v4731_v19 = vpop.f32.mrb[11].mxu0  ;;  %6859 = vmatpush3.bf16.msra.mxu1 %v6856_v26  ;;  %v5020_v26 = vld [vmem:[%s10531_s7 + $0x8] sm:$0xff] }
 0x591   : > { %v7023_v9 = vadd.f32 %v4731_v19, %v10219_v34  ;;  %v4845_v19 = vld [vmem:[%s10530_s6 + $0x18] sm:$0xff] }
 0x593   : > { %v4831_v28 = vmax.f32 %v7022_v24, %v7023_v9  ;;  %v4735_v5 = vpop.f32.mrb[12].mxu0  ;;  %v6884_v24 = vpack.c.bf16 %v5020_v26, %v5019_v56  ;;  %v4846_v9 = vld [vmem:[%s10530_s6 + $0x20] sm:$0xff] }
 0x594   : > { %v7024_v22 = vadd.f32 %v4735_v5, %v10215_v58  ;;  %v4737_v33 = vpop.f32.mrb[13].mxu0  ;;  %v4848_v5 = vld [vmem:[%s10530_s6 + $0x30] sm:$0xff] }
 0x595   : > { %v7025_v15 = vadd.f32 %v4737_v33, %v10219_v34  ;;  %v6860_v53 = vpack.c.bf16 %v4831_v28, %v4830_v17  ;;  %v4847_v28 = vld [vmem:[%s10530_s6 + $0x28] sm:$0xff]  ;;  %v4850_v33 = vld [vmem:[%s10530_s6 + $0x40] sm:$0xff] }
 0x597   : > { %v4832_v57 = vmax.f32 %v7024_v22, %v7025_v15  ;;  %v4741_v13 = vpop.f32.mrb[14].mxu0  ;;  %6861 = vmatprep.subr.bf16.mxu1 %v6860_v53  ;;  %v4849_v22 = vld [vmem:[%s10530_s6 + $0x38] sm:$0xff]  ;;  %v4851_v15 = vld [vmem:[%s10530_s6 + $0x48] sm:$0xff] }
 0x598   : > { %v7026_v30 = vadd.f32 %v4741_v13, %v10215_v58  ;;  %v4743_v6 = vpop.f32.mrb[15].mxu0  ;;  %6863 = vmatpush3.bf16.msra.mxu1 %v6860_v53  ;;  %v4852_v53 = vld [vmem:[%s10530_s6 + $0x50] sm:$0xff]  ;;  %v4854_v13 = vld [vmem:[%s10530_s6 + $0x60] sm:$0xff] }
 0x599   : > { %v7027_v12 = vadd.f32 %v4743_v6, %v10219_v34  ;;  %v4856_v6 = vld [vmem:[%s10530_s6 + $0x70] sm:$0xff] }
 0x59b   : > { %v4833_v48 = vmax.f32 %v7026_v30, %v7027_v12  ;;  %v4747_v3 = vpop.f32.mrb[16].mxu0  ;;  %v4855_v30 = vld [vmem:[%s10530_s6 + $0x68] sm:$0xff]  ;;  %v4857_v12 = vld [vmem:[%s10530_s6 + $0x78] sm:$0xff] }
 0x59c   : > { %v7028_v7 = vadd.f32 %v4747_v3, %v10215_v58  ;;  %v4749_v16 = vpop.f32.mrb[17].mxu0  ;;  %v5022_v3 = vld [vmem:[%s10531_s7 + $0x18] sm:$0xff] }
 0x59d   : > { %v7029_v32 = vadd.f32 %v4749_v16, %v10219_v34  ;;  %v6864_v14 = vpack.c.bf16 %v4833_v48, %v4832_v57  ;;  %v4853_v57 = vld [vmem:[%s10530_s6 + $0x58] sm:$0xff]  ;;  %v5021_v48 = vld [vmem:[%s10531_s7 + $0x10] sm:$0xff]  ;;  %v5023_v16 = vld [vmem:[%s10531_s7 + $0x20] sm:$0xff] }
 0x59f   : > { %v4834_v39 = vmax.f32 %v7028_v7, %v7029_v32  ;;  %v4753_v52 = vpop.f32.mrb[18].mxu0  ;;  %6865 = vmatprep.subr.bf16.mxu1 %v6864_v14  ;;  %v6888_v7 = vpack.c.bf16 %v5022_v3, %v5021_v48  ;;  %v5024_v32 = vld [vmem:[%s10531_s7 + $0x28] sm:$0xff]  ;;  %v5045_v3 = vld [vmem:[%s10531_s7 + $0xd0] sm:$0xff] }
 0x5a0   : > { %v7030_v29 = vadd.f32 %v4753_v52, %v10215_v58  ;;  %v4755_v60 = vpop.f32.mrb[19].mxu0  ;;  %6867 = vmatpush3.bf16.msra.mxu1 %v6864_v14  ;;  %v6892_v14 = vpack.c.bf16 %v5024_v32, %v5023_v16  ;;  %v5026_v52 = vld [vmem:[%s10531_s7 + $0x38] sm:$0xff] }
 0x5a1   : > { %v7031_v23 = vadd.f32 %v4755_v60, %v10219_v34  ;;  %v5027_v60 = vld [vmem:[%s10531_s7 + $0x40] sm:$0xff] }
 0x5a3   : > { %v4835_v20 = vmax.f32 %v7030_v29, %v7031_v23  ;;  %v4759_v55 = vpop.f32.mrb[20].mxu0  ;;  %v5028_v23 = vld [vmem:[%s10531_s7 + $0x48] sm:$0xff] }
 0x5a4   : > { %v7032_v50 = vadd.f32 %v4759_v55, %v10215_v58  ;;  %v4761_v62 = vpop.f32.mrb[21].mxu0 }
 0x5a5   : > { %v7033_v37 = vadd.f32 %v4761_v62, %v10219_v34  ;;  %v6868_v45 = vpack.c.bf16 %v4835_v20, %v4834_v39  ;;  %v5025_v39 = vld [vmem:[%s10531_s7 + $0x30] sm:$0xff]  ;;  %v6900_v20 = vpack.c.bf16 %v5028_v23, %v5027_v60  ;;  %v5050_v23 = vld [vmem:[%s10531_s7 + $0xf8] sm:$0xff] }
 0x5a6   : > { %v6896_v29 = vpack.c.bf16 %v5026_v52, %v5025_v39  ;;  %v5048_v39 = vld [vmem:[%s10531_s7 + $0xe8] sm:$0xff]  ;;  %v5049_v60 = vld [vmem:[%s10531_s7 + $0xf0] sm:$0xff] }
 0x5a7   : > { %v4836_v10 = vmax.f32 %v7032_v50, %v7033_v37  ;;  %v4765_v44 = vpop.f32.mrb[22].mxu0  ;;  %6869 = vmatprep.subr.bf16.mxu1 %v6868_v45 }
 0x5a8   : > { %v7034_v40 = vadd.f32 %v4765_v44, %v10215_v58  ;;  %v4767_v25 = vpop.f32.mrb[23].mxu0  ;;  %6871 = vmatpush3.bf16.msra.mxu1 %v6868_v45 }
 0x5a9   : > { %v7035_v0 = vadd.f32 %v4767_v25, %v10219_v34 }
 0x5ab   : > { %v4837_v47 = vmax.f32 %v7034_v40, %v7035_v0  ;;  %v4771_v21 = vpop.f32.mrb[24].mxu0 }
 0x5ac   : > { %v7036_v51 = vadd.f32 %v4771_v21, %v10215_v58  ;;  %v4773_v61 = vpop.f32.mrb[25].mxu0 }
 0x5ad   : > { %v7037_v49 = vadd.f32 %v4773_v61, %v10219_v34  ;;  %v6872_v1 = vpack.c.bf16 %v4837_v47, %v4836_v10  ;;  %v5030_v61 = vld [vmem:[%s10531_s7 + $0x58] sm:$0xff] }
 0x5af   : > { %v4838_v59 = vmax.f32 %v7036_v51, %v7037_v49  ;;  %v4777_v36 = vpop.f32.mrb[26].mxu0  ;;  %6873 = vmatprep.subr.bf16.mxu1 %v6872_v1  ;;  %v5029_v51 = vld [vmem:[%s10531_s7 + $0x50] sm:$0xff] }
 0x5b0   : > { %v7038_v18 = vadd.f32 %v4777_v36, %v10215_v58  ;;  %v4779_v42 = vpop.f32.mrb[27].mxu0  ;;  %6875 = vmatpush3.bf16.msra.mxu1 %v6872_v1  ;;  %v6904_v36 = vpack.c.bf16 %v5030_v61, %v5029_v51  ;;  %v5401_v61 = vld [vmem:[%s10533_s9 + $0x40] sm:$0xff] }
 0x5b1   : > { %v7039_v54 = vadd.f32 %v4779_v42, %v10219_v34 }
 0x5b3   : > { %v4839_v31 = vmax.f32 %v7038_v18, %v7039_v54  ;;  %v4783_v4 = vpop.f32.mrb[28].mxu0  ;;  %v5031_v54 = vld [vmem:[%s10531_s7 + $0x60] sm:$0xff] }
 0x5b4   : > { %v7040_v8 = vadd.f32 %v4783_v4, %v10215_v58  ;;  %v4785_v11 = vpop.f32.mrb[29].mxu0 }
 0x5b5   : > { %v7041_v38 = vadd.f32 %v4785_v11, %v10219_v34  ;;  %v6876_v63 = vpack.c.bf16 %v4839_v31, %v4838_v59  ;;  %v5032_v31 = vld [vmem:[%s10531_s7 + $0x68] sm:$0xff] }
 0x5b7   : > { %v4840_v43 = vmax.f32 %v7040_v8, %v7041_v38  ;;  %v4789_v27 = vpop.f32.mrb[30].mxu0  ;;  %6877 = vmatprep.subr.bf16.mxu1 %v6876_v63  ;;  %v6908_v38 = vpack.c.bf16 %v5032_v31, %v5031_v54  ;;  %v5406_v54 = vld [vmem:[%s10533_s9 + $0x68] sm:$0xff] }
 0x5b8   : > { %v7042_v35 = vadd.f32 %v4789_v27, %v10215_v58  ;;  %v4791_v2 = vpop.f32.mrb[31].mxu0  ;;  %6879 = vmatpush3.bf16.msra.mxu1 %v6876_v63  ;;  %v4843_v58 = vld [vmem:[%s10530_s6 + $0x8] sm:$0xff]  ;;  %v5033_v27 = vld [vmem:[%s10531_s7 + $0x70] sm:$0xff] }
 0x5b9   : > { %v7043_v41 = vadd.f32 %v4791_v2, %v10219_v34  ;;  %v4844_v34 = vld [vmem:[%s10530_s6 + $0x10] sm:$0xff] }
 0x5bb   : > { %v4841_v17 = vmax.f32 %v7042_v35, %v7043_v41  ;;  %v5034_v35 = vld [vmem:[%s10531_s7 + $0x78] sm:$0xff] }
 0x5bc   : > { %v6912_v56 = vpack.c.bf16 %v5034_v35, %v5033_v27  ;;  %v5884_v27 = vld [vmem:[%s10532_s8] ss:$0 sm:$0xff] }
 0x5bd   : > { %v6880_v46 = vpack.c.bf16 %v4841_v17, %v4840_v43 }
 0x5bf   : > { %6881 = vmatprep.subr.bf16.mxu1 %v6880_v46 }
 0x5c0   : > { %6883 = vmatpush3.bf16.msra.mxu1 %v6880_v46  ;;  %v5035_v46 = vld [vmem:[%s10531_s7 + $0x80] sm:$0xff] }
 0x5c1   : > { %6885 = vmatprep.subr.bf16.mxu1 %v6884_v24 }
 0x5c3   : > { %6485 = vmatmul.mubr.f32.vlgmr.msra.gmra.mrb[64].mxu1 %v4843_v58 }
 0x5c4   : > { %6487 = vmatprep.mubr.f32.mxu1 %v4844_v34  ;;  %6887 = vmatpush3.bf16.msra.mxu1 %v6884_v24  ;;  %v5036_v24 = vld [vmem:[%s10531_s7 + $0x88] sm:$0xff] }
 0x5c5   : > { %6889 = vmatprep.subr.bf16.mxu1 %v6888_v7  ;;  %v6916_v34 = vpack.c.bf16 %v5036_v24, %v5035_v46 }
 0x5c7   : > { %6488 = vmatmul.mubr.f32.gmra.mrb[66].mxu1 %v4845_v19  ;;  %v5037_v19 = vld [vmem:[%s10531_s7 + $0x90] sm:$0xff] }
 0x5c8   : > { %6490 = vmatprep.mubr.f32.mxu1 %v4846_v9  ;;  %6891 = vmatpush3.bf16.msra.mxu1 %v6888_v7  ;;  %v5038_v9 = vld [vmem:[%s10531_s7 + $0x98] sm:$0xff] }
 0x5c9   : > { %6893 = vmatprep.subr.bf16.mxu1 %v6892_v14  ;;  %v5046_v7 = vld [vmem:[%s10531_s7 + $0xd8] sm:$0xff] }
 0x5ca   : > { %v6936_v32 = vpack.c.bf16 %v5046_v7, %v5045_v3  ;;  %v5507_v3 = vld [vmem:[%s10535_s11 + $0x70] sm:$0xff]  ;;  %v5508_v7 = vld [vmem:[%s10535_s11 + $0x78] sm:$0xff] }
 0x5cb   : > { %6491 = vmatmul.mubr.f32.gmra.mrb[68].mxu1 %v4847_v28 }
 0x5cc   : > { %6493 = vmatprep.mubr.f32.mxu1 %v4848_v5  ;;  %6895 = vmatpush3.bf16.msra.mxu1 %v6892_v14  ;;  %v6920_v5 = vpack.c.bf16 %v5038_v9, %v5037_v19  ;;  %v5047_v14 = vld [vmem:[%s10531_s7 + $0xe0] sm:$0xff]  ;;  %v5498_v19 = vld [vmem:[%s10535_s11 + $0x28] sm:$0xff] }
 0x5cd   : > { %6897 = vmatprep.subr.bf16.mxu1 %v6896_v29 }
 0x5cf   : > { %6494 = vmatmul.mubr.f32.gmra.mrb[70].mxu1 %v4849_v22  ;;  %v5039_v22 = vld [vmem:[%s10531_s7 + $0xa0] sm:$0xff] }
 0x5d0   : > { %6496 = vmatprep.mubr.f32.mxu1 %v4850_v33  ;;  %6899 = vmatpush3.bf16.msra.mxu1 %v6896_v29  ;;  %v5040_v33 = vld [vmem:[%s10531_s7 + $0xa8] sm:$0xff]  ;;  %v6940_v29 = vpack.c.bf16 %v5048_v39, %v5047_v14 }
 0x5d1   : > { %6901 = vmatprep.subr.bf16.mxu1 %v6900_v20 }
 0x5d3   : > { %6497 = vmatmul.mubr.f32.gmra.mrb[72].mxu1 %v4851_v15 }
 0x5d4   : > { %6499 = vmatprep.mubr.f32.mxu1 %v4852_v53  ;;  %v6924_v53 = vpack.c.bf16 %v5040_v33, %v5039_v22  ;;  %v5501_v33 = vld [vmem:[%s10535_s11 + $0x40] sm:$0xff] }
 0x5d7   : > { %6500 = vmatmul.mubr.f32.gmra.mrb[74].mxu1 %v4853_v57  ;;  %v5041_v57 = vld [vmem:[%s10531_s7 + $0xb0] sm:$0xff] }
 0x5d8   : > { %6502 = vmatprep.mubr.f32.mxu1 %v4854_v13  ;;  %v5042_v13 = vld [vmem:[%s10531_s7 + $0xb8] sm:$0xff] }
 0x5db   : > { %6503 = vmatmul.mubr.f32.gmra.mrb[76].mxu1 %v4855_v30  ;;  %v6928_v30 = vpack.c.bf16 %v5042_v13, %v5041_v57  ;;  %v5503_v57 = vld [vmem:[%s10535_s11 + $0x50] sm:$0xff]  ;;  %v5504_v13 = vld [vmem:[%s10535_s11 + $0x58] sm:$0xff] }
 0x5dc   : > { %6505 = vmatprep.mubr.f32.mxu1 %v4856_v6  ;;  %v5043_v6 = vld [vmem:[%s10531_s7 + $0xc0] sm:$0xff] }
 0x5df   : > { %6506 = vmatmul.mubr.f32.gmra.mrb[78].mxu1 %v4857_v12  ;;  %v5044_v12 = vld [vmem:[%s10531_s7 + $0xc8] sm:$0xff] }
 0x5e0   : > { %v6932_v48 = vpack.c.bf16 %v5044_v12, %v5043_v6  ;;  %v5505_v6 = vld [vmem:[%s10535_s11 + $0x60] sm:$0xff]  ;;  %v5506_v12 = vld [vmem:[%s10535_s11 + $0x68] sm:$0xff] }
 0x696   : > { %v6486_v55 = vpop.f32.mrb[64].mxu1 }
 0x697   : > { %v4924_v50 = vpop.f32.mrb[65].mxu1 }
 0x69a   : > { %v6489_v62 = vpop.f32.mrb[66].mxu1 }
 0x69b   : > { %v4934_v37 = vpop.f32.mrb[67].mxu1 }
 0x69e   : > { %v10328_v45 = vpop.f32.mrb[68].mxu1 }
 0x69f   : > { %v4944_v10 = vpop.f32.mrb[69].mxu1 }
 0x6a2   : > { %v10330_v44 = vpop.f32.mrb[70].mxu1 }
 0x6a3   : > { %v10332_v40 = vpop.f32.mrb[71].mxu1 }
 0x6a6   : > { %v6498_v25 = vpop.f32.mrb[72].mxu1 }
 0x6a7   : > { %v5004_v0 = vmax.f32 %v6486_v55, %v6498_v25  ;;  %v4964_v47 = vpop.f32.mrb[73].mxu1  ;;  %v5393_v55 = vld [vmem:[%s10533_s9] sm:$0xff]  ;;  %v5398_v25 = vld [vmem:[%s10533_s9 + $0x28] sm:$0xff] }
 0x6a8   : > { %v5003_v21 = vmax.f32 %v4924_v50, %v4964_v47  ;;  %v5394_v50 = vld [vmem:[%s10533_s9 + $0x8] sm:$0xff]  ;;  %v5399_v47 = vld [vmem:[%s10533_s9 + $0x30] sm:$0xff] }
 0x6a9   : > { %v5012_v59 = vmax.f32 %v5004_v0, 0.0 }
 0x6aa   : > { %v5011_v49 = vmax.f32 %v5003_v21, 0.0  ;;  %v6501_v1 = vpop.f32.mrb[74].mxu1  ;;  %v5400_v21 = vld [vmem:[%s10533_s9 + $0x38] sm:$0xff] }
 0x6ab   : > { %v5006_v18 = vmax.f32 %v6489_v62, %v6501_v1  ;;  %v4974_v42 = vpop.f32.mrb[75].mxu1  ;;  %v6948_v62 = vpack.c.bf16 %v5394_v50, %v5393_v55  ;;  %v6960_v51 = vpack.c.bf16 %v5400_v21, %v5399_v47 }
 0x6ac   : > { %6524 = vmatprep.mubr.msk.f32.mxu1 %vm5052_vm5, %v5011_v49  ;;  %v5005_v4 = vmax.f32 %v4934_v37, %v4974_v42  ;;  %v5395_v37 = vld [vmem:[%s10533_s9 + $0x10] sm:$0xff]  ;;  %v5402_v49 = vld [vmem:[%s10533_s9 + $0x48] sm:$0xff]  ;;  %v5405_v42 = vld [vmem:[%s10533_s9 + $0x60] sm:$0xff] }
 0x6ad   : > { %6525 = vmatmul.mubr.msk.f32.vlgmr.msra.gmra.mrb[80].mxu1 %vm5052_vm5, %v5012_v59  ;;  %v5014_v28 = vmax.f32 %v5006_v18, 0.0  ;;  %v6964_v1 = vpack.c.bf16 %v5402_v49, %v5401_v61  ;;  %v5403_v59 = vld [vmem:[%s10533_s9 + $0x50] sm:$0xff]  ;;  %v6972_v31 = vpack.c.bf16 %v5406_v54, %v5405_v42 }
 0x6ae   : > { %6903 = vmatpush3.bf16.msra.mxu1 %v6900_v20  ;;  %v5013_v8 = vmax.f32 %v5005_v4, 0.0  ;;  %v6504_v11 = vpop.f32.mrb[76].mxu1  ;;  %v6944_v20 = vpack.c.bf16 %v5050_v23, %v5049_v60  ;;  %v5407_v4 = vld [vmem:[%s10533_s9 + $0x70] sm:$0xff] }
 0x6af   : > { %6905 = vmatprep.subr.bf16.mxu1 %v6904_v36  ;;  %v5008_v63 = vmax.f32 %v10328_v45, %v6504_v11  ;;  %v4984_v43 = vpop.f32.mrb[77].mxu1  ;;  %v5396_v45 = vld [vmem:[%s10533_s9 + $0x18] sm:$0xff] }
 0x6b0   : > { %6543 = vmatprep.mubr.msk.f32.mxu1 %vm5052_vm5, %v5013_v8  ;;  %v5007_v2 = vmax.f32 %v4944_v10, %v4984_v43  ;;  %v5408_v8 = vld [vmem:[%s10533_s9 + $0x78] sm:$0xff] }
 0x6b1   : > { %v5016_v16 = vmax.f32 %v5008_v63, 0.0  ;;  %v6976_v11 = vpack.c.bf16 %v5408_v8, %v5407_v4  ;;  %v5494_v63 = vld [vmem:[%s10535_s11 + $0x8] sm:$0xff] }
 0x6b2   : > { %6907 = vmatpush3.bf16.msra.mxu1 %v6904_v36  ;;  %v6507_v41 = vpop.f32.mrb[78].mxu1  ;;  %v5015_v15 = vmax.f32 %v5007_v2, 0.0  ;;  %v5404_v36 = vld [vmem:[%s10533_s9 + $0x58] sm:$0xff] }
 0x6b3   : > { %6909 = vmatprep.subr.bf16.mxu1 %v6908_v38  ;;  %v5010_v26 = vmax.f32 %v10330_v44, %v6507_v41  ;;  %v4994_v17 = vpop.f32.mrb[79].mxu1  ;;  %v6952_v44 = vpack.c.bf16 %v5396_v45, %v5395_v37  ;;  %v6968_v18 = vpack.c.bf16 %v5404_v36, %v5403_v59 }
 0x6b4   : > { %v5009_v58 = vmax.f32 %v10332_v40, %v4994_v17  ;;  %v5397_v40 = vld [vmem:[%s10533_s9 + $0x20] sm:$0xff]  ;;  %v5496_v17 = vld [vmem:[%s10535_s11 + $0x18] sm:$0xff] }
 0x6b5   : > { %v5018_v10 = vmax.f32 %v5010_v26, 0.0  ;;  %v6956_v0 = vpack.c.bf16 %v5398_v25, %v5397_v40  ;;  %v5495_v26 = vld [vmem:[%s10535_s11 + $0x10] sm:$0xff] }
 0x6b6   : > { %6911 = vmatpush3.bf16.msra.mxu1 %v6908_v38  ;;  %v5017_v52 = vmax.f32 %v5009_v58, 0.0  ;;  %v5493_v38 = vld [vmem:[%s10535_s11] sm:$0xff]  ;;  %v6984_v58 = vpack.c.bf16 %v5496_v17, %v5495_v26 }
 0x6b7   : > { %6913 = vmatprep.subr.bf16.mxu1 %v6912_v56  ;;  %v6980_v43 = vpack.c.bf16 %v5494_v63, %v5493_v38 }
 0x6ba   : > { %6915 = vmatpush3.bf16.msra.mxu1 %v6912_v56 }
 0x6bb   : > { %6917 = vmatprep.subr.bf16.mxu1 %v6916_v34 }
 0x6bd   : > { %6544 = vmatmul.mubr.msk.f32.vlgmr.msra.gmra.mrb[80].mxu1 %vm5052_vm5, %v5014_v28  ;;  %v5499_v28 = vld [vmem:[%s10535_s11 + $0x30] sm:$0xff] }
 0x6be   : > { %6919 = vmatpush3.bf16.msra.mxu1 %v6916_v34  ;;  %6562 = vmatprep.mubr.msk.f32.mxu1 %vm5052_vm5, %v5015_v15  ;;  %v5497_v34 = vld [vmem:[%s10535_s11 + $0x20] sm:$0xff]  ;;  %v5502_v15 = vld [vmem:[%s10535_s11 + $0x48] sm:$0xff] }
 0x6bf   : > { %6921 = vmatprep.subr.bf16.mxu1 %v6920_v5  ;;  %v6988_v9 = vpack.c.bf16 %v5498_v19, %v5497_v34 }
 0x6c2   : > { %6923 = vmatpush3.bf16.msra.mxu1 %v6920_v5  ;;  %v5500_v5 = vld [vmem:[%s10535_s11 + $0x38] sm:$0xff] }
 0x6c3   : > { %6925 = vmatprep.subr.bf16.mxu1 %v6924_v53  ;;  %v6992_v22 = vpack.c.bf16 %v5500_v5, %v5499_v28 }
 0x6c6   : > { %6927 = vmatpush3.bf16.msra.mxu1 %v6924_v53  ;;  %v6996_v53 = vpack.c.bf16 %v5502_v15, %v5501_v33 }
 0x6c7   : > { %6929 = vmatprep.subr.bf16.mxu1 %v6928_v30 }
 0x6ca   : > { %6931 = vmatpush3.bf16.msra.mxu1 %v6928_v30  ;;  %v7000_v30 = vpack.c.bf16 %v5504_v13, %v5503_v57 }
 0x6cb   : > { %6933 = vmatprep.subr.bf16.mxu1 %v6932_v48 }
 0x6cd   : > { %6563 = vmatmul.mubr.msk.f32.vlgmr.msra.gmra.mrb[80].mxu1 %vm5052_vm5, %v5016_v16  ;;  %v7008_v16 = vpack.c.bf16 %v5508_v7, %v5507_v3 }
 0x6ce   : > { %6935 = vmatpush3.bf16.msra.mxu1 %v6932_v48  ;;  %6581 = vmatprep.mubr.msk.f32.mxu1 %vm5052_vm5, %v5017_v52  ;;  %v7004_v48 = vpack.c.bf16 %v5506_v12, %v5505_v6 }
 0x6cf   : > { %6937 = vmatprep.subr.bf16.mxu1 %v6936_v32 }
 0x6d2   : > { %6939 = vmatpush3.bf16.msra.mxu1 %v6936_v32  ;;  %v5891_v32 = vld [vmem:[%s10534_s10] ss:$0 sm:$0xff] }
 0x6d3   : > { %6941 = vmatprep.subr.bf16.mxu1 %v6940_v29 }
 0x6d6   : > { %6943 = vmatpush3.bf16.msra.mxu1 %v6940_v29 }
 0x6d7   : > { %6945 = vmatprep.subr.bf16.mxu1 %v6944_v20 }
 0x6da   : > { %6947 = vmatpush3.bf16.msra.mxu1 %v6944_v20  ;;  %v5892_v20 = vld [vmem:[%s10536_s12] ss:$0 sm:$0xff] }
 0x6db   : > { %6949 = vmatprep.subr.bf16.mxu1 %v6948_v62 }
 0x6dd   : > { %6582 = vmatmul.mubr.msk.f32.vlgmr.msra.gmra.mrb[80].mxu1 %vm5052_vm5, %v5018_v10 }
 0x6de   : > { %6951 = vmatpush3.bf16.msra.mxu1 %v6948_v62 }
 0x6df   : > { %6953 = vmatprep.subr.bf16.mxu1 %v6952_v44 }
 0x6e2   : > { %6955 = vmatpush3.bf16.msra.mxu1 %v6952_v44 }
 0x6e3   : > { %6957 = vmatprep.subr.bf16.mxu1 %v6956_v0 }
 0x6e6   : > { %6959 = vmatpush3.bf16.msra.mxu1 %v6956_v0 }
 0x6e7   : > { %6961 = vmatprep.subr.bf16.mxu1 %v6960_v51 }
 0x6ea   : > { %6963 = vmatpush3.bf16.msra.mxu1 %v6960_v51 }
 0x6eb   : > { %6965 = vmatprep.subr.bf16.mxu1 %v6964_v1 }
 0x6ee   : > { %6967 = vmatpush3.bf16.msra.mxu1 %v6964_v1 }
 0x6ef   : > { %6969 = vmatprep.subr.bf16.mxu1 %v6968_v18 }
 0x6f2   : > { %6971 = vmatpush3.bf16.msra.mxu1 %v6968_v18 }
 0x6f3   : > { %6973 = vmatprep.subr.bf16.mxu1 %v6972_v31 }
 0x6f6   : > { %6975 = vmatpush3.bf16.msra.mxu1 %v6972_v31 }
 0x6f7   : > { %6977 = vmatprep.subr.bf16.mxu1 %v6976_v11 }
 0x6fa   : > { %6979 = vmatpush3.bf16.msra.mxu1 %v6976_v11 }
 0x6fb   : > { %6981 = vmatprep.subr.bf16.mxu1 %v6980_v43 }
 0x7b0   : > { %v6583_v35 = vpop.f32.mrb[80].mxu1 }
 0x7b1   : > { %v7044_v2 = vadd.f32 %v6583_v35, %v5884_v27  ;;  %v5380_v41 = vpop.f32.mrb[81].mxu1 }
 0x7b2   : > { %v7045_v56 = vadd.f32 %v5884_v27, %v5380_v41 }
 0x7b3   : > { %v5392_v24 = vmax.f32 %v7044_v2, 0.0 }
 0x7b4   : > { %v5391_v46 = vmax.f32 %v7045_v56, 0.0 }
 0x7b6   : > { %6616 = vmatprep.mubr.f32.mxu1 %v5391_v46 }
 0x7b7   : > { %6617 = vmatmul.mubr.f32.vlgmr.msra.gmra.mrb[82].mxu1 %v5392_v24 }
 0x7b8   : > { %6983 = vmatpush3.bf16.msra.mxu1 %v6980_v43 }
 0x7b9   : > { %6985 = vmatprep.subr.bf16.mxu1 %v6984_v58 }
 0x7bc   : > { %6987 = vmatpush3.bf16.msra.mxu1 %v6984_v58 }
 0x7bd   : > { %6989 = vmatprep.subr.bf16.mxu1 %v6988_v9 }
 0x7c0   : > { %6991 = vmatpush3.bf16.msra.mxu1 %v6988_v9 }
 0x7c1   : > { %6993 = vmatprep.subr.bf16.mxu1 %v6992_v22 }
 0x7c4   : > { %6995 = vmatpush3.bf16.msra.mxu1 %v6992_v22 }
 0x7c5   : > { %6997 = vmatprep.subr.bf16.mxu1 %v6996_v53 }
 0x7c8   : > { %6999 = vmatpush3.bf16.msra.mxu1 %v6996_v53 }
 0x7c9   : > { %7001 = vmatprep.subr.bf16.mxu1 %v7000_v30 }
 0x7cc   : > { %7003 = vmatpush3.bf16.msra.mxu1 %v7000_v30 }
 0x7cd   : > { %7005 = vmatprep.subr.bf16.mxu1 %v7004_v48 }
 0x7d0   : > { %7007 = vmatpush3.bf16.msra.mxu1 %v7004_v48 }
 0x7d1   : > { %7009 = vmatprep.subr.bf16.mxu1 %v7008_v16 }
 0x7d4   : > { %7011 = vmatpush3.bf16.msra.mxu1 %v7008_v16 }
 0x88a   : > { %v6618_v14 = vpop.f32.mrb[82].mxu1 }
 0x88b   : > { %v5488_v39 = vadd.f32 %v6618_v14, %v5891_v32  ;;  %v5482_v52 = vpop.f32.mrb[83].mxu1 }
 0x88c   : > { %v5483_v29 = vadd.f32 %v5891_v32, %v5482_v52 }
 0x88d   : > { %v5492_v23 = vmax.f32 %v5488_v39, 0.0 }
 0x88e   : > { %v5491_v60 = vmax.f32 %v5483_v29, 0.0 }
 0x890   : > { %6651 = vmatprep.mubr.f32.mxu1 %v5491_v60 }
 0x891   : > { %6652 = vmatmul.mubr.f32.vlgmr.msra.gmra.mrb[84].mxu1 %v5492_v23 }
 0x964   : > { %v6653_v55 = vpop.f32.mrb[84].mxu1 }
 0x965   : > { %v5582_v50 = vpop.f32.mrb[85].mxu1  ;;  %v5588_v37 = vadd.f32 %v6653_v55, %v5892_v20 }
 0x966   : > { %v5583_v62 = vadd.f32 %v5892_v20, %v5582_v50 }
 0x968   : > { %5591 = vmax.xlane.f32.xlu0 %v5583_v62 }
 0x96c   : > { %5593 = vmax.xlane.f32.xlu0 %v5588_v37 }
 0x9f5   : > { %v5592_v45 = vpop.xlane.xlu0 %5591 }
 0x9f6   : > { %v5595_v10 = vsub.f32 %v5583_v62, %v5592_v45 }
 0x9f8   : > { %v5597_v44 = vmul.f32 1.442695, %v5595_v10 }
 0x9f9   : > { %v5594_v40 = vpop.xlane.xlu0 %5593 }
 0x9fa   : > { %v5596_v25 = vsub.f32 %v5588_v37, %v5594_v40  ;;  %7191 = vpow2.f32 %v5597_v44 }
 0x9fc   : > { %v5599_v0 = vmul.f32 1.442695, %v5596_v25 }
 0x9fe   : > { %7193 = vpow2.f32 %v5599_v0 }
 0xa04   : > { %v7192_v47 = vpop.eup %7191 }
 0xa05   : > { %5601 = vadd.xlane.f32.xlu1 %v7192_v47 }
 0xa08   : > { %v7194_v21 = vpop.eup %7193 }
 0xa09   : > { %5603 = vadd.xlane.f32.xlu1 %v7194_v21 }
 0xa92   : > { %v5602_v51 = vpop.xlane.xlu1 %5601 }
 0xa93   : > { %7195 = vlog2.f32 %v5602_v51 }
 0xa96   : > { %v5604_v61 = vpop.xlane.xlu1 %5603 }
 0xa97   : > { %7197 = vlog2.f32 %v5604_v61 }
 0xa9d   : > { %v7196_v49 = vpop.eup %7195 }
 0xa9e   : > { %v5606_v1 = vmul.f32 0.6931472, %v7196_v49 }
 0xaa0   : > { %v5609_v59 = vadd.f32 %v5606_v1, %v5592_v45 }
 0xaa1   : > { %v7198_v36 = vpop.eup %7197 }
 0xaa2   : > { %v5611_v18 = vsub.f32 %v5583_v62, %v5609_v59  ;;  %v5608_v42 = vmul.f32 0.6931472, %v7198_v36 }
 0xaa4   : > { %5613 = vst [vmem:[%s445_s24] sm:$0xff] %v5611_v18  ;;  %v5610_v54 = vadd.f32 %v5608_v42, %v5594_v40 }
 0xaa6   : > { %v5612_v31 = vsub.f32 %v5588_v37, %v5610_v54 }
 0xaa8   : > { %5614 = vst [vmem:[%s445_s24 + $0x8] sm:$0xff] %v5612_v31 }
 0xaa9 PF: > { %s23_s25 = sadd.s32 1, %s7205_s25  }
 0xaaa   : > { %p20_p5 = scmp.ge.s32.totalorder %s23_s25, 4  }
 0xaac   :  { %22 = sbr.rel (!%p20_p5) target bundleno = 1 (0x1), region = 106 }

</bundles_post_ra>
